<compile_context>
chip_gen: v7x
topology: tpu7x:2x2x1
jax: 0.10.0
libtpu: 0.0.40
codegen_flags: <defaults>
</compile_context>

<pallas_src>
import functools

import jax
import jax.numpy as jnp
from jax.experimental import pallas as pl
from jax.experimental.pallas import tpu as pltpu

LANE = 128          # TPU lane width (last-dim tile)
SUB = 8             # TPU sublane width (second-to-last-dim tile)
BN_EPS = 1e-3
NUM_CONCEPTS = 312


def _round_up(x, m):
    return (x + m - 1) // m * m


# ----------------------------------------------------------------------------
# Pallas kernels (single grid step, operands fully VMEM resident)
# ----------------------------------------------------------------------------
def _conv_mm_kernel(x_ref, w_ref, b_ref, leak_ref, o_ref):
    """o = act(x @ w + b), per-column activation:
       leak=0 -> ReLU, leak=1 -> identity (padded cols have w=b=0, leak=0)."""
    y = jnp.dot(x_ref[...], w_ref[...], preferred_element_type=jnp.float32)
    y = y + b_ref[...]
    o_ref[...] = jnp.maximum(y, y * leak_ref[...])


def _head_kernel(x_ref, w_ref, b_ref, o_ref, *, inv_hw):
    """Fused global-average-pool + Linear + sigmoid.
       x: (Bp, Cp, HW); w: (Cp, Np); b: (1, Np); o: (Bp, Np)."""
    feats = jnp.sum(x_ref[...], axis=-1) * inv_hw          # (Bp, Cp)
    y = jnp.dot(feats, w_ref[...], preferred_element_type=jnp.float32)
    o_ref[...] = jax.nn.sigmoid(y + b_ref[...])


# ----------------------------------------------------------------------------
# Pallas wrappers
# ----------------------------------------------------------------------------
def _conv_matmul(patches, wmat, bias, leak):
    """act(patches @ wmat + bias); operands pre-padded, one kernel invocation."""
    Mp, Kp = patches.shape
    _, Np = wmat.shape
    return pl.pallas_call(
        _conv_mm_kernel,
        out_shape=jax.ShapeDtypeStruct((Mp, Np), jnp.float32),
        grid=(1,),
        in_specs=[
            pl.BlockSpec((Mp, Kp), lambda i: (0, 0)),
            pl.BlockSpec((Kp, Np), lambda i: (0, 0)),
            pl.BlockSpec((1, Np), lambda i: (0, 0)),
            pl.BlockSpec((1, Np), lambda i: (0, 0)),
        ],
        out_specs=pl.BlockSpec((Mp, Np), lambda i: (0, 0)),
        compiler_params=pltpu.CompilerParams(dimension_semantics=("arbitrary",)),
    )(patches, wmat, bias, leak)


def _head(feat, fc_w, fc_b, hw):
    """feat: (Bp, Cp, HW) -> sigmoid(GAP(feat) @ fc_w + fc_b), (Bp, Np)."""
    Bp, Cp, HW = feat.shape
    Np = fc_w.shape[1]
    return pl.pallas_call(
        functools.partial(_head_kernel, inv_hw=1.0 / float(hw)),
        out_shape=jax.ShapeDtypeStruct((Bp, Np), jnp.float32),
        grid=(1,),
        in_specs=[
            pl.BlockSpec((Bp, Cp, HW), lambda i: (0, 0, 0)),
            pl.BlockSpec((Cp, Np), lambda i: (0, 0)),
            pl.BlockSpec((1, Np), lambda i: (0, 0)),
        ],
        out_specs=pl.BlockSpec((Bp, Np), lambda i: (0, 0)),
        compiler_params=pltpu.CompilerParams(dimension_semantics=("arbitrary",)),
    )(feat, fc_w, fc_b)


# ----------------------------------------------------------------------------
# Host-side layout glue (fused by XLA under jit)
# ----------------------------------------------------------------------------
def _im2col_nhwc(x, kh, kw, stride, padding, kp):
    # TODO(synk): im2col patch gather stays as XLA glue (data-dependent-free
    # rectangular slices); only the matmul runs in Pallas.
    B, H, W, C = x.shape
    if padding:
        x = jnp.pad(x, ((0, 0), (padding, padding), (padding, padding), (0, 0)))
    Hp, Wp = x.shape[1], x.shape[2]
    Ho = (Hp - kh) // stride + 1
    Wo = (Wp - kw) // stride + 1
    cols = []
    for i in range(kh):
        for j in range(kw):
            cols.append(x[:, i:i + stride * Ho:stride, j:j + stride * Wo:stride, :])
    patches = jnp.concatenate(cols, axis=-1).reshape(B * Ho * Wo, kh * kw * C)
    M, K = patches.shape
    patches = jnp.pad(patches, ((0, _round_up(M, SUB) - M), (0, kp - K)))
    return patches, Ho, Wo


def _conv_block(x, cp, stride=1, padding=0):
    """BasicConv2d = Conv2d(no bias) + BatchNorm(eval, folded) + ReLU. NHWC."""
    patches, Ho, Wo = _im2col_nhwc(x, cp["kh"], cp["kw"], stride, padding, cp["kp"])
    y = _conv_matmul(patches, cp["w"], cp["b"], cp["leak"])
    B = x.shape[0]
    M = B * Ho * Wo
    return y[:M, :cp["cout"]].reshape(B, Ho, Wo, cp["cout"])


def _max_pool_nhwc(x, k, stride):
    # TODO(synk): pooling window extraction kept as XLA elementwise-max glue.
    B, H, W, C = x.shape
    Ho = (H - k) // stride + 1
    Wo = (W - k) // stride + 1
    out = None
    for i in range(k):
        for j in range(k):
            v = x[:, i:i + stride * Ho:stride, j:j + stride * Wo:stride, :]
            out = v if out is None else jnp.maximum(out, v)
    return out


def _avg_pool_3x3_s1_p1_nhwc(x):
    # F.avg_pool2d(k=3, s=1, p=1), count_include_pad=True -> always /9
    B, H, W, C = x.shape
    xp = jnp.pad(x, ((0, 0), (1, 1), (1, 1), (0, 0)))
    acc = jnp.zeros_like(x)
    for i in range(3):
        for j in range(3):
            acc = acc + xp[:, i:i + H, j:j + W, :]
    return acc * (1.0 / 9.0)


# ----------------------------------------------------------------------------
# One-time weight preparation (hoisted out of the forward pass)
# ----------------------------------------------------------------------------
def _fold_bn(p):
    scale = p["gamma"] * jax.lax.rsqrt(p["var"] + BN_EPS)
    bias = p["beta"] - p["mean"] * scale
    return scale, bias


def _prep_conv(p):
    cout, cin, kh, kw = p["w"].shape
    scale, bias = _fold_bn(p)
    K = kh * kw * cin
    kp = _round_up(K, LANE)
    wmat = jnp.transpose(p["w"], (2, 3, 1, 0)).reshape(K, cout) * scale[None, :]
    return {
        "kh": kh, "kw": kw, "cout": cout, "kp": kp,
        "w": jnp.pad(wmat, ((0, kp - K), (0, LANE - cout))),
        "b": jnp.pad(bias.reshape(1, -1), ((0, 0), (0, LANE - cout))),
        "leak": jnp.zeros((1, LANE), jnp.float32),
    }


def _prep_branch_entry(p_b1, p_b5, p_b3, p_bp):
    """Pack the four 1x1 branch-entry convs (shared input) along N.
       branch_pool columns carry only scale*W (no bias, no ReLU -> leak=1);
       its BN bias and ReLU are applied after the avg-pool by linearity."""
    ws, bs, leaks = [], [], []
    for p, fold_bias, leak in ((p_b1, True, 0.0), (p_b5, True, 0.0),
                               (p_b3, True, 0.0), (p_bp, False, 1.0)):
        cout, cin = p["w"].shape[0], p["w"].shape[1]
        scale, bias = _fold_bn(p)
        ws.append(p["w"].reshape(cout, cin).T * scale[None, :])
        bs.append(bias if fold_bias else jnp.zeros_like(bias))
        leaks.append(jnp.full((cout,), leak, jnp.float32))
    w = jnp.concatenate(ws, axis=1)
    b = jnp.concatenate(bs)
    leak = jnp.concatenate(leaks)
    K, N = w.shape
    kp = _round_up(K, LANE)
    _, bp_bias = _fold_bn(p_bp)
    return {
        "kp": kp,
        "w": jnp.pad(w, ((0, kp - K), (0, LANE - N))),
        "b": jnp.pad(b.reshape(1, -1), ((0, 0), (0, LANE - N))),
        "leak": jnp.pad(leak.reshape(1, -1), ((0, 0), (0, LANE - N))),
        "splits": (p_b1["w"].shape[0], p_b5["w"].shape[0],
                   p_b3["w"].shape[0], p_bp["w"].shape[0]),
        "bp_bias": bp_bias,
    }


def prepare_params(params):
    cin_fc = params["fc_w"].shape[1]                 # 32
    cp_ = _round_up(cin_fc, LANE)                    # 128
    np_ = _round_up(NUM_CONCEPTS, LANE)              # 384
    return {
        "conv1a": _prep_conv(params["conv1a"]),
        "conv2b": _prep_conv(params["conv2b"]),
        "branch1x1": _prep_branch_entry(params["b1x1"], params["b5x5_1"],
                                        params["b3x3dbl_1"], params["bpool"]),
        "b5x5_2": _prep_conv(params["b5x5_2"]),
        "b3x3dbl_2": _prep_conv(params["b3x3dbl_2"]),
        "b3x3dbl_3": _prep_conv(params["b3x3dbl_3"]),
        "fc_w": jnp.pad(params["fc_w"].T,
                        ((0, cp_ - cin_fc), (0, np_ - NUM_CONCEPTS))),
        "fc_b": jnp.pad(params["fc_b"].reshape(1, -1),
                        ((0, 0), (0, np_ - NUM_CONCEPTS))),
    }


# ----------------------------------------------------------------------------
# Scaled-down Inception v3 (eval mode) + concept head
# ----------------------------------------------------------------------------
def _init_basic_conv(key, cin, cout, k):
    kw_, kg, kb, km = jax.random.split(key, 4)
    fan_in = cin * k * k
    return {
        "w": jax.random.normal(kw_, (cout, cin, k, k), jnp.float32) / jnp.sqrt(fan_in),
        "gamma": 1.0 + 0.1 * jax.random.normal(kg, (cout,), jnp.float32),
        "beta": 0.1 * jax.random.normal(kb, (cout,), jnp.float32),
        "mean": 0.1 * jax.random.normal(km, (cout,), jnp.float32),
        "var": jnp.ones((cout,), jnp.float32),
    }


def init_params(key):
    ks = jax.random.split(key, 12)
    return {
        # stem
        "conv1a": _init_basic_conv(ks[0], 3, 8, 3),    # stride 2
        "conv2b": _init_basic_conv(ks[1], 8, 16, 3),   # pad 1
        # Inception-A style mixed block (in=16 -> out=8+8+12+4=32)
        "b1x1": _init_basic_conv(ks[2], 16, 8, 1),
        "b5x5_1": _init_basic_conv(ks[3], 16, 6, 1),
        "b5x5_2": _init_basic_conv(ks[4], 6, 8, 5),
        "b3x3dbl_1": _init_basic_conv(ks[5], 16, 8, 1),
        "b3x3dbl_2": _init_basic_conv(ks[6], 8, 12, 3),
        "b3x3dbl_3": _init_basic_conv(ks[7], 12, 12, 3),
        "bpool": _init_basic_conv(ks[8], 16, 4, 1),
        # fc: Linear(32, NUM_CONCEPTS)  (PyTorch weight layout (out, in))
        "fc_w": 0.05 * jax.random.normal(ks[9], (NUM_CONCEPTS, 32), jnp.float32),
        "fc_b": 0.05 * jax.random.normal(ks[10], (NUM_CONCEPTS,), jnp.float32),
    }


def inception_forward(pp, x_nchw):
    x = jnp.transpose(x_nchw, (0, 2, 3, 1)).astype(jnp.float32)   # NHWC
    B = x.shape[0]

    # ---- stem ----
    x = _conv_block(x, pp["conv1a"], stride=2, padding=0)    # (B,15,15,8)
    x = _conv_block(x, pp["conv2b"], stride=1, padding=1)    # (B,15,15,16)
    x = _max_pool_nhwc(x, k=3, stride=2)                     # (B,7,7,16)
    _, H, W, C = x.shape
    M = B * H * W

    # ---- Inception-A: all four branch-entry 1x1 convs in ONE matmul ----
    br = pp["branch1x1"]
    patches = jnp.pad(x.reshape(M, C),
                      ((0, _round_up(M, SUB) - M), (0, br["kp"] - C)))
    y = _conv_matmul(patches, br["w"], br["b"], br["leak"])
    c1, c5, c3, cpl = br["splits"]
    o1, o2, o3 = c1, c1 + c5, c1 + c5 + c3
    b1 = y[:M, :o1].reshape(B, H, W, c1)
    b5in = y[:M, o1:o2].reshape(B, H, W, c5)
    b3in = y[:M, o2:o3].reshape(B, H, W, c3)
    zbp = y[:M, o3:o3 + cpl].reshape(B, H, W, cpl)

    b5 = _conv_block(b5in, pp["b5x5_2"], padding=2)
    b3 = _conv_block(b3in, pp["b3x3dbl_2"], padding=1)
    b3 = _conv_block(b3, pp["b3x3dbl_3"], padding=1)
    # branch_pool: BasicConv2d(avg_pool(x)) == relu(avg_pool(scale*W@x) + bias)
    bp = jnp.maximum(_avg_pool_3x3_s1_p1_nhwc(zbp) + br["bp_bias"], 0.0)

    feat = jnp.concatenate([b1, b5, b3, bp], axis=-1)        # (B,7,7,32)

    # ---- head: GAP + dropout(eval=identity) + fc + sigmoid, fused ----
    Cf = feat.shape[-1]
    feat = jnp.transpose(feat, (0, 3, 1, 2)).reshape(B, Cf, H * W)
    Bp = _round_up(B, SUB)
    Cp = pp["fc_w"].shape[0]
    feat = jnp.pad(feat, ((0, Bp - B), (0, Cp - Cf), (0, 0)))
    logits = _head(feat, pp["fc_w"], pp["fc_b"], H * W)
    return logits[:B, :NUM_CONCEPTS]


if __name__ == "__main__":
    key = jax.random.PRNGKey(0)
    k_param, k_in = jax.random.split(key)
    params = init_params(k_param)
    pp = prepare_params(params)                      # weight-side prep, once
    x = jax.random.normal(k_in, (2, 3, 32, 32), jnp.float32)   # NCHW like PyTorch

    forward = jax.jit(functools.partial(inception_forward, pp))
    out = jax.block_until_ready(forward(x))

    assert out.shape == (2, NUM_CONCEPTS), out.shape
    assert bool(jnp.all(jnp.isfinite(out)))
    assert bool(jnp.all((out >= 0.0) & (out <= 1.0)))          # sigmoid range
    print("KERNEL_OK")
</pallas_src>

<mosaic_0001>
module attributes {stable_mosaic.version = 11 : i64} {
  func.func @_conv_mm_kernel(%arg0: i32, %arg1: memref<456x128xf32, #tpu.memory_space<vmem>>, %arg2: memref<128x128xf32, #tpu.memory_space<vmem>>, %arg3: memref<1x128xf32, #tpu.memory_space<vmem>>, %arg4: memref<1x128xf32, #tpu.memory_space<vmem>>, %arg5: memref<456x128xf32, #tpu.memory_space<vmem>>) attributes {dimension_semantics = [#tpu.dimension_semantics<arbitrary>], iteration_bounds = array<i64: 1>, scalar_prefetch = 0 : i64, scratch_operands = 0 : i64, tpu.core_type = #tpu.core_type<tc>, window_params = [{pipeline_mode = #tpu.pipeline_mode<synchronous>, transform_indices = @transform_0, window_bounds = array<i64: 456, 128>}, {pipeline_mode = #tpu.pipeline_mode<synchronous>, transform_indices = @transform_1, window_bounds = array<i64: 128, 128>}, {pipeline_mode = #tpu.pipeline_mode<synchronous>, transform_indices = @transform_2, window_bounds = array<i64: 1, 128>}, {pipeline_mode = #tpu.pipeline_mode<synchronous>, transform_indices = @transform_3, window_bounds = array<i64: 1, 128>}, {pipeline_mode = #tpu.pipeline_mode<synchronous>, transform_indices = @transform_4, window_bounds = array<i64: 456, 128>}]} {
    %c0 = arith.constant 0 : index
    %c0_0 = arith.constant 0 : index
    %0 = vector.load %arg1[%c0, %c0_0] : memref<456x128xf32, #tpu.memory_space<vmem>>, vector<456x128xf32>
    %c0_1 = arith.constant 0 : index
    %c0_2 = arith.constant 0 : index
    %1 = vector.load %arg2[%c0_1, %c0_2] : memref<128x128xf32, #tpu.memory_space<vmem>>, vector<128x128xf32>
    %cst = arith.constant dense<0.000000e+00> : vector<456x128xf32>
    %2 = tpu.matmul %0, %1, %cst {dimension_numbers = #tpu.dot_dimension_numbers<[1], [0], [0], [1], [0, 0, 1, 1], [], []>} : vector<456x128xf32>, vector<128x128xf32>, vector<456x128xf32> -> vector<456x128xf32>
    %c0_3 = arith.constant 0 : index
    %c0_4 = arith.constant 0 : index
    %3 = vector.load %arg3[%c0_3, %c0_4] : memref<1x128xf32, #tpu.memory_space<vmem>>, vector<1x128xf32>
    %4 = vector.broadcast %3 : vector<1x128xf32> to vector<456x128xf32>
    %5 = arith.addf %2, %4 : vector<456x128xf32>
    %c0_5 = arith.constant 0 : index
    %c0_6 = arith.constant 0 : index
    %6 = vector.load %arg4[%c0_5, %c0_6] : memref<1x128xf32, #tpu.memory_space<vmem>>, vector<1x128xf32>
    %7 = vector.broadcast %6 : vector<1x128xf32> to vector<456x128xf32>
    %8 = arith.mulf %5, %7 : vector<456x128xf32>
    %9 = arith.maximumf %5, %8 : vector<456x128xf32>
    %c0_7 = arith.constant 0 : index
    %c0_8 = arith.constant 0 : index
    %10 = vector.load %arg5[%c0_7, %c0_8] : memref<456x128xf32, #tpu.memory_space<vmem>>, vector<456x128xf32>
    tpu.vector_store %arg5[%c0_7, %c0_8], %9 {strides = array<i32>} : memref<456x128xf32, #tpu.memory_space<vmem>>, vector<456x128xf32>,
    return
  }
  func.func @transform_0(%arg0: i32) -> (i32, i32) {
    %c0_i32 = arith.constant 0 : i32
    %c0_i32_0 = arith.constant 0 : i32
    %c0_i32_1 = arith.constant 0 : i32
    return %c0_i32, %c0_i32_0 : i32, i32
  }
  func.func @transform_1(%arg0: i32) -> (i32, i32) {
    %c0_i32 = arith.constant 0 : i32
    %c0_i32_0 = arith.constant 0 : i32
    %c0_i32_1 = arith.constant 0 : i32
    return %c0_i32, %c0_i32_0 : i32, i32
  }
  func.func @transform_2(%arg0: i32) -> (i32, i32) {
    %c0_i32 = arith.constant 0 : i32
    %c0_i32_0 = arith.constant 0 : i32
    %c0_i32_1 = arith.constant 0 : i32
    return %c0_i32, %c0_i32_0 : i32, i32
  }
  func.func @transform_3(%arg0: i32) -> (i32, i32) {
    %c0_i32 = arith.constant 0 : i32
    %c0_i32_0 = arith.constant 0 : i32
    %c0_i32_1 = arith.constant 0 : i32
    return %c0_i32, %c0_i32_0 : i32, i32
  }
  func.func @transform_4(%arg0: i32) -> (i32, i32) {
    %c0_i32 = arith.constant 0 : i32
    %c0_i32_0 = arith.constant 0 : i32
    %c0_i32_1 = arith.constant 0 : i32
    return %c0_i32, %c0_i32_0 : i32, i32
  }
}

module attributes {stable_mosaic.version = 11 : i64} {
  func.func @_conv_mm_kernel(%arg0: i32, %arg1: memref<104x128xf32, #tpu.memory_space<vmem>>, %arg2: memref<128x128xf32, #tpu.memory_space<vmem>>, %arg3: memref<1x128xf32, #tpu.memory_space<vmem>>, %arg4: memref<1x128xf32, #tpu.memory_space<vmem>>, %arg5: memref<104x128xf32, #tpu.memory_space<vmem>>) attributes {dimension_semantics = [#tpu.dimension_semantics<arbitrary>], iteration_bounds = array<i64: 1>, scalar_prefetch = 0 : i64, scratch_operands = 0 : i64, tpu.core_type = #tpu.core_type<tc>, window_params = [{pipeline_mode = #tpu.pipeline_mode<synchronous>, transform_indices = @transform_0, window_bounds = array<i64: 104, 128>}, {pipeline_mode = #tpu.pipeline_mode<synchronous>, transform_indices = @transform_1, window_bounds = array<i64: 128, 128>}, {pipeline_mode = #tpu.pipeline_mode<synchronous>, transform_indices = @transform_2, window_bounds = array<i64: 1, 128>}, {pipeline_mode = #tpu.pipeline_mode<synchronous>, transform_indices = @transform_3, window_bounds = array<i64: 1, 128>}, {pipeline_mode = #tpu.pipeline_mode<synchronous>, transform_indices = @transform_4, window_bounds = array<i64: 104, 128>}]} {
    %c0 = arith.constant 0 : index
    %c0_0 = arith.constant 0 : index
    %0 = vector.load %arg1[%c0, %c0_0] : memref<104x128xf32, #tpu.memory_space<vmem>>, vector<104x128xf32>
    %c0_1 = arith.constant 0 : index
    %c0_2 = arith.constant 0 : index
    %1 = vector.load %arg2[%c0_1, %c0_2] : memref<128x128xf32, #tpu.memory_space<vmem>>, vector<128x128xf32>
    %cst = arith.constant dense<0.000000e+00> : vector<104x128xf32>
    %2 = tpu.matmul %0, %1, %cst {dimension_numbers = #tpu.dot_dimension_numbers<[1], [0], [0], [1], [0, 0, 1, 1], [], []>} : vector<104x128xf32>, vector<128x128xf32>, vector<104x128xf32> -> vector<104x128xf32>
    %c0_3 = arith.constant 0 : index
    %c0_4 = arith.constant 0 : index
    %3 = vector.load %arg3[%c0_3, %c0_4] : memref<1x128xf32, #tpu.memory_space<vmem>>, vector<1x128xf32>
    %4 = vector.broadcast %3 : vector<1x128xf32> to vector<104x128xf32>
    %5 = arith.addf %2, %4 : vector<104x128xf32>
    %c0_5 = arith.constant 0 : index
    %c0_6 = arith.constant 0 : index
    %6 = vector.load %arg4[%c0_5, %c0_6] : memref<1x128xf32, #tpu.memory_space<vmem>>, vector<1x128xf32>
    %7 = vector.broadcast %6 : vector<1x128xf32> to vector<104x128xf32>
    %8 = arith.mulf %5, %7 : vector<104x128xf32>
    %9 = arith.maximumf %5, %8 : vector<104x128xf32>
    %c0_7 = arith.constant 0 : index
    %c0_8 = arith.constant 0 : index
    %10 = vector.load %arg5[%c0_7, %c0_8] : memref<104x128xf32, #tpu.memory_space<vmem>>, vector<104x128xf32>
    tpu.vector_store %arg5[%c0_7, %c0_8], %9 {strides = array<i32>} : memref<104x128xf32, #tpu.memory_space<vmem>>, vector<104x128xf32>,
    return
  }
  func.func @transform_0(%arg0: i32) -> (i32, i32) {
    %c0_i32 = arith.constant 0 : i32
    %c0_i32_0 = arith.constant 0 : i32
    %c0_i32_1 = arith.constant 0 : i32
    return %c0_i32, %c0_i32_0 : i32, i32
  }
  func.func @transform_1(%arg0: i32) -> (i32, i32) {
    %c0_i32 = arith.constant 0 : i32
    %c0_i32_0 = arith.constant 0 : i32
    %c0_i32_1 = arith.constant 0 : i32
    return %c0_i32, %c0_i32_0 : i32, i32
  }
  func.func @transform_2(%arg0: i32) -> (i32, i32) {
    %c0_i32 = arith.constant 0 : i32
    %c0_i32_0 = arith.constant 0 : i32
    %c0_i32_1 = arith.constant 0 : i32
    return %c0_i32, %c0_i32_0 : i32, i32
  }
  func.func @transform_3(%arg0: i32) -> (i32, i32) {
    %c0_i32 = arith.constant 0 : i32
    %c0_i32_0 = arith.constant 0 : i32
    %c0_i32_1 = arith.constant 0 : i32
    return %c0_i32, %c0_i32_0 : i32, i32
  }
  func.func @transform_4(%arg0: i32) -> (i32, i32) {
    %c0_i32 = arith.constant 0 : i32
    %c0_i32_0 = arith.constant 0 : i32
    %c0_i32_1 = arith.constant 0 : i32
    return %c0_i32, %c0_i32_0 : i32, i32
  }
}

module attributes {stable_mosaic.version = 11 : i64} {
  func.func @_conv_mm_kernel(%arg0: i32, %arg1: memref<104x256xf32, #tpu.memory_space<vmem>>, %arg2: memref<256x128xf32, #tpu.memory_space<vmem>>, %arg3: memref<1x128xf32, #tpu.memory_space<vmem>>, %arg4: memref<1x128xf32, #tpu.memory_space<vmem>>, %arg5: memref<104x128xf32, #tpu.memory_space<vmem>>) attributes {dimension_semantics = [#tpu.dimension_semantics<arbitrary>], iteration_bounds = array<i64: 1>, scalar_prefetch = 0 : i64, scratch_operands = 0 : i64, tpu.core_type = #tpu.core_type<tc>, window_params = [{pipeline_mode = #tpu.pipeline_mode<synchronous>, transform_indices = @transform_0, window_bounds = array<i64: 104, 256>}, {pipeline_mode = #tpu.pipeline_mode<synchronous>, transform_indices = @transform_1, window_bounds = array<i64: 256, 128>}, {pipeline_mode = #tpu.pipeline_mode<synchronous>, transform_indices = @transform_2, window_bounds = array<i64: 1, 128>}, {pipeline_mode = #tpu.pipeline_mode<synchronous>, transform_indices = @transform_3, window_bounds = array<i64: 1, 128>}, {pipeline_mode = #tpu.pipeline_mode<synchronous>, transform_indices = @transform_4, window_bounds = array<i64: 104, 128>}]} {
    %c0 = arith.constant 0 : index
    %c0_0 = arith.constant 0 : index
    %0 = vector.load %arg1[%c0, %c0_0] : memref<104x256xf32, #tpu.memory_space<vmem>>, vector<104x256xf32>
    %c0_1 = arith.constant 0 : index
    %c0_2 = arith.constant 0 : index
    %1 = vector.load %arg2[%c0_1, %c0_2] : memref<256x128xf32, #tpu.memory_space<vmem>>, vector<256x128xf32>
    %cst = arith.constant dense<0.000000e+00> : vector<104x128xf32>
    %2 = tpu.matmul %0, %1, %cst {dimension_numbers = #tpu.dot_dimension_numbers<[1], [0], [0], [1], [0, 0, 1, 1], [], []>} : vector<104x256xf32>, vector<256x128xf32>, vector<104x128xf32> -> vector<104x128xf32>
    %c0_3 = arith.constant 0 : index
    %c0_4 = arith.constant 0 : index
    %3 = vector.load %arg3[%c0_3, %c0_4] : memref<1x128xf32, #tpu.memory_space<vmem>>, vector<1x128xf32>
    %4 = vector.broadcast %3 : vector<1x128xf32> to vector<104x128xf32>
    %5 = arith.addf %2, %4 : vector<104x128xf32>
    %c0_5 = arith.constant 0 : index
    %c0_6 = arith.constant 0 : index
    %6 = vector.load %arg4[%c0_5, %c0_6] : memref<1x128xf32, #tpu.memory_space<vmem>>, vector<1x128xf32>
    %7 = vector.broadcast %6 : vector<1x128xf32> to vector<104x128xf32>
    %8 = arith.mulf %5, %7 : vector<104x128xf32>
    %9 = arith.maximumf %5, %8 : vector<104x128xf32>
    %c0_7 = arith.constant 0 : index
    %c0_8 = arith.constant 0 : index
    %10 = vector.load %arg5[%c0_7, %c0_8] : memref<104x128xf32, #tpu.memory_space<vmem>>, vector<104x128xf32>
    tpu.vector_store %arg5[%c0_7, %c0_8], %9 {strides = array<i32>} : memref<104x128xf32, #tpu.memory_space<vmem>>, vector<104x128xf32>,
    return
  }
  func.func @transform_0(%arg0: i32) -> (i32, i32) {
    %c0_i32 = arith.constant 0 : i32
    %c0_i32_0 = arith.constant 0 : i32
    %c0_i32_1 = arith.constant 0 : i32
    return %c0_i32, %c0_i32_0 : i32, i32
  }
  func.func @transform_1(%arg0: i32) -> (i32, i32) {
    %c0_i32 = arith.constant 0 : i32
    %c0_i32_0 = arith.constant 0 : i32
    %c0_i32_1 = arith.constant 0 : i32
    return %c0_i32, %c0_i32_0 : i32, i32
  }
  func.func @transform_2(%arg0: i32) -> (i32, i32) {
    %c0_i32 = arith.constant 0 : i32
    %c0_i32_0 = arith.constant 0 : i32
    %c0_i32_1 = arith.constant 0 : i32
    return %c0_i32, %c0_i32_0 : i32, i32
  }
  func.func @transform_3(%arg0: i32) -> (i32, i32) {
    %c0_i32 = arith.constant 0 : i32
    %c0_i32_0 = arith.constant 0 : i32
    %c0_i32_1 = arith.constant 0 : i32
    return %c0_i32, %c0_i32_0 : i32, i32
  }
  func.func @transform_4(%arg0: i32) -> (i32, i32) {
    %c0_i32 = arith.constant 0 : i32
    %c0_i32_0 = arith.constant 0 : i32
    %c0_i32_1 = arith.constant 0 : i32
    return %c0_i32, %c0_i32_0 : i32, i32
  }
}

module attributes {stable_mosaic.version = 11 : i64} {
  func.func @_head_kernel(%arg0: i32, %arg1: memref<8x128x49xf32, #tpu.memory_space<vmem>>, %arg2: memref<128x384xf32, #tpu.memory_space<vmem>>, %arg3: memref<1x384xf32, #tpu.memory_space<vmem>>, %arg4: memref<8x384xf32, #tpu.memory_space<vmem>>) attributes {dimension_semantics = [#tpu.dimension_semantics<arbitrary>], iteration_bounds = array<i64: 1>, scalar_prefetch = 0 : i64, scratch_operands = 0 : i64, tpu.core_type = #tpu.core_type<tc>, window_params = [{pipeline_mode = #tpu.pipeline_mode<synchronous>, transform_indices = @transform_0, window_bounds = array<i64: 8, 128, 49>}, {pipeline_mode = #tpu.pipeline_mode<synchronous>, transform_indices = @transform_1, window_bounds = array<i64: 128, 384>}, {pipeline_mode = #tpu.pipeline_mode<synchronous>, transform_indices = @transform_2, window_bounds = array<i64: 1, 384>}, {pipeline_mode = #tpu.pipeline_mode<synchronous>, transform_indices = @transform_3, window_bounds = array<i64: 8, 384>}]} {
    %c0 = arith.constant 0 : index
    %c0_0 = arith.constant 0 : index
    %c0_1 = arith.constant 0 : index
    %0 = vector.load %arg1[%c0, %c0_0, %c0_1] : memref<8x128x49xf32, #tpu.memory_space<vmem>>, vector<8x128x49xf32>
    %cst = arith.constant dense<0.000000e+00> : vector<8x128xf32>
    %1 = vector.multi_reduction <add>, %0, %cst [2] : vector<8x128x49xf32> to vector<8x128xf32>
    %cst_2 = arith.constant 0.0204081628 : f32
    %2 = vector.broadcast %cst_2 : f32 to vector<8x128xf32>
    %3 = arith.mulf %1, %2 : vector<8x128xf32>
    %c0_3 = arith.constant 0 : index
    %c0_4 = arith.constant 0 : index
    %4 = vector.load %arg2[%c0_3, %c0_4] : memref<128x384xf32, #tpu.memory_space<vmem>>, vector<128x384xf32>
    %cst_5 = arith.constant dense<0.000000e+00> : vector<8x384xf32>
    %5 = tpu.matmul %3, %4, %cst_5 {dimension_numbers = #tpu.dot_dimension_numbers<[1], [0], [0], [1], [0, 0, 1, 1], [], []>} : vector<8x128xf32>, vector<128x384xf32>, vector<8x384xf32> -> vector<8x384xf32>
    %c0_6 = arith.constant 0 : index
    %c0_7 = arith.constant 0 : index
    %6 = vector.load %arg3[%c0_6, %c0_7] : memref<1x384xf32, #tpu.memory_space<vmem>>, vector<1x384xf32>
    %7 = vector.broadcast %6 : vector<1x384xf32> to vector<8x384xf32>
    %8 = arith.addf %5, %7 : vector<8x384xf32>
    %9 = arith.negf %8 : vector<8x384xf32>
    %10 = math.exp %9 : vector<8x384xf32>
    %cst_8 = arith.constant 1.000000e+00 : f32
    %11 = vector.broadcast %cst_8 : f32 to vector<8x384xf32>
    %12 = arith.addf %11, %10 : vector<8x384xf32>
    %13 = arith.divf %11, %12 : vector<8x384xf32>
    %c0_9 = arith.constant 0 : index
    %c0_10 = arith.constant 0 : index
    %14 = vector.load %arg4[%c0_9, %c0_10] : memref<8x384xf32, #tpu.memory_space<vmem>>, vector<8x384xf32>
    tpu.vector_store %arg4[%c0_9, %c0_10], %13 {strides = array<i32>} : memref<8x384xf32, #tpu.memory_space<vmem>>, vector<8x384xf32>,
    return
  }
  func.func @transform_0(%arg0: i32) -> (i32, i32, i32) {
    %c0_i32 = arith.constant 0 : i32
    %c0_i32_0 = arith.constant 0 : i32
    %c0_i32_1 = arith.constant 0 : i32
    %c0_i32_2 = arith.constant 0 : i32
    return %c0_i32, %c0_i32_0, %c0_i32_1 : i32, i32, i32
  }
  func.func @transform_1(%arg0: i32) -> (i32, i32) {
    %c0_i32 = arith.constant 0 : i32
    %c0_i32_0 = arith.constant 0 : i32
    %c0_i32_1 = arith.constant 0 : i32
    return %c0_i32, %c0_i32_0 : i32, i32
  }
  func.func @transform_2(%arg0: i32) -> (i32, i32) {
    %c0_i32 = arith.constant 0 : i32
    %c0_i32_0 = arith.constant 0 : i32
    %c0_i32_1 = arith.constant 0 : i32
    return %c0_i32, %c0_i32_0 : i32, i32
  }
  func.func @transform_3(%arg0: i32) -> (i32, i32) {
    %c0_i32 = arith.constant 0 : i32
    %c0_i32_0 = arith.constant 0 : i32
    %c0_i32_1 = arith.constant 0 : i32
    return %c0_i32, %c0_i32_0 : i32, i32
  }
}

</mosaic_0001>

<bundles_post_ra>
// kernel: inception_forward.7
= control target key start
LH: loop header
LB: loop body
LE: loop exit
PB: predicated region body
PF: predicated region fallthrough
CT: control target
= control target key end

     0   :  { %v950_v0 = vmov 0.0|0.0   ;;  %vm951_vm0 = vmmov 0   ;;  %v952_v6 = vmov 0.0   ;;  %s1606_s1 = inlined_call_operand.vmem [shape: f32[128,128], index: 1, kind: input, shape index: {}]   ;;  %s1607_s0 = inlined_call_operand.vmem [shape: f32[456,128], index: 0, kind: input, shape index: {}]   ;;  %s1608_s2 = inlined_call_operand.vmem [shape: f32[1,128], index: 2, kind: input, shape index: {}]   ;;  %s1609_s3 = inlined_call_operand.vmem [shape: f32[1,128], index: 3, kind: input, shape index: {}]   ;;  %s1610_s4 = inlined_call_operand.vmem [shape: f32[456,128], index: 4, kind: output, shape index: {}]  }
   0x1   :  { %907 = vmatprep.subr.bf16.mxu0 %v950_v0  ;;  %v74_v1 = vld [vmem:[%s1606_s1] sm:$0xff]  ;;  %v75_v2 = vld [vmem:[%s1606_s1 + $0x8] sm:$0xff]  ;;  %931 = vmatprep.subr.bf16.mxu1 %v950_v0  ;;  %v76_v3 = vld [vmem:[%s1606_s1 + $0x10] sm:$0xff] }
   0x2   :  { %v908_v4 = vpack.c.bf16 %v75_v2, %v74_v1  ;;  %v77_v5 = vld [vmem:[%s1606_s1 + $0x18] sm:$0xff]  ;;  %736 = vmatprep.mubr.msk.f32.mxu0 %vm951_vm0, %v952_v6  ;;  %823 = vmatprep.mubr.msk.f32.mxu1 %vm951_vm0, %v952_v6  ;;  %v78_v8 = vld [vmem:[%s1606_s1 + $0x20] sm:$0xff]  ;;  %v79_v9 = vld [vmem:[%s1606_s1 + $0x28] sm:$0xff] }
   0x3   :  { %v911_v7 = vpack.c.bf16 %v77_v5, %v76_v3  ;;  %v914_v10 = vpack.c.bf16 %v79_v9, %v78_v8  ;;  %v80_v11 = vld [vmem:[%s1606_s1 + $0x30] sm:$0xff]  ;;  %v81_v12 = vld [vmem:[%s1606_s1 + $0x38] sm:$0xff]  ;;  %v82_v14 = vld [vmem:[%s1606_s1 + $0x40] sm:$0xff] }
   0x4   :  { %909 = vmatpush3.bf16.msra.mxu0 %v908_v4  ;;  %939 = vmatpush3.bf16.msra.mxu1 %v908_v4  ;;  %v917_v13 = vpack.c.bf16 %v81_v12, %v80_v11  ;;  %v83_v15 = vld [vmem:[%s1606_s1 + $0x48] sm:$0xff]  ;;  %v84_v17 = vld [vmem:[%s1606_s1 + $0x50] sm:$0xff]  ;;  %v85_v18 = vld [vmem:[%s1606_s1 + $0x58] sm:$0xff] }
   0x5   :  { %910 = vmatprep.subr.bf16.mxu0 %v950_v0  ;;  %932 = vmatprep.subr.bf16.mxu1 %v950_v0  ;;  %v920_v16 = vpack.c.bf16 %v83_v15, %v82_v14  ;;  %v923_v19 = vpack.c.bf16 %v85_v18, %v84_v17  ;;  %v86_v20 = vld [vmem:[%s1606_s1 + $0x60] sm:$0xff]  ;;  %v87_v21 = vld [vmem:[%s1606_s1 + $0x68] sm:$0xff]  ;;  %v88_v23 = vld [vmem:[%s1606_s1 + $0x70] sm:$0xff] }
   0x6   :  { %v926_v22 = vpack.c.bf16 %v87_v21, %v86_v20  ;;  %v89_v24 = vld [vmem:[%s1606_s1 + $0x78] sm:$0xff]  ;;  %v17_v26 = vld [vmem:[%s1607_s0] sm:$0xff]  ;;  %v46_v27 = vld [vmem:[%s1607_s0 + $0xe8] sm:$0xff] }
   0x7   :  { %v929_v25 = vpack.c.bf16 %v89_v24, %v88_v23  ;;  %v18_v28 = vld [vmem:[%s1607_s0 + $0x8] sm:$0xff]  ;;  %v47_v29 = vld [vmem:[%s1607_s0 + $0xf0] sm:$0xff]  ;;  %v48_v31 = vld [vmem:[%s1607_s0 + $0xf8] sm:$0xff] }
   0x8   :  { %912 = vmatpush3.bf16.msra.mxu0 %v911_v7  ;;  %940 = vmatpush3.bf16.msra.mxu1 %v911_v7  ;;  %v19_v30 = vld [vmem:[%s1607_s0 + $0x10] sm:$0xff]  ;;  %v20_v32 = vld [vmem:[%s1607_s0 + $0x18] sm:$0xff]  ;;  %v49_v33 = vld [vmem:[%s1607_s0 + $0x100] sm:$0xff] }
   0x9   :  { %913 = vmatprep.subr.bf16.mxu0 %v950_v0  ;;  %933 = vmatprep.subr.bf16.mxu1 %v950_v0  ;;  %v21_v34 = vld [vmem:[%s1607_s0 + $0x20] sm:$0xff]  ;;  %v50_v35 = vld [vmem:[%s1607_s0 + $0x108] sm:$0xff]  ;;  %v51_v37 = vld [vmem:[%s1607_s0 + $0x110] sm:$0xff] }
   0xa   :  { %v22_v36 = vld [vmem:[%s1607_s0 + $0x28] sm:$0xff]  ;;  %v23_v38 = vld [vmem:[%s1607_s0 + $0x30] sm:$0xff]  ;;  %v52_v39 = vld [vmem:[%s1607_s0 + $0x118] sm:$0xff] }
   0xb   :  { %v24_v40 = vld [vmem:[%s1607_s0 + $0x38] sm:$0xff]  ;;  %v53_v41 = vld [vmem:[%s1607_s0 + $0x120] sm:$0xff]  ;;  %v54_v43 = vld [vmem:[%s1607_s0 + $0x128] sm:$0xff] }
   0xc   :  { %915 = vmatpush3.bf16.msra.mxu0 %v914_v10  ;;  %941 = vmatpush3.bf16.msra.mxu1 %v914_v10  ;;  %v25_v42 = vld [vmem:[%s1607_s0 + $0x40] sm:$0xff]  ;;  %v26_v44 = vld [vmem:[%s1607_s0 + $0x48] sm:$0xff]  ;;  %v55_v45 = vld [vmem:[%s1607_s0 + $0x130] sm:$0xff] }
   0xd   :  { %916 = vmatprep.subr.bf16.mxu0 %v950_v0  ;;  %934 = vmatprep.subr.bf16.mxu1 %v950_v0  ;;  %v27_v46 = vld [vmem:[%s1607_s0 + $0x50] sm:$0xff]  ;;  %v56_v47 = vld [vmem:[%s1607_s0 + $0x138] sm:$0xff]  ;;  %v57_v49 = vld [vmem:[%s1607_s0 + $0x140] sm:$0xff] }
   0xe   :  { %v28_v48 = vld [vmem:[%s1607_s0 + $0x58] sm:$0xff]  ;;  %v29_v50 = vld [vmem:[%s1607_s0 + $0x60] sm:$0xff]  ;;  %v58_v51 = vld [vmem:[%s1607_s0 + $0x148] sm:$0xff] }
   0xf   :  { %v30_v52 = vld [vmem:[%s1607_s0 + $0x68] sm:$0xff]  ;;  %v59_v53 = vld [vmem:[%s1607_s0 + $0x150] sm:$0xff]  ;;  %v60_v55 = vld [vmem:[%s1607_s0 + $0x158] sm:$0xff] }
  0x10   :  { %918 = vmatpush3.bf16.msra.mxu0 %v917_v13  ;;  %942 = vmatpush3.bf16.msra.mxu1 %v917_v13  ;;  %v31_v54 = vld [vmem:[%s1607_s0 + $0x70] sm:$0xff]  ;;  %v32_v56 = vld [vmem:[%s1607_s0 + $0x78] sm:$0xff]  ;;  %v61_v57 = vld [vmem:[%s1607_s0 + $0x160] sm:$0xff] }
  0x11   :  { %919 = vmatprep.subr.bf16.mxu0 %v950_v0  ;;  %935 = vmatprep.subr.bf16.mxu1 %v950_v0  ;;  %v33_v58 = vld [vmem:[%s1607_s0 + $0x80] sm:$0xff]  ;;  %v62_v59 = vld [vmem:[%s1607_s0 + $0x168] sm:$0xff]  ;;  %v63_v61 = vld [vmem:[%s1607_s0 + $0x170] sm:$0xff] }
  0x12   :  { %v34_v60 = vld [vmem:[%s1607_s0 + $0x88] sm:$0xff]  ;;  %v35_v62 = vld [vmem:[%s1607_s0 + $0x90] sm:$0xff]  ;;  %v64_v63 = vld [vmem:[%s1607_s0 + $0x178] sm:$0xff] }
  0x13   :  { %v65_v1 = vld [vmem:[%s1607_s0 + $0x180] sm:$0xff]  ;;  %v66_v3 = vld [vmem:[%s1607_s0 + $0x188] sm:$0xff]  ;;  %v67_v5 = vld [vmem:[%s1607_s0 + $0x190] sm:$0xff] }
  0x14   :  { %921 = vmatpush3.bf16.msra.mxu0 %v920_v16  ;;  %943 = vmatpush3.bf16.msra.mxu1 %v920_v16  ;;  %v37_v2 = vld [vmem:[%s1607_s0 + $0xa0] sm:$0xff]  ;;  %v38_v4 = vld [vmem:[%s1607_s0 + $0xa8] sm:$0xff]  ;;  %v39_v7 = vld [vmem:[%s1607_s0 + $0xb0] sm:$0xff] }
  0x15   :  { %922 = vmatprep.subr.bf16.mxu0 %v950_v0  ;;  %936 = vmatprep.subr.bf16.mxu1 %v950_v0  ;;  %v68_v8 = vld [vmem:[%s1607_s0 + $0x198] sm:$0xff]  ;;  %v69_v10 = vld [vmem:[%s1607_s0 + $0x1a0] sm:$0xff]  ;;  %v70_v12 = vld [vmem:[%s1607_s0 + $0x1a8] sm:$0xff] }
  0x16   :  { %v40_v9 = vld [vmem:[%s1607_s0 + $0xb8] sm:$0xff]  ;;  %v41_v11 = vld [vmem:[%s1607_s0 + $0xc0] sm:$0xff]  ;;  %v42_v13 = vld [vmem:[%s1607_s0 + $0xc8] sm:$0xff] }
  0x17   :  { %v71_v14 = vld [vmem:[%s1607_s0 + $0x1b0] sm:$0xff]  ;;  %v72_v16 = vld [vmem:[%s1607_s0 + $0x1b8] sm:$0xff]  ;;  %v73_v18 = vld [vmem:[%s1607_s0 + $0x1c0] sm:$0xff] }
  0x18   :  { %924 = vmatpush3.bf16.msra.mxu0 %v923_v19  ;;  %944 = vmatpush3.bf16.msra.mxu1 %v923_v19  ;;  %v43_v15 = vld [vmem:[%s1607_s0 + $0xd0] sm:$0xff]  ;;  %v44_v17 = vld [vmem:[%s1607_s0 + $0xd8] sm:$0xff]  ;;  %v45_v19 = vld [vmem:[%s1607_s0 + $0xe0] sm:$0xff] }
  0x19   :  { %925 = vmatprep.subr.bf16.mxu0 %v950_v0  ;;  %937 = vmatprep.subr.bf16.mxu1 %v950_v0  ;;  %v1314_v20 = vld [vmem:[%s1608_s2] ss:$0 sm:$0xff] }
  0x1c   :  { %927 = vmatpush3.bf16.msra.mxu0 %v926_v22  ;;  %945 = vmatpush3.bf16.msra.mxu1 %v926_v22  ;;  %v1319_v22 = vld [vmem:[%s1609_s3] ss:$0 sm:$0xff] }
  0x1d   :  { %928 = vmatprep.subr.bf16.mxu0 %v950_v0  ;;  %938 = vmatprep.subr.bf16.mxu1 %v950_v0  ;;  %v36_v0 = vld [vmem:[%s1607_s0 + $0x98] sm:$0xff] }
  0x20   :  { %930 = vmatpush3.bf16.msra.mxu0 %v929_v25  ;;  %946 = vmatpush3.bf16.msra.mxu1 %v929_v25 }
  0x23   :  { %737 = vmatmul.mubr.f32.vlgmr.msra.gmra.mrb[0].mxu0 %v17_v26  ;;  %824 = vmatmul.mubr.f32.vlgmr.msra.gmra.mrb[0].mxu1 %v46_v27 }
  0x24   :  { %739 = vmatprep.mubr.msk.f32.mxu0 %vm951_vm0, %v952_v6  ;;  %826 = vmatprep.mubr.msk.f32.mxu1 %vm951_vm0, %v952_v6 }
  0x27   :  { %740 = vmatmul.mubr.f32.gmra.mrb[2].mxu0 %v18_v28  ;;  %827 = vmatmul.mubr.f32.gmra.mrb[2].mxu1 %v47_v29 }
  0x28   :  { %742 = vmatprep.mubr.msk.f32.mxu0 %vm951_vm0, %v952_v6  ;;  %829 = vmatprep.mubr.msk.f32.mxu1 %vm951_vm0, %v952_v6 }
  0x2b   :  { %743 = vmatmul.mubr.f32.gmra.mrb[4].mxu0 %v19_v30  ;;  %830 = vmatmul.mubr.f32.gmra.mrb[4].mxu1 %v48_v31 }
  0x2c   :  { %745 = vmatprep.mubr.msk.f32.mxu0 %vm951_vm0, %v952_v6  ;;  %832 = vmatprep.mubr.msk.f32.mxu1 %vm951_vm0, %v952_v6 }
  0x2f   :  { %746 = vmatmul.mubr.f32.gmra.mrb[6].mxu0 %v20_v32  ;;  %833 = vmatmul.mubr.f32.gmra.mrb[6].mxu1 %v49_v33 }
  0x30   :  { %748 = vmatprep.mubr.msk.f32.mxu0 %vm951_vm0, %v952_v6  ;;  %835 = vmatprep.mubr.msk.f32.mxu1 %vm951_vm0, %v952_v6 }
  0x33   :  { %749 = vmatmul.mubr.f32.gmra.mrb[8].mxu0 %v21_v34  ;;  %836 = vmatmul.mubr.f32.gmra.mrb[8].mxu1 %v50_v35 }
  0x34   :  { %751 = vmatprep.mubr.msk.f32.mxu0 %vm951_vm0, %v952_v6  ;;  %838 = vmatprep.mubr.msk.f32.mxu1 %vm951_vm0, %v952_v6 }
  0x37   :  { %752 = vmatmul.mubr.f32.gmra.mrb[10].mxu0 %v22_v36  ;;  %839 = vmatmul.mubr.f32.gmra.mrb[10].mxu1 %v51_v37 }
  0x38   :  { %754 = vmatprep.mubr.msk.f32.mxu0 %vm951_vm0, %v952_v6  ;;  %841 = vmatprep.mubr.msk.f32.mxu1 %vm951_vm0, %v952_v6 }
  0x3b   :  { %755 = vmatmul.mubr.f32.gmra.mrb[12].mxu0 %v23_v38  ;;  %842 = vmatmul.mubr.f32.gmra.mrb[12].mxu1 %v52_v39 }
  0x3c   :  { %757 = vmatprep.mubr.msk.f32.mxu0 %vm951_vm0, %v952_v6  ;;  %844 = vmatprep.mubr.msk.f32.mxu1 %vm951_vm0, %v952_v6 }
  0x3f   :  { %758 = vmatmul.mubr.f32.gmra.mrb[14].mxu0 %v24_v40  ;;  %845 = vmatmul.mubr.f32.gmra.mrb[14].mxu1 %v53_v41 }
  0x40   :  { %760 = vmatprep.mubr.msk.f32.mxu0 %vm951_vm0, %v952_v6  ;;  %847 = vmatprep.mubr.msk.f32.mxu1 %vm951_vm0, %v952_v6 }
  0x43   :  { %761 = vmatmul.mubr.f32.gmra.mrb[16].mxu0 %v25_v42  ;;  %848 = vmatmul.mubr.f32.gmra.mrb[16].mxu1 %v54_v43 }
  0x44   :  { %763 = vmatprep.mubr.msk.f32.mxu0 %vm951_vm0, %v952_v6  ;;  %850 = vmatprep.mubr.msk.f32.mxu1 %vm951_vm0, %v952_v6 }
  0x47   :  { %764 = vmatmul.mubr.f32.gmra.mrb[18].mxu0 %v26_v44  ;;  %851 = vmatmul.mubr.f32.gmra.mrb[18].mxu1 %v55_v45 }
  0x48   :  { %766 = vmatprep.mubr.msk.f32.mxu0 %vm951_vm0, %v952_v6  ;;  %853 = vmatprep.mubr.msk.f32.mxu1 %vm951_vm0, %v952_v6 }
  0x4b   :  { %767 = vmatmul.mubr.f32.gmra.mrb[20].mxu0 %v27_v46  ;;  %854 = vmatmul.mubr.f32.gmra.mrb[20].mxu1 %v56_v47 }
  0x4c   :  { %769 = vmatprep.mubr.msk.f32.mxu0 %vm951_vm0, %v952_v6  ;;  %856 = vmatprep.mubr.msk.f32.mxu1 %vm951_vm0, %v952_v6 }
  0x4f   :  { %770 = vmatmul.mubr.f32.gmra.mrb[22].mxu0 %v28_v48  ;;  %857 = vmatmul.mubr.f32.gmra.mrb[22].mxu1 %v57_v49 }
  0x50   :  { %772 = vmatprep.mubr.msk.f32.mxu0 %vm951_vm0, %v952_v6  ;;  %859 = vmatprep.mubr.msk.f32.mxu1 %vm951_vm0, %v952_v6 }
  0x53   :  { %773 = vmatmul.mubr.f32.gmra.mrb[24].mxu0 %v29_v50  ;;  %860 = vmatmul.mubr.f32.gmra.mrb[24].mxu1 %v58_v51 }
  0x54   :  { %775 = vmatprep.mubr.msk.f32.mxu0 %vm951_vm0, %v952_v6  ;;  %862 = vmatprep.mubr.msk.f32.mxu1 %vm951_vm0, %v952_v6 }
  0x57   :  { %776 = vmatmul.mubr.f32.gmra.mrb[26].mxu0 %v30_v52  ;;  %863 = vmatmul.mubr.f32.gmra.mrb[26].mxu1 %v59_v53 }
  0x58   :  { %778 = vmatprep.mubr.msk.f32.mxu0 %vm951_vm0, %v952_v6  ;;  %865 = vmatprep.mubr.msk.f32.mxu1 %vm951_vm0, %v952_v6 }
  0x5b   :  { %779 = vmatmul.mubr.f32.gmra.mrb[28].mxu0 %v31_v54  ;;  %866 = vmatmul.mubr.f32.gmra.mrb[28].mxu1 %v60_v55 }
  0x5c   :  { %781 = vmatprep.mubr.msk.f32.mxu0 %vm951_vm0, %v952_v6  ;;  %868 = vmatprep.mubr.msk.f32.mxu1 %vm951_vm0, %v952_v6 }
  0x5f   :  { %782 = vmatmul.mubr.f32.gmra.mrb[30].mxu0 %v32_v56  ;;  %869 = vmatmul.mubr.f32.gmra.mrb[30].mxu1 %v61_v57 }
  0x60   :  { %784 = vmatprep.mubr.msk.f32.mxu0 %vm951_vm0, %v952_v6  ;;  %871 = vmatprep.mubr.msk.f32.mxu1 %vm951_vm0, %v952_v6 }
  0x63   :  { %785 = vmatmul.mubr.f32.gmra.mrb[32].mxu0 %v33_v58  ;;  %872 = vmatmul.mubr.f32.gmra.mrb[32].mxu1 %v62_v59 }
  0x64   :  { %787 = vmatprep.mubr.msk.f32.mxu0 %vm951_vm0, %v952_v6  ;;  %874 = vmatprep.mubr.msk.f32.mxu1 %vm951_vm0, %v952_v6 }
  0x67   :  { %788 = vmatmul.mubr.f32.gmra.mrb[34].mxu0 %v34_v60  ;;  %875 = vmatmul.mubr.f32.gmra.mrb[34].mxu1 %v63_v61 }
  0x68   :  { %790 = vmatprep.mubr.msk.f32.mxu0 %vm951_vm0, %v952_v6  ;;  %877 = vmatprep.mubr.msk.f32.mxu1 %vm951_vm0, %v952_v6 }
  0x6b   :  { %791 = vmatmul.mubr.f32.gmra.mrb[36].mxu0 %v35_v62  ;;  %878 = vmatmul.mubr.f32.gmra.mrb[36].mxu1 %v64_v63 }
  0x6c   :  { %793 = vmatprep.mubr.msk.f32.mxu0 %vm951_vm0, %v952_v6  ;;  %880 = vmatprep.mubr.msk.f32.mxu1 %vm951_vm0, %v952_v6 }
  0x6f   :  { %794 = vmatmul.mubr.f32.gmra.mrb[38].mxu0 %v36_v0  ;;  %881 = vmatmul.mubr.f32.gmra.mrb[38].mxu1 %v65_v1 }
  0x70   :  { %796 = vmatprep.mubr.msk.f32.mxu0 %vm951_vm0, %v952_v6  ;;  %883 = vmatprep.mubr.msk.f32.mxu1 %vm951_vm0, %v952_v6 }
  0x73   :  { %797 = vmatmul.mubr.f32.gmra.mrb[40].mxu0 %v37_v2  ;;  %884 = vmatmul.mubr.f32.gmra.mrb[40].mxu1 %v66_v3 }
  0x74   :  { %799 = vmatprep.mubr.msk.f32.mxu0 %vm951_vm0, %v952_v6  ;;  %886 = vmatprep.mubr.msk.f32.mxu1 %vm951_vm0, %v952_v6 }
  0x77   :  { %800 = vmatmul.mubr.f32.gmra.mrb[42].mxu0 %v38_v4  ;;  %887 = vmatmul.mubr.f32.gmra.mrb[42].mxu1 %v67_v5 }
  0x78   :  { %802 = vmatprep.mubr.msk.f32.mxu0 %vm951_vm0, %v952_v6  ;;  %889 = vmatprep.mubr.msk.f32.mxu1 %vm951_vm0, %v952_v6 }
  0x7b   :  { %803 = vmatmul.mubr.f32.gmra.mrb[44].mxu0 %v39_v7  ;;  %890 = vmatmul.mubr.f32.gmra.mrb[44].mxu1 %v68_v8 }
  0x7c   :  { %805 = vmatprep.mubr.msk.f32.mxu0 %vm951_vm0, %v952_v6  ;;  %892 = vmatprep.mubr.msk.f32.mxu1 %vm951_vm0, %v952_v6 }
  0x7f   :  { %806 = vmatmul.mubr.f32.gmra.mrb[46].mxu0 %v40_v9  ;;  %893 = vmatmul.mubr.f32.gmra.mrb[46].mxu1 %v69_v10 }
  0x80   :  { %808 = vmatprep.mubr.msk.f32.mxu0 %vm951_vm0, %v952_v6  ;;  %895 = vmatprep.mubr.msk.f32.mxu1 %vm951_vm0, %v952_v6 }
  0x83   :  { %809 = vmatmul.mubr.f32.gmra.mrb[48].mxu0 %v41_v11  ;;  %896 = vmatmul.mubr.f32.gmra.mrb[48].mxu1 %v70_v12 }
  0x84   :  { %811 = vmatprep.mubr.msk.f32.mxu0 %vm951_vm0, %v952_v6  ;;  %898 = vmatprep.mubr.msk.f32.mxu1 %vm951_vm0, %v952_v6 }
  0x87   :  { %812 = vmatmul.mubr.f32.gmra.mrb[50].mxu0 %v42_v13  ;;  %899 = vmatmul.mubr.f32.gmra.mrb[50].mxu1 %v71_v14 }
  0x88   :  { %814 = vmatprep.mubr.msk.f32.mxu0 %vm951_vm0, %v952_v6  ;;  %901 = vmatprep.mubr.msk.f32.mxu1 %vm951_vm0, %v952_v6 }
  0x8b   :  { %815 = vmatmul.mubr.f32.gmra.mrb[52].mxu0 %v43_v15  ;;  %902 = vmatmul.mubr.f32.gmra.mrb[52].mxu1 %v72_v16 }
  0x8c   :  { %817 = vmatprep.mubr.msk.f32.mxu0 %vm951_vm0, %v952_v6  ;;  %904 = vmatprep.mubr.msk.f32.mxu1 %vm951_vm0, %v952_v6 }
  0x8f   :  { %818 = vmatmul.mubr.f32.gmra.mrb[54].mxu0 %v44_v17  ;;  %905 = vmatmul.mubr.f32.gmra.mrb[54].mxu1 %v73_v18 }
  0x90   :  { %820 = vmatprep.mubr.msk.f32.mxu0 %vm951_vm0, %v952_v6 }
  0x93   :  { %821 = vmatmul.mubr.f32.gmra.mrb[56].mxu0 %v45_v19 }
  0xf6   :  { %v163_v21 = vpop.f32.mrb[0].mxu0  ;;  %v308_v23 = vpop.f32.mrb[0].mxu1 }
  0xf7   :  { %v164_v24 = vadd.f32 %v1314_v20, %v163_v21  ;;  %v738_v6 = vpop.f32.mrb[1].mxu0  ;;  %v309_v25 = vadd.f32 %v1314_v20, %v308_v23  ;;  %v825_v26 = vpop.f32.mrb[1].mxu1 }
  0xf9   :  { %v454_v27 = vmul.f32 %v1319_v22, %v164_v24  ;;  %v483_v28 = vmul.f32 %v1319_v22, %v309_v25 }
  0xfa   :  { %v168_v29 = vpop.f32.mrb[2].mxu0  ;;  %v313_v30 = vpop.f32.mrb[2].mxu1 }
  0xfb   :  { %v511_v31 = vmax.f32 %v164_v24, %v454_v27  ;;  %v540_v32 = vmax.f32 %v309_v25, %v483_v28  ;;  %v169_v33 = vadd.f32 %v1314_v20, %v168_v29  ;;  %v741_v34 = vpop.f32.mrb[3].mxu0  ;;  %v314_v35 = vadd.f32 %v1314_v20, %v313_v30  ;;  %v828_v36 = vpop.f32.mrb[3].mxu1 }
  0xfd   :  { %568 = vst [vmem:[%s1610_s4] sm:$0xff] %v511_v31  ;;  %597 = vst [vmem:[%s1610_s4 + $0xe8] sm:$0xff] %v540_v32  ;;  %v455_v37 = vmul.f32 %v1319_v22, %v169_v33  ;;  %v484_v38 = vmul.f32 %v1319_v22, %v314_v35 }
  0xfe   :  { %v173_v39 = vpop.f32.mrb[4].mxu0  ;;  %v318_v40 = vpop.f32.mrb[4].mxu1 }
  0xff   :  { %v512_v41 = vmax.f32 %v169_v33, %v455_v37  ;;  %v541_v42 = vmax.f32 %v314_v35, %v484_v38  ;;  %v174_v43 = vadd.f32 %v1314_v20, %v173_v39  ;;  %v744_v44 = vpop.f32.mrb[5].mxu0  ;;  %v319_v45 = vadd.f32 %v1314_v20, %v318_v40  ;;  %v831_v46 = vpop.f32.mrb[5].mxu1 }
 0x101   :  { %569 = vst [vmem:[%s1610_s4 + $0x8] sm:$0xff] %v512_v41  ;;  %598 = vst [vmem:[%s1610_s4 + $0xf0] sm:$0xff] %v541_v42  ;;  %v456_v47 = vmul.f32 %v1319_v22, %v174_v43  ;;  %v485_v48 = vmul.f32 %v1319_v22, %v319_v45 }
 0x102   :  { %v178_v49 = vpop.f32.mrb[6].mxu0  ;;  %v323_v50 = vpop.f32.mrb[6].mxu1 }
 0x103   :  { %v513_v51 = vmax.f32 %v174_v43, %v456_v47  ;;  %v542_v52 = vmax.f32 %v319_v45, %v485_v48  ;;  %v179_v53 = vadd.f32 %v1314_v20, %v178_v49  ;;  %v747_v54 = vpop.f32.mrb[7].mxu0  ;;  %v324_v55 = vadd.f32 %v1314_v20, %v323_v50  ;;  %v834_v56 = vpop.f32.mrb[7].mxu1 }
 0x105   :  { %570 = vst [vmem:[%s1610_s4 + $0x10] sm:$0xff] %v513_v51  ;;  %599 = vst [vmem:[%s1610_s4 + $0xf8] sm:$0xff] %v542_v52  ;;  %v457_v57 = vmul.f32 %v1319_v22, %v179_v53  ;;  %v486_v58 = vmul.f32 %v1319_v22, %v324_v55 }
 0x106   :  { %v183_v59 = vpop.f32.mrb[8].mxu0  ;;  %v328_v60 = vpop.f32.mrb[8].mxu1 }
 0x107   :  { %v514_v61 = vmax.f32 %v179_v53, %v457_v57  ;;  %v543_v62 = vmax.f32 %v324_v55, %v486_v58  ;;  %v184_v63 = vadd.f32 %v1314_v20, %v183_v59  ;;  %v750_v0 = vpop.f32.mrb[9].mxu0  ;;  %v329_v1 = vadd.f32 %v1314_v20, %v328_v60  ;;  %v837_v2 = vpop.f32.mrb[9].mxu1 }
 0x109   :  { %571 = vst [vmem:[%s1610_s4 + $0x18] sm:$0xff] %v514_v61  ;;  %600 = vst [vmem:[%s1610_s4 + $0x100] sm:$0xff] %v543_v62  ;;  %v458_v3 = vmul.f32 %v1319_v22, %v184_v63  ;;  %v487_v4 = vmul.f32 %v1319_v22, %v329_v1 }
 0x10a   :  { %v188_v5 = vpop.f32.mrb[10].mxu0  ;;  %v333_v7 = vpop.f32.mrb[10].mxu1 }
 0x10b   :  { %v515_v8 = vmax.f32 %v184_v63, %v458_v3  ;;  %v544_v9 = vmax.f32 %v329_v1, %v487_v4  ;;  %v189_v10 = vadd.f32 %v1314_v20, %v188_v5  ;;  %v753_v11 = vpop.f32.mrb[11].mxu0  ;;  %v334_v12 = vadd.f32 %v1314_v20, %v333_v7  ;;  %v840_v13 = vpop.f32.mrb[11].mxu1 }
 0x10d   :  { %572 = vst [vmem:[%s1610_s4 + $0x20] sm:$0xff] %v515_v8  ;;  %601 = vst [vmem:[%s1610_s4 + $0x108] sm:$0xff] %v544_v9  ;;  %v459_v14 = vmul.f32 %v1319_v22, %v189_v10  ;;  %v488_v15 = vmul.f32 %v1319_v22, %v334_v12 }
 0x10e   :  { %v193_v16 = vpop.f32.mrb[12].mxu0  ;;  %v338_v17 = vpop.f32.mrb[12].mxu1 }
 0x10f   :  { %v516_v18 = vmax.f32 %v189_v10, %v459_v14  ;;  %v545_v19 = vmax.f32 %v334_v12, %v488_v15  ;;  %v194_v21 = vadd.f32 %v1314_v20, %v193_v16  ;;  %v756_v23 = vpop.f32.mrb[13].mxu0  ;;  %v339_v24 = vadd.f32 %v1314_v20, %v338_v17  ;;  %v843_v6 = vpop.f32.mrb[13].mxu1 }
 0x111   :  { %573 = vst [vmem:[%s1610_s4 + $0x28] sm:$0xff] %v516_v18  ;;  %602 = vst [vmem:[%s1610_s4 + $0x110] sm:$0xff] %v545_v19  ;;  %v460_v25 = vmul.f32 %v1319_v22, %v194_v21  ;;  %v489_v26 = vmul.f32 %v1319_v22, %v339_v24 }
 0x112   :  { %v198_v27 = vpop.f32.mrb[14].mxu0  ;;  %v343_v28 = vpop.f32.mrb[14].mxu1 }
 0x113   :  { %v517_v29 = vmax.f32 %v194_v21, %v460_v25  ;;  %v546_v30 = vmax.f32 %v339_v24, %v489_v26  ;;  %v199_v31 = vadd.f32 %v1314_v20, %v198_v27  ;;  %v759_v32 = vpop.f32.mrb[15].mxu0  ;;  %v344_v33 = vadd.f32 %v1314_v20, %v343_v28  ;;  %v846_v34 = vpop.f32.mrb[15].mxu1 }
 0x115   :  { %574 = vst [vmem:[%s1610_s4 + $0x30] sm:$0xff] %v517_v29  ;;  %603 = vst [vmem:[%s1610_s4 + $0x118] sm:$0xff] %v546_v30  ;;  %v461_v35 = vmul.f32 %v1319_v22, %v199_v31  ;;  %v490_v36 = vmul.f32 %v1319_v22, %v344_v33 }
 0x116   :  { %v203_v37 = vpop.f32.mrb[16].mxu0  ;;  %v348_v38 = vpop.f32.mrb[16].mxu1 }
 0x117   :  { %v518_v39 = vmax.f32 %v199_v31, %v461_v35  ;;  %v547_v40 = vmax.f32 %v344_v33, %v490_v36  ;;  %v204_v41 = vadd.f32 %v1314_v20, %v203_v37  ;;  %v762_v42 = vpop.f32.mrb[17].mxu0  ;;  %v349_v43 = vadd.f32 %v1314_v20, %v348_v38  ;;  %v849_v44 = vpop.f32.mrb[17].mxu1 }
 0x119   :  { %575 = vst [vmem:[%s1610_s4 + $0x38] sm:$0xff] %v518_v39  ;;  %604 = vst [vmem:[%s1610_s4 + $0x120] sm:$0xff] %v547_v40  ;;  %v462_v45 = vmul.f32 %v1319_v22, %v204_v41  ;;  %v491_v46 = vmul.f32 %v1319_v22, %v349_v43 }
 0x11a   :  { %v208_v47 = vpop.f32.mrb[18].mxu0  ;;  %v353_v48 = vpop.f32.mrb[18].mxu1 }
 0x11b   :  { %v519_v49 = vmax.f32 %v204_v41, %v462_v45  ;;  %v548_v50 = vmax.f32 %v349_v43, %v491_v46  ;;  %v209_v51 = vadd.f32 %v1314_v20, %v208_v47  ;;  %v765_v52 = vpop.f32.mrb[19].mxu0  ;;  %v354_v53 = vadd.f32 %v1314_v20, %v353_v48  ;;  %v852_v54 = vpop.f32.mrb[19].mxu1 }
 0x11d   :  { %576 = vst [vmem:[%s1610_s4 + $0x40] sm:$0xff] %v519_v49  ;;  %605 = vst [vmem:[%s1610_s4 + $0x128] sm:$0xff] %v548_v50  ;;  %v463_v55 = vmul.f32 %v1319_v22, %v209_v51  ;;  %v492_v56 = vmul.f32 %v1319_v22, %v354_v53 }
 0x11e   :  { %v213_v57 = vpop.f32.mrb[20].mxu0  ;;  %v358_v58 = vpop.f32.mrb[20].mxu1 }
 0x11f   :  { %v520_v59 = vmax.f32 %v209_v51, %v463_v55  ;;  %v549_v60 = vmax.f32 %v354_v53, %v492_v56  ;;  %v214_v61 = vadd.f32 %v1314_v20, %v213_v57  ;;  %v768_v62 = vpop.f32.mrb[21].mxu0  ;;  %v359_v63 = vadd.f32 %v1314_v20, %v358_v58  ;;  %v855_v0 = vpop.f32.mrb[21].mxu1 }
 0x121   :  { %577 = vst [vmem:[%s1610_s4 + $0x48] sm:$0xff] %v520_v59  ;;  %606 = vst [vmem:[%s1610_s4 + $0x130] sm:$0xff] %v549_v60  ;;  %v464_v1 = vmul.f32 %v1319_v22, %v214_v61  ;;  %v493_v2 = vmul.f32 %v1319_v22, %v359_v63 }
 0x122   :  { %v218_v3 = vpop.f32.mrb[22].mxu0  ;;  %v363_v4 = vpop.f32.mrb[22].mxu1 }
 0x123   :  { %v521_v5 = vmax.f32 %v214_v61, %v464_v1  ;;  %v550_v7 = vmax.f32 %v359_v63, %v493_v2  ;;  %v219_v8 = vadd.f32 %v1314_v20, %v218_v3  ;;  %v771_v9 = vpop.f32.mrb[23].mxu0  ;;  %v364_v10 = vadd.f32 %v1314_v20, %v363_v4  ;;  %v858_v11 = vpop.f32.mrb[23].mxu1 }
 0x125   :  { %578 = vst [vmem:[%s1610_s4 + $0x50] sm:$0xff] %v521_v5  ;;  %607 = vst [vmem:[%s1610_s4 + $0x138] sm:$0xff] %v550_v7  ;;  %v465_v12 = vmul.f32 %v1319_v22, %v219_v8  ;;  %v494_v13 = vmul.f32 %v1319_v22, %v364_v10 }
 0x126   :  { %v223_v14 = vpop.f32.mrb[24].mxu0  ;;  %v368_v15 = vpop.f32.mrb[24].mxu1 }
 0x127   :  { %v522_v16 = vmax.f32 %v219_v8, %v465_v12  ;;  %v551_v17 = vmax.f32 %v364_v10, %v494_v13  ;;  %v224_v18 = vadd.f32 %v1314_v20, %v223_v14  ;;  %v774_v19 = vpop.f32.mrb[25].mxu0  ;;  %v369_v21 = vadd.f32 %v1314_v20, %v368_v15  ;;  %v861_v23 = vpop.f32.mrb[25].mxu1 }
 0x129   :  { %579 = vst [vmem:[%s1610_s4 + $0x58] sm:$0xff] %v522_v16  ;;  %608 = vst [vmem:[%s1610_s4 + $0x140] sm:$0xff] %v551_v17  ;;  %v466_v24 = vmul.f32 %v1319_v22, %v224_v18  ;;  %v495_v6 = vmul.f32 %v1319_v22, %v369_v21 }
 0x12a   :  { %v228_v25 = vpop.f32.mrb[26].mxu0  ;;  %v373_v26 = vpop.f32.mrb[26].mxu1 }
 0x12b   :  { %v523_v27 = vmax.f32 %v224_v18, %v466_v24  ;;  %v552_v28 = vmax.f32 %v369_v21, %v495_v6  ;;  %v229_v29 = vadd.f32 %v1314_v20, %v228_v25  ;;  %v777_v30 = vpop.f32.mrb[27].mxu0  ;;  %v374_v31 = vadd.f32 %v1314_v20, %v373_v26  ;;  %v864_v32 = vpop.f32.mrb[27].mxu1 }
 0x12d   :  { %580 = vst [vmem:[%s1610_s4 + $0x60] sm:$0xff] %v523_v27  ;;  %609 = vst [vmem:[%s1610_s4 + $0x148] sm:$0xff] %v552_v28  ;;  %v467_v33 = vmul.f32 %v1319_v22, %v229_v29  ;;  %v496_v34 = vmul.f32 %v1319_v22, %v374_v31 }
 0x12e   :  { %v233_v35 = vpop.f32.mrb[28].mxu0  ;;  %v378_v36 = vpop.f32.mrb[28].mxu1 }
 0x12f   :  { %v524_v37 = vmax.f32 %v229_v29, %v467_v33  ;;  %v553_v38 = vmax.f32 %v374_v31, %v496_v34  ;;  %v234_v39 = vadd.f32 %v1314_v20, %v233_v35  ;;  %v780_v40 = vpop.f32.mrb[29].mxu0  ;;  %v379_v41 = vadd.f32 %v1314_v20, %v378_v36  ;;  %v867_v42 = vpop.f32.mrb[29].mxu1 }
 0x131   :  { %581 = vst [vmem:[%s1610_s4 + $0x68] sm:$0xff] %v524_v37  ;;  %610 = vst [vmem:[%s1610_s4 + $0x150] sm:$0xff] %v553_v38  ;;  %v468_v43 = vmul.f32 %v1319_v22, %v234_v39  ;;  %v497_v44 = vmul.f32 %v1319_v22, %v379_v41 }
 0x132   :  { %v238_v45 = vpop.f32.mrb[30].mxu0  ;;  %v383_v46 = vpop.f32.mrb[30].mxu1 }
 0x133   :  { %v525_v47 = vmax.f32 %v234_v39, %v468_v43  ;;  %v554_v48 = vmax.f32 %v379_v41, %v497_v44  ;;  %v239_v49 = vadd.f32 %v1314_v20, %v238_v45  ;;  %v783_v50 = vpop.f32.mrb[31].mxu0  ;;  %v384_v51 = vadd.f32 %v1314_v20, %v383_v46  ;;  %v870_v52 = vpop.f32.mrb[31].mxu1 }
 0x135   :  { %582 = vst [vmem:[%s1610_s4 + $0x70] sm:$0xff] %v525_v47  ;;  %611 = vst [vmem:[%s1610_s4 + $0x158] sm:$0xff] %v554_v48  ;;  %v469_v53 = vmul.f32 %v1319_v22, %v239_v49  ;;  %v498_v54 = vmul.f32 %v1319_v22, %v384_v51 }
 0x136   :  { %v243_v55 = vpop.f32.mrb[32].mxu0  ;;  %v388_v56 = vpop.f32.mrb[32].mxu1 }
 0x137   :  { %v526_v57 = vmax.f32 %v239_v49, %v469_v53  ;;  %v555_v58 = vmax.f32 %v384_v51, %v498_v54  ;;  %v244_v59 = vadd.f32 %v1314_v20, %v243_v55  ;;  %v786_v60 = vpop.f32.mrb[33].mxu0  ;;  %v389_v61 = vadd.f32 %v1314_v20, %v388_v56  ;;  %v873_v62 = vpop.f32.mrb[33].mxu1 }
 0x139   :  { %583 = vst [vmem:[%s1610_s4 + $0x78] sm:$0xff] %v526_v57  ;;  %612 = vst [vmem:[%s1610_s4 + $0x160] sm:$0xff] %v555_v58  ;;  %v470_v63 = vmul.f32 %v1319_v22, %v244_v59  ;;  %v499_v0 = vmul.f32 %v1319_v22, %v389_v61 }
 0x13a   :  { %v248_v1 = vpop.f32.mrb[34].mxu0  ;;  %v393_v2 = vpop.f32.mrb[34].mxu1 }
 0x13b   :  { %v527_v3 = vmax.f32 %v244_v59, %v470_v63  ;;  %v556_v4 = vmax.f32 %v389_v61, %v499_v0  ;;  %v249_v5 = vadd.f32 %v1314_v20, %v248_v1  ;;  %v789_v7 = vpop.f32.mrb[35].mxu0  ;;  %v394_v8 = vadd.f32 %v1314_v20, %v393_v2  ;;  %v876_v9 = vpop.f32.mrb[35].mxu1 }
 0x13d   :  { %584 = vst [vmem:[%s1610_s4 + $0x80] sm:$0xff] %v527_v3  ;;  %613 = vst [vmem:[%s1610_s4 + $0x168] sm:$0xff] %v556_v4  ;;  %v471_v10 = vmul.f32 %v1319_v22, %v249_v5  ;;  %v500_v11 = vmul.f32 %v1319_v22, %v394_v8 }
 0x13e   :  { %v253_v12 = vpop.f32.mrb[36].mxu0  ;;  %v398_v13 = vpop.f32.mrb[36].mxu1 }
 0x13f   :  { %v528_v14 = vmax.f32 %v249_v5, %v471_v10  ;;  %v557_v15 = vmax.f32 %v394_v8, %v500_v11  ;;  %v254_v16 = vadd.f32 %v1314_v20, %v253_v12  ;;  %v792_v17 = vpop.f32.mrb[37].mxu0  ;;  %v399_v18 = vadd.f32 %v1314_v20, %v398_v13  ;;  %v879_v19 = vpop.f32.mrb[37].mxu1 }
 0x141   :  { %585 = vst [vmem:[%s1610_s4 + $0x88] sm:$0xff] %v528_v14  ;;  %614 = vst [vmem:[%s1610_s4 + $0x170] sm:$0xff] %v557_v15  ;;  %v472_v21 = vmul.f32 %v1319_v22, %v254_v16  ;;  %v501_v23 = vmul.f32 %v1319_v22, %v399_v18 }
 0x142   :  { %v258_v24 = vpop.f32.mrb[38].mxu0  ;;  %v403_v6 = vpop.f32.mrb[38].mxu1 }
 0x143   :  { %v529_v25 = vmax.f32 %v254_v16, %v472_v21  ;;  %v558_v26 = vmax.f32 %v399_v18, %v501_v23  ;;  %v259_v27 = vadd.f32 %v1314_v20, %v258_v24  ;;  %v795_v28 = vpop.f32.mrb[39].mxu0  ;;  %v404_v29 = vadd.f32 %v1314_v20, %v403_v6  ;;  %v882_v30 = vpop.f32.mrb[39].mxu1 }
 0x145   :  { %586 = vst [vmem:[%s1610_s4 + $0x90] sm:$0xff] %v529_v25  ;;  %615 = vst [vmem:[%s1610_s4 + $0x178] sm:$0xff] %v558_v26  ;;  %v473_v31 = vmul.f32 %v1319_v22, %v259_v27  ;;  %v502_v32 = vmul.f32 %v1319_v22, %v404_v29 }
 0x146   :  { %v263_v33 = vpop.f32.mrb[40].mxu0  ;;  %v408_v34 = vpop.f32.mrb[40].mxu1 }
 0x147   :  { %v530_v35 = vmax.f32 %v259_v27, %v473_v31  ;;  %v559_v36 = vmax.f32 %v404_v29, %v502_v32  ;;  %v264_v37 = vadd.f32 %v1314_v20, %v263_v33  ;;  %v798_v38 = vpop.f32.mrb[41].mxu0  ;;  %v409_v39 = vadd.f32 %v1314_v20, %v408_v34  ;;  %v885_v40 = vpop.f32.mrb[41].mxu1 }
 0x149   :  { %587 = vst [vmem:[%s1610_s4 + $0x98] sm:$0xff] %v530_v35  ;;  %616 = vst [vmem:[%s1610_s4 + $0x180] sm:$0xff] %v559_v36  ;;  %v474_v41 = vmul.f32 %v1319_v22, %v264_v37  ;;  %v503_v42 = vmul.f32 %v1319_v22, %v409_v39 }
 0x14a   :  { %v268_v43 = vpop.f32.mrb[42].mxu0  ;;  %v413_v44 = vpop.f32.mrb[42].mxu1 }
 0x14b   :  { %v531_v45 = vmax.f32 %v264_v37, %v474_v41  ;;  %v560_v46 = vmax.f32 %v409_v39, %v503_v42  ;;  %v269_v47 = vadd.f32 %v1314_v20, %v268_v43  ;;  %v801_v48 = vpop.f32.mrb[43].mxu0  ;;  %v414_v49 = vadd.f32 %v1314_v20, %v413_v44  ;;  %v888_v50 = vpop.f32.mrb[43].mxu1 }
 0x14d   :  { %588 = vst [vmem:[%s1610_s4 + $0xa0] sm:$0xff] %v531_v45  ;;  %617 = vst [vmem:[%s1610_s4 + $0x188] sm:$0xff] %v560_v46  ;;  %v475_v51 = vmul.f32 %v1319_v22, %v269_v47  ;;  %v504_v52 = vmul.f32 %v1319_v22, %v414_v49 }
 0x14e   :  { %v273_v53 = vpop.f32.mrb[44].mxu0  ;;  %v418_v54 = vpop.f32.mrb[44].mxu1 }
 0x14f   :  { %v532_v55 = vmax.f32 %v269_v47, %v475_v51  ;;  %v561_v56 = vmax.f32 %v414_v49, %v504_v52  ;;  %v274_v57 = vadd.f32 %v1314_v20, %v273_v53  ;;  %v804_v58 = vpop.f32.mrb[45].mxu0  ;;  %v419_v59 = vadd.f32 %v1314_v20, %v418_v54  ;;  %v891_v60 = vpop.f32.mrb[45].mxu1 }
 0x151   :  { %589 = vst [vmem:[%s1610_s4 + $0xa8] sm:$0xff] %v532_v55  ;;  %618 = vst [vmem:[%s1610_s4 + $0x190] sm:$0xff] %v561_v56  ;;  %v476_v61 = vmul.f32 %v1319_v22, %v274_v57  ;;  %v505_v62 = vmul.f32 %v1319_v22, %v419_v59 }
 0x152   :  { %v278_v63 = vpop.f32.mrb[46].mxu0  ;;  %v423_v0 = vpop.f32.mrb[46].mxu1 }
 0x153   :  { %v533_v1 = vmax.f32 %v274_v57, %v476_v61  ;;  %v562_v2 = vmax.f32 %v419_v59, %v505_v62  ;;  %v279_v3 = vadd.f32 %v1314_v20, %v278_v63  ;;  %v807_v4 = vpop.f32.mrb[47].mxu0  ;;  %v424_v5 = vadd.f32 %v1314_v20, %v423_v0  ;;  %v894_v7 = vpop.f32.mrb[47].mxu1 }
 0x155   :  { %590 = vst [vmem:[%s1610_s4 + $0xb0] sm:$0xff] %v533_v1  ;;  %619 = vst [vmem:[%s1610_s4 + $0x198] sm:$0xff] %v562_v2  ;;  %v477_v8 = vmul.f32 %v1319_v22, %v279_v3  ;;  %v506_v9 = vmul.f32 %v1319_v22, %v424_v5 }
 0x156   :  { %v283_v10 = vpop.f32.mrb[48].mxu0  ;;  %v428_v11 = vpop.f32.mrb[48].mxu1 }
 0x157   :  { %v534_v12 = vmax.f32 %v279_v3, %v477_v8  ;;  %v563_v13 = vmax.f32 %v424_v5, %v506_v9  ;;  %v284_v14 = vadd.f32 %v1314_v20, %v283_v10  ;;  %v810_v15 = vpop.f32.mrb[49].mxu0  ;;  %v429_v16 = vadd.f32 %v1314_v20, %v428_v11  ;;  %v897_v17 = vpop.f32.mrb[49].mxu1 }
 0x159   :  { %591 = vst [vmem:[%s1610_s4 + $0xb8] sm:$0xff] %v534_v12  ;;  %620 = vst [vmem:[%s1610_s4 + $0x1a0] sm:$0xff] %v563_v13  ;;  %v478_v18 = vmul.f32 %v1319_v22, %v284_v14  ;;  %v507_v19 = vmul.f32 %v1319_v22, %v429_v16 }
 0x15a   :  { %v288_v21 = vpop.f32.mrb[50].mxu0  ;;  %v433_v23 = vpop.f32.mrb[50].mxu1 }
 0x15b   :  { %v535_v24 = vmax.f32 %v284_v14, %v478_v18  ;;  %v564_v6 = vmax.f32 %v429_v16, %v507_v19  ;;  %v289_v25 = vadd.f32 %v1314_v20, %v288_v21  ;;  %v813_v26 = vpop.f32.mrb[51].mxu0  ;;  %v434_v27 = vadd.f32 %v1314_v20, %v433_v23  ;;  %v900_v28 = vpop.f32.mrb[51].mxu1 }
 0x15d   :  { %592 = vst [vmem:[%s1610_s4 + $0xc0] sm:$0xff] %v535_v24  ;;  %621 = vst [vmem:[%s1610_s4 + $0x1a8] sm:$0xff] %v564_v6  ;;  %v479_v29 = vmul.f32 %v1319_v22, %v289_v25  ;;  %v508_v30 = vmul.f32 %v1319_v22, %v434_v27 }
 0x15e   :  { %v293_v31 = vpop.f32.mrb[52].mxu0  ;;  %v438_v32 = vpop.f32.mrb[52].mxu1 }
 0x15f   :  { %v536_v33 = vmax.f32 %v289_v25, %v479_v29  ;;  %v565_v34 = vmax.f32 %v434_v27, %v508_v30  ;;  %v294_v35 = vadd.f32 %v1314_v20, %v293_v31  ;;  %v816_v36 = vpop.f32.mrb[53].mxu0  ;;  %v439_v37 = vadd.f32 %v1314_v20, %v438_v32  ;;  %v903_v38 = vpop.f32.mrb[53].mxu1 }
 0x161   :  { %593 = vst [vmem:[%s1610_s4 + $0xc8] sm:$0xff] %v536_v33  ;;  %622 = vst [vmem:[%s1610_s4 + $0x1b0] sm:$0xff] %v565_v34  ;;  %v480_v39 = vmul.f32 %v1319_v22, %v294_v35  ;;  %v509_v40 = vmul.f32 %v1319_v22, %v439_v37 }
 0x162   :  { %v298_v41 = vpop.f32.mrb[54].mxu0  ;;  %v443_v42 = vpop.f32.mrb[54].mxu1 }
 0x163   :  { %v537_v43 = vmax.f32 %v294_v35, %v480_v39  ;;  %v566_v44 = vmax.f32 %v439_v37, %v509_v40  ;;  %v299_v45 = vadd.f32 %v1314_v20, %v298_v41  ;;  %v819_v46 = vpop.f32.mrb[55].mxu0  ;;  %v444_v47 = vadd.f32 %v1314_v20, %v443_v42  ;;  %v906_v48 = vpop.f32.mrb[55].mxu1 }
 0x165   :  { %594 = vst [vmem:[%s1610_s4 + $0xd0] sm:$0xff] %v537_v43  ;;  %623 = vst [vmem:[%s1610_s4 + $0x1b8] sm:$0xff] %v566_v44  ;;  %v481_v49 = vmul.f32 %v1319_v22, %v299_v45  ;;  %v510_v50 = vmul.f32 %v1319_v22, %v444_v47 }
 0x166   :  { %v303_v51 = vpop.f32.mrb[56].mxu0 }
 0x167   :  { %v538_v52 = vmax.f32 %v299_v45, %v481_v49  ;;  %v567_v53 = vmax.f32 %v444_v47, %v510_v50  ;;  %v304_v54 = vadd.f32 %v1314_v20, %v303_v51  ;;  %v822_v55 = vpop.f32.mrb[57].mxu0 }
 0x169   :  { %595 = vst [vmem:[%s1610_s4 + $0xd8] sm:$0xff] %v538_v52  ;;  %624 = vst [vmem:[%s1610_s4 + $0x1c0] sm:$0xff] %v567_v53  ;;  %v482_v56 = vmul.f32 %v1319_v22, %v304_v54 }
 0x16b   :  { %v539_v57 = vmax.f32 %v304_v54, %v482_v56 }
 0x16d   :  { %596 = vst [vmem:[%s1610_s4 + $0xe0] sm:$0xff] %v539_v57 }

// kernel: inception_forward.9
= control target key start
LH: loop header
LB: loop body
LE: loop exit
PB: predicated region body
PF: predicated region fallthrough
CT: control target
= control target key end

     0   :  { %v378_v0 = vmov 0.0|0.0   ;;  %vm379_vm0 = vmmov 0   ;;  %v380_v6 = vmov 0.0   ;;  %s594_s1 = inlined_call_operand.vmem [shape: f32[128,128], index: 1, kind: input, shape index: {}]   ;;  %s595_s0 = inlined_call_operand.vmem [shape: f32[104,128], index: 0, kind: input, shape index: {}]   ;;  %s596_s2 = inlined_call_operand.vmem [shape: f32[1,128], index: 2, kind: input, shape index: {}]   ;;  %s597_s3 = inlined_call_operand.vmem [shape: f32[1,128], index: 3, kind: input, shape index: {}]   ;;  %s598_s4 = inlined_call_operand.vmem [shape: f32[104,128], index: 4, kind: output, shape index: {}]  }
   0x1   :  { %335 = vmatprep.subr.bf16.mxu0 %v378_v0  ;;  %v30_v1 = vld [vmem:[%s594_s1] sm:$0xff]  ;;  %v31_v2 = vld [vmem:[%s594_s1 + $0x8] sm:$0xff]  ;;  %359 = vmatprep.subr.bf16.mxu1 %v378_v0  ;;  %v32_v3 = vld [vmem:[%s594_s1 + $0x10] sm:$0xff] }
   0x2   :  { %v336_v4 = vpack.c.bf16 %v31_v2, %v30_v1  ;;  %v33_v5 = vld [vmem:[%s594_s1 + $0x18] sm:$0xff]  ;;  %296 = vmatprep.mubr.msk.f32.mxu0 %vm379_vm0, %v380_v6  ;;  %317 = vmatprep.mubr.msk.f32.mxu1 %vm379_vm0, %v380_v6  ;;  %v34_v8 = vld [vmem:[%s594_s1 + $0x20] sm:$0xff]  ;;  %v35_v9 = vld [vmem:[%s594_s1 + $0x28] sm:$0xff] }
   0x3   :  { %v339_v7 = vpack.c.bf16 %v33_v5, %v32_v3  ;;  %v342_v10 = vpack.c.bf16 %v35_v9, %v34_v8  ;;  %v36_v11 = vld [vmem:[%s594_s1 + $0x30] sm:$0xff]  ;;  %v37_v12 = vld [vmem:[%s594_s1 + $0x38] sm:$0xff]  ;;  %v38_v14 = vld [vmem:[%s594_s1 + $0x40] sm:$0xff] }
   0x4   :  { %337 = vmatpush3.bf16.msra.mxu0 %v336_v4  ;;  %367 = vmatpush3.bf16.msra.mxu1 %v336_v4  ;;  %v345_v13 = vpack.c.bf16 %v37_v12, %v36_v11  ;;  %v39_v15 = vld [vmem:[%s594_s1 + $0x48] sm:$0xff]  ;;  %v40_v17 = vld [vmem:[%s594_s1 + $0x50] sm:$0xff]  ;;  %v41_v18 = vld [vmem:[%s594_s1 + $0x58] sm:$0xff] }
   0x5   :  { %338 = vmatprep.subr.bf16.mxu0 %v378_v0  ;;  %360 = vmatprep.subr.bf16.mxu1 %v378_v0  ;;  %v348_v16 = vpack.c.bf16 %v39_v15, %v38_v14  ;;  %v351_v19 = vpack.c.bf16 %v41_v18, %v40_v17  ;;  %v42_v20 = vld [vmem:[%s594_s1 + $0x60] sm:$0xff]  ;;  %v43_v21 = vld [vmem:[%s594_s1 + $0x68] sm:$0xff]  ;;  %v44_v23 = vld [vmem:[%s594_s1 + $0x70] sm:$0xff] }
   0x6   :  { %v354_v22 = vpack.c.bf16 %v43_v21, %v42_v20  ;;  %v45_v24 = vld [vmem:[%s594_s1 + $0x78] sm:$0xff]  ;;  %v17_v26 = vld [vmem:[%s595_s0] sm:$0xff]  ;;  %v18_v28 = vld [vmem:[%s595_s0 + $0x8] sm:$0xff] }
   0x7   :  { %v357_v25 = vpack.c.bf16 %v45_v24, %v44_v23  ;;  %v24_v27 = vld [vmem:[%s595_s0 + $0x38] sm:$0xff]  ;;  %v25_v29 = vld [vmem:[%s595_s0 + $0x40] sm:$0xff]  ;;  %v19_v30 = vld [vmem:[%s595_s0 + $0x10] sm:$0xff] }
   0x8   :  { %340 = vmatpush3.bf16.msra.mxu0 %v339_v7  ;;  %368 = vmatpush3.bf16.msra.mxu1 %v339_v7  ;;  %v26_v31 = vld [vmem:[%s595_s0 + $0x48] sm:$0xff]  ;;  %v20_v32 = vld [vmem:[%s595_s0 + $0x18] sm:$0xff]  ;;  %v27_v33 = vld [vmem:[%s595_s0 + $0x50] sm:$0xff] }
   0x9   :  { %341 = vmatprep.subr.bf16.mxu0 %v378_v0  ;;  %361 = vmatprep.subr.bf16.mxu1 %v378_v0  ;;  %v21_v34 = vld [vmem:[%s595_s0 + $0x20] sm:$0xff]  ;;  %v28_v35 = vld [vmem:[%s595_s0 + $0x58] sm:$0xff]  ;;  %v22_v36 = vld [vmem:[%s595_s0 + $0x28] sm:$0xff] }
   0xa   :  { %v29_v37 = vld [vmem:[%s595_s0 + $0x60] sm:$0xff]  ;;  %v23_v38 = vld [vmem:[%s595_s0 + $0x30] sm:$0xff] }
   0xb   :  { %v522_v39 = vld [vmem:[%s596_s2] ss:$0 sm:$0xff] }
   0xc   :  { %343 = vmatpush3.bf16.msra.mxu0 %v342_v10  ;;  %369 = vmatpush3.bf16.msra.mxu1 %v342_v10  ;;  %v527_v41 = vld [vmem:[%s597_s3] ss:$0 sm:$0xff] }
   0xd   :  { %344 = vmatprep.subr.bf16.mxu0 %v378_v0  ;;  %362 = vmatprep.subr.bf16.mxu1 %v378_v0 }
  0x10   :  { %346 = vmatpush3.bf16.msra.mxu0 %v345_v13  ;;  %370 = vmatpush3.bf16.msra.mxu1 %v345_v13 }
  0x11   :  { %347 = vmatprep.subr.bf16.mxu0 %v378_v0  ;;  %363 = vmatprep.subr.bf16.mxu1 %v378_v0 }
  0x14   :  { %349 = vmatpush3.bf16.msra.mxu0 %v348_v16  ;;  %371 = vmatpush3.bf16.msra.mxu1 %v348_v16 }
  0x15   :  { %350 = vmatprep.subr.bf16.mxu0 %v378_v0  ;;  %364 = vmatprep.subr.bf16.mxu1 %v378_v0 }
  0x18   :  { %352 = vmatpush3.bf16.msra.mxu0 %v351_v19  ;;  %372 = vmatpush3.bf16.msra.mxu1 %v351_v19 }
  0x19   :  { %353 = vmatprep.subr.bf16.mxu0 %v378_v0  ;;  %365 = vmatprep.subr.bf16.mxu1 %v378_v0 }
  0x1c   :  { %355 = vmatpush3.bf16.msra.mxu0 %v354_v22  ;;  %373 = vmatpush3.bf16.msra.mxu1 %v354_v22 }
  0x1d   :  { %356 = vmatprep.subr.bf16.mxu0 %v378_v0  ;;  %366 = vmatprep.subr.bf16.mxu1 %v378_v0 }
  0x20   :  { %358 = vmatpush3.bf16.msra.mxu0 %v357_v25  ;;  %374 = vmatpush3.bf16.msra.mxu1 %v357_v25 }
  0x23   :  { %297 = vmatmul.mubr.f32.vlgmr.msra.gmra.mrb[0].mxu0 %v17_v26  ;;  %318 = vmatmul.mubr.f32.vlgmr.msra.gmra.mrb[0].mxu1 %v24_v27 }
  0x24   :  { %299 = vmatprep.mubr.msk.f32.mxu0 %vm379_vm0, %v380_v6  ;;  %320 = vmatprep.mubr.msk.f32.mxu1 %vm379_vm0, %v380_v6 }
  0x27   :  { %300 = vmatmul.mubr.f32.gmra.mrb[2].mxu0 %v18_v28  ;;  %321 = vmatmul.mubr.f32.gmra.mrb[2].mxu1 %v25_v29 }
  0x28   :  { %302 = vmatprep.mubr.msk.f32.mxu0 %vm379_vm0, %v380_v6  ;;  %323 = vmatprep.mubr.msk.f32.mxu1 %vm379_vm0, %v380_v6 }
  0x2b   :  { %303 = vmatmul.mubr.f32.gmra.mrb[4].mxu0 %v19_v30  ;;  %324 = vmatmul.mubr.f32.gmra.mrb[4].mxu1 %v26_v31 }
  0x2c   :  { %305 = vmatprep.mubr.msk.f32.mxu0 %vm379_vm0, %v380_v6  ;;  %326 = vmatprep.mubr.msk.f32.mxu1 %vm379_vm0, %v380_v6 }
  0x2f   :  { %306 = vmatmul.mubr.f32.gmra.mrb[6].mxu0 %v20_v32  ;;  %327 = vmatmul.mubr.f32.gmra.mrb[6].mxu1 %v27_v33 }
  0x30   :  { %308 = vmatprep.mubr.msk.f32.mxu0 %vm379_vm0, %v380_v6  ;;  %329 = vmatprep.mubr.msk.f32.mxu1 %vm379_vm0, %v380_v6 }
  0x33   :  { %309 = vmatmul.mubr.f32.gmra.mrb[8].mxu0 %v21_v34  ;;  %330 = vmatmul.mubr.f32.gmra.mrb[8].mxu1 %v28_v35 }
  0x34   :  { %311 = vmatprep.mubr.msk.f32.mxu0 %vm379_vm0, %v380_v6  ;;  %332 = vmatprep.mubr.msk.f32.mxu1 %vm379_vm0, %v380_v6 }
  0x37   :  { %312 = vmatmul.mubr.f32.gmra.mrb[10].mxu0 %v22_v36  ;;  %333 = vmatmul.mubr.f32.gmra.mrb[10].mxu1 %v29_v37 }
  0x38   :  { %314 = vmatprep.mubr.msk.f32.mxu0 %vm379_vm0, %v380_v6 }
  0x3b   :  { %315 = vmatmul.mubr.f32.gmra.mrb[12].mxu0 %v23_v38 }
  0xf6   :  { %v119_v40 = vpop.f32.mrb[0].mxu0  ;;  %v154_v42 = vpop.f32.mrb[0].mxu1 }
  0xf7   :  { %v120_v43 = vadd.f32 %v522_v39, %v119_v40  ;;  %v298_v44 = vpop.f32.mrb[1].mxu0  ;;  %v155_v45 = vadd.f32 %v522_v39, %v154_v42  ;;  %v319_v46 = vpop.f32.mrb[1].mxu1 }
  0xf9   :  { %v190_v47 = vmul.f32 %v527_v41, %v120_v43  ;;  %v197_v48 = vmul.f32 %v527_v41, %v155_v45 }
  0xfa   :  { %v124_v49 = vpop.f32.mrb[2].mxu0  ;;  %v159_v50 = vpop.f32.mrb[2].mxu1 }
  0xfb   :  { %v203_v51 = vmax.f32 %v120_v43, %v190_v47  ;;  %v210_v52 = vmax.f32 %v155_v45, %v197_v48  ;;  %v125_v53 = vadd.f32 %v522_v39, %v124_v49  ;;  %v301_v54 = vpop.f32.mrb[3].mxu0  ;;  %v160_v55 = vadd.f32 %v522_v39, %v159_v50  ;;  %v322_v56 = vpop.f32.mrb[3].mxu1 }
  0xfd   :  { %216 = vst [vmem:[%s598_s4] sm:$0xff] %v203_v51  ;;  %223 = vst [vmem:[%s598_s4 + $0x38] sm:$0xff] %v210_v52  ;;  %v191_v57 = vmul.f32 %v527_v41, %v125_v53  ;;  %v198_v58 = vmul.f32 %v527_v41, %v160_v55 }
  0xfe   :  { %v129_v59 = vpop.f32.mrb[4].mxu0  ;;  %v164_v60 = vpop.f32.mrb[4].mxu1 }
  0xff   :  { %v204_v61 = vmax.f32 %v125_v53, %v191_v57  ;;  %v211_v62 = vmax.f32 %v160_v55, %v198_v58  ;;  %v130_v63 = vadd.f32 %v522_v39, %v129_v59  ;;  %v304_v0 = vpop.f32.mrb[5].mxu0  ;;  %v165_v1 = vadd.f32 %v522_v39, %v164_v60  ;;  %v325_v2 = vpop.f32.mrb[5].mxu1 }
 0x101   :  { %217 = vst [vmem:[%s598_s4 + $0x8] sm:$0xff] %v204_v61  ;;  %224 = vst [vmem:[%s598_s4 + $0x40] sm:$0xff] %v211_v62  ;;  %v192_v3 = vmul.f32 %v527_v41, %v130_v63  ;;  %v199_v4 = vmul.f32 %v527_v41, %v165_v1 }
 0x102   :  { %v134_v5 = vpop.f32.mrb[6].mxu0  ;;  %v169_v6 = vpop.f32.mrb[6].mxu1 }
 0x103   :  { %v205_v7 = vmax.f32 %v130_v63, %v192_v3  ;;  %v212_v8 = vmax.f32 %v165_v1, %v199_v4  ;;  %v135_v9 = vadd.f32 %v522_v39, %v134_v5  ;;  %v307_v10 = vpop.f32.mrb[7].mxu0  ;;  %v170_v11 = vadd.f32 %v522_v39, %v169_v6  ;;  %v328_v12 = vpop.f32.mrb[7].mxu1 }
 0x105   :  { %218 = vst [vmem:[%s598_s4 + $0x10] sm:$0xff] %v205_v7  ;;  %225 = vst [vmem:[%s598_s4 + $0x48] sm:$0xff] %v212_v8  ;;  %v193_v13 = vmul.f32 %v527_v41, %v135_v9  ;;  %v200_v14 = vmul.f32 %v527_v41, %v170_v11 }
 0x106   :  { %v139_v15 = vpop.f32.mrb[8].mxu0  ;;  %v174_v16 = vpop.f32.mrb[8].mxu1 }
 0x107   :  { %v206_v17 = vmax.f32 %v135_v9, %v193_v13  ;;  %v213_v18 = vmax.f32 %v170_v11, %v200_v14  ;;  %v140_v19 = vadd.f32 %v522_v39, %v139_v15  ;;  %v310_v20 = vpop.f32.mrb[9].mxu0  ;;  %v175_v21 = vadd.f32 %v522_v39, %v174_v16  ;;  %v331_v22 = vpop.f32.mrb[9].mxu1 }
 0x109   :  { %219 = vst [vmem:[%s598_s4 + $0x18] sm:$0xff] %v206_v17  ;;  %226 = vst [vmem:[%s598_s4 + $0x50] sm:$0xff] %v213_v18  ;;  %v194_v23 = vmul.f32 %v527_v41, %v140_v19  ;;  %v201_v24 = vmul.f32 %v527_v41, %v175_v21 }
 0x10a   :  { %v144_v25 = vpop.f32.mrb[10].mxu0  ;;  %v179_v26 = vpop.f32.mrb[10].mxu1 }
 0x10b   :  { %v207_v27 = vmax.f32 %v140_v19, %v194_v23  ;;  %v214_v28 = vmax.f32 %v175_v21, %v201_v24  ;;  %v145_v29 = vadd.f32 %v522_v39, %v144_v25  ;;  %v313_v30 = vpop.f32.mrb[11].mxu0  ;;  %v180_v31 = vadd.f32 %v522_v39, %v179_v26  ;;  %v334_v32 = vpop.f32.mrb[11].mxu1 }
 0x10d   :  { %220 = vst [vmem:[%s598_s4 + $0x20] sm:$0xff] %v207_v27  ;;  %227 = vst [vmem:[%s598_s4 + $0x58] sm:$0xff] %v214_v28  ;;  %v195_v33 = vmul.f32 %v527_v41, %v145_v29  ;;  %v202_v34 = vmul.f32 %v527_v41, %v180_v31 }
 0x10e   :  { %v149_v35 = vpop.f32.mrb[12].mxu0 }
 0x10f   :  { %v208_v36 = vmax.f32 %v145_v29, %v195_v33  ;;  %v215_v37 = vmax.f32 %v180_v31, %v202_v34  ;;  %v150_v38 = vadd.f32 %v522_v39, %v149_v35  ;;  %v316_v40 = vpop.f32.mrb[13].mxu0 }
 0x111   :  { %221 = vst [vmem:[%s598_s4 + $0x28] sm:$0xff] %v208_v36  ;;  %228 = vst [vmem:[%s598_s4 + $0x60] sm:$0xff] %v215_v37  ;;  %v196_v42 = vmul.f32 %v527_v41, %v150_v38 }
 0x113   :  { %v209_v43 = vmax.f32 %v150_v38, %v196_v42 }
 0x115   :  { %222 = vst [vmem:[%s598_s4 + $0x30] sm:$0xff] %v209_v43 }

// kernel: inception_forward.10
= control target key start
LH: loop header
LB: loop body
LE: loop exit
PB: predicated region body
PF: predicated region fallthrough
CT: control target
= control target key end

     0   :  { %s657_s1 = inlined_call_operand.vmem [shape: f32[256,128], index: 1, kind: input, shape index: {}]   ;;  %s658_s0 = inlined_call_operand.vmem [shape: f32[104,256], index: 0, kind: input, shape index: {}]   ;;  %s659_s2 = inlined_call_operand.vmem [shape: f32[1,128], index: 2, kind: input, shape index: {}]   ;;  %s660_s3 = inlined_call_operand.vmem [shape: f32[1,128], index: 3, kind: input, shape index: {}]   ;;  %s661_s4 = inlined_call_operand.vmem [shape: f32[104,128], index: 4, kind: output, shape index: {}]  }
   0x1   :  { %v59_v0 = vld [vmem:[%s657_s1 + $0x80] sm:$0xff]  ;;  %v60_v1 = vld [vmem:[%s657_s1 + $0x88] sm:$0xff]  ;;  %v61_v5 = vld [vmem:[%s657_s1 + $0x90] sm:$0xff] }
   0x2   :  { %v43_v2 = vld [vmem:[%s657_s1] sm:$0xff]  ;;  %v335_v3 = vpack.c.bf16 %v60_v1, %v59_v0  ;;  %v44_v4 = vld [vmem:[%s657_s1 + $0x8] sm:$0xff]  ;;  %v62_v6 = vld [vmem:[%s657_s1 + $0x98] sm:$0xff] }
   0x3   :  { %v337_v7 = vpack.c.bf16 %v44_v4, %v43_v2  ;;  %v339_v8 = vpack.c.bf16 %v62_v6, %v61_v5  ;;  %v45_v9 = vld [vmem:[%s657_s1 + $0x10] sm:$0xff]  ;;  %v46_v10 = vld [vmem:[%s657_s1 + $0x18] sm:$0xff]  ;;  %v63_v11 = vld [vmem:[%s657_s1 + $0xa0] sm:$0xff] }
   0x4   :  { %336 = vmatprep.subr.bf16.mxu0 %v335_v3  ;;  %367 = vmatprep.subr.bf16.mxu1 %v335_v3  ;;  %v64_v12 = vld [vmem:[%s657_s1 + $0xa8] sm:$0xff]  ;;  %v341_v13 = vpack.c.bf16 %v46_v10, %v45_v9  ;;  %v47_v15 = vld [vmem:[%s657_s1 + $0x20] sm:$0xff]  ;;  %v65_v17 = vld [vmem:[%s657_s1 + $0xb0] sm:$0xff] }
   0x5   :  { %338 = vmatpush3.bf16.msra.mxu0 %v337_v7  ;;  %375 = vmatpush3.bf16.msra.mxu1 %v337_v7  ;;  %v343_v14 = vpack.c.bf16 %v64_v12, %v63_v11  ;;  %v48_v16 = vld [vmem:[%s657_s1 + $0x28] sm:$0xff]  ;;  %v66_v18 = vld [vmem:[%s657_s1 + $0xb8] sm:$0xff]  ;;  %v49_v21 = vld [vmem:[%s657_s1 + $0x30] sm:$0xff] }
   0x6   :  { %340 = vmatprep.subr.bf16.mxu0 %v339_v8  ;;  %368 = vmatprep.subr.bf16.mxu1 %v339_v8  ;;  %v345_v19 = vpack.c.bf16 %v48_v16, %v47_v15  ;;  %v347_v20 = vpack.c.bf16 %v66_v18, %v65_v17  ;;  %v50_v22 = vld [vmem:[%s657_s1 + $0x38] sm:$0xff]  ;;  %v67_v23 = vld [vmem:[%s657_s1 + $0xc0] sm:$0xff]  ;;  %v68_v24 = vld [vmem:[%s657_s1 + $0xc8] sm:$0xff] }
   0x7   :  { %v18_v25 = vld [vmem:[%s658_s0 + $0x8] sm:$0xff]  ;;  %v32_v26 = vld [vmem:[%s658_s0 + $0x78] sm:$0xff]  ;;  %v349_v27 = vpack.c.bf16 %v50_v22, %v49_v21  ;;  %v351_v28 = vpack.c.bf16 %v68_v24, %v67_v23  ;;  %v51_v29 = vld [vmem:[%s657_s1 + $0x40] sm:$0xff] }
   0x8   :  { %146 = vmatprep.mubr.f32.mxu0 %v18_v25  ;;  %v52_v30 = vld [vmem:[%s657_s1 + $0x48] sm:$0xff]  ;;  %v69_v31 = vld [vmem:[%s657_s1 + $0xd0] sm:$0xff]  ;;  %v70_v32 = vld [vmem:[%s657_s1 + $0xd8] sm:$0xff]  ;;  %181 = vmatprep.mubr.f32.mxu1 %v32_v26 }
   0x9   :  { %342 = vmatpush3.bf16.msra.mxu0 %v341_v13  ;;  %376 = vmatpush3.bf16.msra.mxu1 %v341_v13  ;;  %v353_v33 = vpack.c.bf16 %v52_v30, %v51_v29  ;;  %v355_v34 = vpack.c.bf16 %v70_v32, %v69_v31  ;;  %v53_v35 = vld [vmem:[%s657_s1 + $0x50] sm:$0xff]  ;;  %v54_v36 = vld [vmem:[%s657_s1 + $0x58] sm:$0xff]  ;;  %v71_v37 = vld [vmem:[%s657_s1 + $0xe0] sm:$0xff] }
   0xa   :  { %344 = vmatprep.subr.bf16.mxu0 %v343_v14  ;;  %369 = vmatprep.subr.bf16.mxu1 %v343_v14  ;;  %v72_v38 = vld [vmem:[%s657_s1 + $0xe8] sm:$0xff]  ;;  %v357_v39 = vpack.c.bf16 %v54_v36, %v53_v35  ;;  %v55_v41 = vld [vmem:[%s657_s1 + $0x60] sm:$0xff]  ;;  %v73_v43 = vld [vmem:[%s657_s1 + $0xf0] sm:$0xff] }
   0xb   :  { %v359_v40 = vpack.c.bf16 %v72_v38, %v71_v37  ;;  %v56_v42 = vld [vmem:[%s657_s1 + $0x68] sm:$0xff]  ;;  %v74_v44 = vld [vmem:[%s657_s1 + $0xf8] sm:$0xff]  ;;  %v57_v47 = vld [vmem:[%s657_s1 + $0x70] sm:$0xff] }
   0xc   :  { %v361_v45 = vpack.c.bf16 %v56_v42, %v55_v41  ;;  %v363_v46 = vpack.c.bf16 %v74_v44, %v73_v43  ;;  %v58_v48 = vld [vmem:[%s657_s1 + $0x78] sm:$0xff]  ;;  %v17_v50 = vld [vmem:[%s658_s0] sm:$0xff]  ;;  %v31_v51 = vld [vmem:[%s658_s0 + $0x70] sm:$0xff] }
   0xd   :  { %346 = vmatpush3.bf16.msra.mxu0 %v345_v19  ;;  %377 = vmatpush3.bf16.msra.mxu1 %v345_v19  ;;  %v365_v49 = vpack.c.bf16 %v58_v48, %v57_v47  ;;  %v20_v52 = vld [vmem:[%s658_s0 + $0x18] sm:$0xff]  ;;  %v34_v53 = vld [vmem:[%s658_s0 + $0x88] sm:$0xff]  ;;  %v19_v54 = vld [vmem:[%s658_s0 + $0x10] sm:$0xff] }
   0xe   :  { %348 = vmatprep.subr.bf16.mxu0 %v347_v20  ;;  %370 = vmatprep.subr.bf16.mxu1 %v347_v20  ;;  %v33_v55 = vld [vmem:[%s658_s0 + $0x80] sm:$0xff]  ;;  %v22_v56 = vld [vmem:[%s658_s0 + $0x28] sm:$0xff]  ;;  %v36_v57 = vld [vmem:[%s658_s0 + $0x98] sm:$0xff] }
   0xf   :  { %v21_v58 = vld [vmem:[%s658_s0 + $0x20] sm:$0xff]  ;;  %v35_v59 = vld [vmem:[%s658_s0 + $0x90] sm:$0xff]  ;;  %v24_v60 = vld [vmem:[%s658_s0 + $0x38] sm:$0xff] }
  0x10   :  { %v38_v61 = vld [vmem:[%s658_s0 + $0xa8] sm:$0xff]  ;;  %v23_v62 = vld [vmem:[%s658_s0 + $0x30] sm:$0xff]  ;;  %v37_v63 = vld [vmem:[%s658_s0 + $0xa0] sm:$0xff] }
  0x11   :  { %350 = vmatpush3.bf16.msra.mxu0 %v349_v27  ;;  %378 = vmatpush3.bf16.msra.mxu1 %v349_v27  ;;  %v26_v0 = vld [vmem:[%s658_s0 + $0x48] sm:$0xff]  ;;  %v40_v1 = vld [vmem:[%s658_s0 + $0xb8] sm:$0xff]  ;;  %v25_v2 = vld [vmem:[%s658_s0 + $0x40] sm:$0xff] }
  0x12   :  { %352 = vmatprep.subr.bf16.mxu0 %v351_v28  ;;  %371 = vmatprep.subr.bf16.mxu1 %v351_v28  ;;  %v39_v3 = vld [vmem:[%s658_s0 + $0xb0] sm:$0xff]  ;;  %v28_v4 = vld [vmem:[%s658_s0 + $0x58] sm:$0xff]  ;;  %v42_v5 = vld [vmem:[%s658_s0 + $0xc8] sm:$0xff] }
  0x13   :  { %v27_v6 = vld [vmem:[%s658_s0 + $0x50] sm:$0xff]  ;;  %v41_v7 = vld [vmem:[%s658_s0 + $0xc0] sm:$0xff]  ;;  %v30_v8 = vld [vmem:[%s658_s0 + $0x68] sm:$0xff] }
  0x14   :  { %v29_v9 = vld [vmem:[%s658_s0 + $0x60] sm:$0xff] }
  0x15   :  { %354 = vmatpush3.bf16.msra.mxu0 %v353_v33  ;;  %379 = vmatpush3.bf16.msra.mxu1 %v353_v33  ;;  %v585_v12 = vld [vmem:[%s659_s2] ss:$0 sm:$0xff] }
  0x16   :  { %356 = vmatprep.subr.bf16.mxu0 %v355_v34  ;;  %372 = vmatprep.subr.bf16.mxu1 %v355_v34  ;;  %v590_v17 = vld [vmem:[%s660_s3] ss:$0 sm:$0xff] }
  0x19   :  { %358 = vmatpush3.bf16.msra.mxu0 %v357_v39  ;;  %380 = vmatpush3.bf16.msra.mxu1 %v357_v39 }
  0x1a   :  { %360 = vmatprep.subr.bf16.mxu0 %v359_v40  ;;  %373 = vmatprep.subr.bf16.mxu1 %v359_v40 }
  0x1d   :  { %362 = vmatpush3.bf16.msra.mxu0 %v361_v45  ;;  %381 = vmatpush3.bf16.msra.mxu1 %v361_v45 }
  0x1e   :  { %364 = vmatprep.subr.bf16.mxu0 %v363_v46  ;;  %374 = vmatprep.subr.bf16.mxu1 %v363_v46 }
  0x21   :  { %366 = vmatpush3.bf16.msra.mxu0 %v365_v49  ;;  %382 = vmatpush3.bf16.msra.mxu1 %v365_v49 }
  0x24   :  { %147 = vmatmul.mubr.f32.vlgmr.msra.gmra.mrb[0].mxu0 %v17_v50  ;;  %182 = vmatmul.mubr.f32.vlgmr.msra.gmra.mrb[0].mxu1 %v31_v51 }
  0x25   :  { %151 = vmatprep.mubr.f32.mxu0 %v20_v52  ;;  %186 = vmatprep.mubr.f32.mxu1 %v34_v53 }
  0x28   :  { %152 = vmatmul.mubr.f32.gmra.mrb[2].mxu0 %v19_v54  ;;  %187 = vmatmul.mubr.f32.gmra.mrb[2].mxu1 %v33_v55 }
  0x29   :  { %156 = vmatprep.mubr.f32.mxu0 %v22_v56  ;;  %191 = vmatprep.mubr.f32.mxu1 %v36_v57 }
  0x2c   :  { %157 = vmatmul.mubr.f32.gmra.mrb[4].mxu0 %v21_v58  ;;  %192 = vmatmul.mubr.f32.gmra.mrb[4].mxu1 %v35_v59 }
  0x2d   :  { %161 = vmatprep.mubr.f32.mxu0 %v24_v60  ;;  %196 = vmatprep.mubr.f32.mxu1 %v38_v61 }
  0x30   :  { %162 = vmatmul.mubr.f32.gmra.mrb[6].mxu0 %v23_v62  ;;  %197 = vmatmul.mubr.f32.gmra.mrb[6].mxu1 %v37_v63 }
  0x31   :  { %166 = vmatprep.mubr.f32.mxu0 %v26_v0  ;;  %201 = vmatprep.mubr.f32.mxu1 %v40_v1 }
  0x34   :  { %167 = vmatmul.mubr.f32.gmra.mrb[8].mxu0 %v25_v2  ;;  %202 = vmatmul.mubr.f32.gmra.mrb[8].mxu1 %v39_v3 }
  0x35   :  { %171 = vmatprep.mubr.f32.mxu0 %v28_v4  ;;  %206 = vmatprep.mubr.f32.mxu1 %v42_v5 }
  0x38   :  { %172 = vmatmul.mubr.f32.gmra.mrb[10].mxu0 %v27_v6  ;;  %207 = vmatmul.mubr.f32.gmra.mrb[10].mxu1 %v41_v7 }
  0x39   :  { %176 = vmatprep.mubr.f32.mxu0 %v30_v8 }
  0x3c   :  { %177 = vmatmul.mubr.f32.gmra.mrb[12].mxu0 %v29_v9 }
  0xf7   :  { %v296_v10 = vpop.f32.mrb[0].mxu0  ;;  %v317_v11 = vpop.f32.mrb[0].mxu1 }
  0xf8   :  { %v297_v13 = vpop.f32.mrb[1].mxu0  ;;  %v318_v14 = vpop.f32.mrb[1].mxu1 }
  0xf9   :  { %v298_v15 = vadd.f32 %v297_v13, %v296_v10  ;;  %v319_v16 = vadd.f32 %v318_v14, %v317_v11 }
  0xfb   :  { %v149_v18 = vadd.f32 %v298_v15, %v585_v12  ;;  %v184_v19 = vadd.f32 %v319_v16, %v585_v12  ;;  %v299_v20 = vpop.f32.mrb[2].mxu0  ;;  %v320_v21 = vpop.f32.mrb[2].mxu1 }
  0xfc   :  { %v300_v22 = vpop.f32.mrb[3].mxu0  ;;  %v321_v23 = vpop.f32.mrb[3].mxu1 }
  0xfd   :  { %v219_v24 = vmul.f32 %v590_v17, %v149_v18  ;;  %v226_v25 = vmul.f32 %v590_v17, %v184_v19  ;;  %v301_v26 = vadd.f32 %v300_v22, %v299_v20  ;;  %v322_v27 = vadd.f32 %v321_v23, %v320_v21 }
  0xff   :  { %v232_v28 = vmax.f32 %v149_v18, %v219_v24  ;;  %v239_v29 = vmax.f32 %v184_v19, %v226_v25  ;;  %v154_v30 = vadd.f32 %v301_v26, %v585_v12  ;;  %v189_v31 = vadd.f32 %v322_v27, %v585_v12  ;;  %v302_v32 = vpop.f32.mrb[4].mxu0  ;;  %v323_v33 = vpop.f32.mrb[4].mxu1 }
 0x100   :  { %v303_v34 = vpop.f32.mrb[5].mxu0  ;;  %v324_v35 = vpop.f32.mrb[5].mxu1 }
 0x101   :  { %245 = vst [vmem:[%s661_s4] sm:$0xff] %v232_v28  ;;  %252 = vst [vmem:[%s661_s4 + $0x38] sm:$0xff] %v239_v29  ;;  %v220_v36 = vmul.f32 %v590_v17, %v154_v30  ;;  %v227_v37 = vmul.f32 %v590_v17, %v189_v31  ;;  %v304_v38 = vadd.f32 %v303_v34, %v302_v32 }
 0x102   :  { %v325_v39 = vadd.f32 %v324_v35, %v323_v33 }
 0x103   :  { %v233_v40 = vmax.f32 %v154_v30, %v220_v36  ;;  %v240_v41 = vmax.f32 %v189_v31, %v227_v37  ;;  %v159_v42 = vadd.f32 %v304_v38, %v585_v12  ;;  %v305_v44 = vpop.f32.mrb[6].mxu0  ;;  %v326_v45 = vpop.f32.mrb[6].mxu1 }
 0x104   :  { %v194_v43 = vadd.f32 %v325_v39, %v585_v12  ;;  %v306_v46 = vpop.f32.mrb[7].mxu0  ;;  %v327_v47 = vpop.f32.mrb[7].mxu1 }
 0x105   :  { %246 = vst [vmem:[%s661_s4 + $0x8] sm:$0xff] %v233_v40  ;;  %253 = vst [vmem:[%s661_s4 + $0x40] sm:$0xff] %v240_v41  ;;  %v221_v48 = vmul.f32 %v590_v17, %v159_v42  ;;  %v307_v50 = vadd.f32 %v306_v46, %v305_v44  ;;  %v328_v51 = vadd.f32 %v327_v47, %v326_v45 }
 0x106   :  { %v228_v49 = vmul.f32 %v590_v17, %v194_v43 }
 0x107   :  { %v234_v52 = vmax.f32 %v159_v42, %v221_v48  ;;  %v164_v54 = vadd.f32 %v307_v50, %v585_v12  ;;  %v199_v55 = vadd.f32 %v328_v51, %v585_v12  ;;  %v308_v56 = vpop.f32.mrb[8].mxu0  ;;  %v329_v57 = vpop.f32.mrb[8].mxu1 }
 0x108   :  { %v241_v53 = vmax.f32 %v194_v43, %v228_v49  ;;  %v309_v58 = vpop.f32.mrb[9].mxu0  ;;  %v330_v59 = vpop.f32.mrb[9].mxu1 }
 0x109   :  { %247 = vst [vmem:[%s661_s4 + $0x10] sm:$0xff] %v234_v52  ;;  %v222_v60 = vmul.f32 %v590_v17, %v164_v54  ;;  %v229_v61 = vmul.f32 %v590_v17, %v199_v55  ;;  %v310_v62 = vadd.f32 %v309_v58, %v308_v56  ;;  %v331_v63 = vadd.f32 %v330_v59, %v329_v57 }
 0x10a   :  { %254 = vst [vmem:[%s661_s4 + $0x48] sm:$0xff] %v241_v53 }
 0x10b   :  { %v235_v0 = vmax.f32 %v164_v54, %v222_v60  ;;  %v242_v1 = vmax.f32 %v199_v55, %v229_v61  ;;  %v169_v2 = vadd.f32 %v310_v62, %v585_v12  ;;  %v204_v3 = vadd.f32 %v331_v63, %v585_v12  ;;  %v311_v4 = vpop.f32.mrb[10].mxu0  ;;  %v332_v5 = vpop.f32.mrb[10].mxu1 }
 0x10c   :  { %v312_v6 = vpop.f32.mrb[11].mxu0  ;;  %v333_v7 = vpop.f32.mrb[11].mxu1 }
 0x10d   :  { %248 = vst [vmem:[%s661_s4 + $0x18] sm:$0xff] %v235_v0  ;;  %255 = vst [vmem:[%s661_s4 + $0x50] sm:$0xff] %v242_v1  ;;  %v223_v8 = vmul.f32 %v590_v17, %v169_v2  ;;  %v230_v9 = vmul.f32 %v590_v17, %v204_v3  ;;  %v313_v10 = vadd.f32 %v312_v6, %v311_v4 }
 0x10e   :  { %v334_v11 = vadd.f32 %v333_v7, %v332_v5 }
 0x10f   :  { %v236_v13 = vmax.f32 %v169_v2, %v223_v8  ;;  %v243_v14 = vmax.f32 %v204_v3, %v230_v9  ;;  %v174_v15 = vadd.f32 %v313_v10, %v585_v12  ;;  %v314_v18 = vpop.f32.mrb[12].mxu0 }
 0x110   :  { %v209_v16 = vadd.f32 %v334_v11, %v585_v12  ;;  %v315_v19 = vpop.f32.mrb[13].mxu0 }
 0x111   :  { %249 = vst [vmem:[%s661_s4 + $0x20] sm:$0xff] %v236_v13  ;;  %256 = vst [vmem:[%s661_s4 + $0x58] sm:$0xff] %v243_v14  ;;  %v224_v20 = vmul.f32 %v590_v17, %v174_v15  ;;  %v316_v22 = vadd.f32 %v315_v19, %v314_v18 }
 0x112   :  { %v231_v21 = vmul.f32 %v590_v17, %v209_v16 }
 0x113   :  { %v237_v23 = vmax.f32 %v174_v15, %v224_v20  ;;  %v179_v25 = vadd.f32 %v316_v22, %v585_v12 }
 0x114   :  { %v244_v24 = vmax.f32 %v209_v16, %v231_v21 }
 0x115   :  { %250 = vst [vmem:[%s661_s4 + $0x28] sm:$0xff] %v237_v23  ;;  %v225_v26 = vmul.f32 %v590_v17, %v179_v25 }
 0x116   :  { %257 = vst [vmem:[%s661_s4 + $0x60] sm:$0xff] %v244_v24 }
 0x117   :  { %v238_v27 = vmax.f32 %v179_v25, %v225_v26 }
 0x119   :  { %251 = vst [vmem:[%s661_s4 + $0x30] sm:$0xff] %v238_v27 }

// kernel: inception_forward.13
= control target key start
LH: loop header
LB: loop body
LE: loop exit
PB: predicated region body
PF: predicated region fallthrough
CT: control target
= control target key end

     0   :  { %vm142_vm0 = vcmask 400384   ;;  %vm859_vm1 = vcmask 130112   ;;  %vm866_vm2 = vcmask 195712   ;;  %vm873_vm3 = vcmask 261312   ;;  %s2935_s0 = inlined_call_operand.vmem [shape: f32[8,128,49], index: 0, kind: input, shape index: {}]   ;;  %s2936_s1 = inlined_call_operand.vmem [shape: f32[128,384], index: 1, kind: input, shape index: {}]   ;;  %s2937_s2 = inlined_call_operand.vmem [shape: f32[1,384], index: 2, kind: input, shape index: {}]   ;;  %s2938_s3 = inlined_call_operand.vmem [shape: f32[8,384], index: 3, kind: output, shape index: {}]  }
   0x1   :  { %v30_v0 = vld [vmem:[%s2935_s0 + $0x80] sm:$0xff]  ;;  %v31_v2 = vld [vmem:[%s2935_s0 + $0x88] sm:$0xff]  ;;  %v32_v8 = vld [vmem:[%s2935_s0 + $0x90] sm:$0xff]  ;;  %vm880_vm4 = vcmask 326912   ;;  %vm887_vm5 = vcmask 392512   ;;  %vm894_vm6 = vcmask 458112  }
   0x2   :  { %v14_v1 = vld [vmem:[%s2935_s0] sm:$0xff]  ;;  %v191_v3 = vsel %vm142_vm0, %v30_v0, 0.0  ;;  %v15_v5 = vld [vmem:[%s2935_s0 + $0x8] sm:$0xff]  ;;  %v194_v6 = vsel %vm142_vm0, %v31_v2, 0.0  ;;  %v16_v9 = vld [vmem:[%s2935_s0 + $0x10] sm:$0xff]  ;;  %v197_v10 = vsel %vm142_vm0, %v32_v8, 0.0 }
   0x3   :  { %v143_v4 = vsel %vm142_vm0, %v14_v1, 0.0  ;;  %192 = vadd.xlane.f32.xlu1 %v191_v3  ;;  %v146_v7 = vsel %vm142_vm0, %v15_v5, 0.0  ;;  %v149_v11 = vsel %vm142_vm0, %v16_v9, 0.0  ;;  %v47_v12 = vld [vmem:[%s2935_s0 + $0x108] sm:$0xff]  ;;  %v46_v13 = vld [vmem:[%s2935_s0 + $0x100] sm:$0xff]  ;;  %v33_v16 = vld [vmem:[%s2935_s0 + $0x98] sm:$0xff] }
   0x4   :  { %144 = vadd.xlane.f32.xlu0 %v143_v4  ;;  %v242_v14 = vsel %vm142_vm0, %v47_v12, 0.0  ;;  %v239_v15 = vsel %vm142_vm0, %v46_v13, 0.0  ;;  %v17_v17 = vld [vmem:[%s2935_s0 + $0x18] sm:$0xff]  ;;  %v200_v18 = vsel %vm142_vm0, %v33_v16, 0.0  ;;  %v62_v20 = vld [vmem:[%s2935_s0 + $0x180] sm:$0xff]  ;;  %v48_v21 = vld [vmem:[%s2935_s0 + $0x110] sm:$0xff] }
   0x5   :  { %v152_v19 = vsel %vm142_vm0, %v17_v17, 0.0  ;;  %v287_v22 = vsel %vm142_vm0, %v62_v20, 0.0  ;;  %v245_v23 = vsel %vm142_vm0, %v48_v21, 0.0  ;;  %v18_v24 = vld [vmem:[%s2935_s0 + $0x20] sm:$0xff]  ;;  %v63_v25 = vld [vmem:[%s2935_s0 + $0x188] sm:$0xff]  ;;  %v49_v28 = vld [vmem:[%s2935_s0 + $0x118] sm:$0xff] }
   0x6   :  { %v155_v26 = vsel %vm142_vm0, %v18_v24, 0.0  ;;  %v290_v27 = vsel %vm142_vm0, %v63_v25, 0.0  ;;  %v34_v29 = vld [vmem:[%s2935_s0 + $0xa0] sm:$0xff]  ;;  %v248_v30 = vsel %vm142_vm0, %v49_v28, 0.0  ;;  %v64_v33 = vld [vmem:[%s2935_s0 + $0x190] sm:$0xff]  ;;  %v19_v36 = vld [vmem:[%s2935_s0 + $0x28] sm:$0xff] }
   0x7   :  { %195 = vadd.xlane.f32.xlu1 %v194_v6  ;;  %v203_v31 = vsel %vm142_vm0, %v34_v29, 0.0  ;;  %v78_v32 = vld [vmem:[%s2935_s0 + $0x200] sm:$0xff]  ;;  %v293_v35 = vsel %vm142_vm0, %v64_v33, 0.0  ;;  %v79_v37 = vld [vmem:[%s2935_s0 + $0x208] sm:$0xff]  ;;  %v158_v38 = vsel %vm142_vm0, %v19_v36, 0.0  ;;  %v80_v44 = vld [vmem:[%s2935_s0 + $0x210] sm:$0xff] }
   0x8   :  { %147 = vadd.xlane.f32.xlu0 %v146_v7  ;;  %v335_v34 = vsel %vm142_vm0, %v78_v32, 0.0  ;;  %v338_v39 = vsel %vm142_vm0, %v79_v37, 0.0  ;;  %v50_v40 = vld [vmem:[%s2935_s0 + $0x120] sm:$0xff]  ;;  %v35_v41 = vld [vmem:[%s2935_s0 + $0xa8] sm:$0xff]  ;;  %v65_v45 = vld [vmem:[%s2935_s0 + $0x198] sm:$0xff]  ;;  %v341_v46 = vsel %vm142_vm0, %v80_v44, 0.0 }
   0x9   :  { %v251_v42 = vsel %vm142_vm0, %v50_v40, 0.0  ;;  %v206_v43 = vsel %vm142_vm0, %v35_v41, 0.0  ;;  %v296_v47 = vsel %vm142_vm0, %v65_v45, 0.0  ;;  %v95_v48 = vld [vmem:[%s2935_s0 + $0x288] sm:$0xff]  ;;  %v94_v49 = vld [vmem:[%s2935_s0 + $0x280] sm:$0xff]  ;;  %v36_v52 = vld [vmem:[%s2935_s0 + $0xb0] sm:$0xff] }
   0xa   :  { %v386_v50 = vsel %vm142_vm0, %v95_v48, 0.0  ;;  %v383_v51 = vsel %vm142_vm0, %v94_v49, 0.0  ;;  %v20_v53 = vld [vmem:[%s2935_s0 + $0x30] sm:$0xff]  ;;  %v209_v54 = vsel %vm142_vm0, %v36_v52, 0.0  ;;  %v66_v56 = vld [vmem:[%s2935_s0 + $0x1a0] sm:$0xff]  ;;  %v51_v57 = vld [vmem:[%s2935_s0 + $0x128] sm:$0xff] }
   0xb   :  { %198 = vadd.xlane.f32.xlu1 %v197_v10  ;;  %v161_v55 = vsel %vm142_vm0, %v20_v53, 0.0  ;;  %v299_v58 = vsel %vm142_vm0, %v66_v56, 0.0  ;;  %v254_v59 = vsel %vm142_vm0, %v51_v57, 0.0  ;;  %v96_v60 = vld [vmem:[%s2935_s0 + $0x290] sm:$0xff]  ;;  %v81_v61 = vld [vmem:[%s2935_s0 + $0x218] sm:$0xff]  ;;  %v111_v0 = vld [vmem:[%s2935_s0 + $0x308] sm:$0xff] }
   0xc   :  { %150 = vadd.xlane.f32.xlu0 %v149_v11  ;;  %v389_v62 = vsel %vm142_vm0, %v96_v60, 0.0  ;;  %v344_v63 = vsel %vm142_vm0, %v81_v61, 0.0  ;;  %v110_v1 = vld [vmem:[%s2935_s0 + $0x300] sm:$0xff]  ;;  %v434_v2 = vsel %vm142_vm0, %v111_v0, 0.0  ;;  %v37_v4 = vld [vmem:[%s2935_s0 + $0xb8] sm:$0xff]  ;;  %v67_v8 = vld [vmem:[%s2935_s0 + $0x1a8] sm:$0xff] }
   0xd   :  { %v431_v3 = vsel %vm142_vm0, %v110_v1, 0.0  ;;  %v21_v5 = vld [vmem:[%s2935_s0 + $0x38] sm:$0xff]  ;;  %v212_v6 = vsel %vm142_vm0, %v37_v4, 0.0  ;;  %v52_v9 = vld [vmem:[%s2935_s0 + $0x130] sm:$0xff]  ;;  %v302_v10 = vsel %vm142_vm0, %v67_v8, 0.0  ;;  %v82_v13 = vld [vmem:[%s2935_s0 + $0x220] sm:$0xff] }
   0xe   :  { %v164_v7 = vsel %vm142_vm0, %v21_v5, 0.0  ;;  %v257_v11 = vsel %vm142_vm0, %v52_v9, 0.0  ;;  %v97_v12 = vld [vmem:[%s2935_s0 + $0x298] sm:$0xff]  ;;  %v126_v16 = vld [vmem:[%s2935_s0 + $0x380] sm:$0xff]  ;;  %v112_v17 = vld [vmem:[%s2935_s0 + $0x310] sm:$0xff]  ;;  %vm901_vm7 = vcmask 523712  }
   0xf   :  { %243 = vadd.xlane.f32.xlu1 %v242_v14  ;;  %v392_v14 = vsel %vm142_vm0, %v97_v12, 0.0  ;;  %v22_v20 = vld [vmem:[%s2935_s0 + $0x40] sm:$0xff]  ;;  %v127_v21 = vld [vmem:[%s2935_s0 + $0x388] sm:$0xff]  ;;  %v53_v24 = vld [vmem:[%s2935_s0 + $0x138] sm:$0xff]  ;;  %vm908_vm8 = vcmask 589312   ;;  %vm915_vm9 = vcmask 654912  }
  0x10   :  { %240 = vadd.xlane.f32.xlu0 %v239_v15  ;;  %v347_v15 = vsel %vm142_vm0, %v82_v13, 0.0  ;;  %v38_v25 = vld [vmem:[%s2935_s0 + $0xc0] sm:$0xff]  ;;  %v83_v28 = vld [vmem:[%s2935_s0 + $0x228] sm:$0xff]  ;;  %v68_v29 = vld [vmem:[%s2935_s0 + $0x1b0] sm:$0xff]  ;;  %vm922_vm10 = vcmask 720512   ;;  %vm1821_vm11 = vmmov 0  }
  0x11   :  { %v113_v32 = vld [vmem:[%s2935_s0 + $0x318] sm:$0xff]  ;;  %v98_v33 = vld [vmem:[%s2935_s0 + $0x2a0] sm:$0xff]  ;;  %v23_v36 = vld [vmem:[%s2935_s0 + $0x48] sm:$0xff]  ;;  %vm929_vm12 = vcmask 786112   ;;  %vm936_vm13 = vcmask 851712   ;;  %vm943_vm14 = vcmask 917312  }
  0x12   :  { %v128_v37 = vld [vmem:[%s2935_s0 + $0x390] sm:$0xff]  ;;  %v54_v40 = vld [vmem:[%s2935_s0 + $0x140] sm:$0xff]  ;;  %v39_v41 = vld [vmem:[%s2935_s0 + $0xc8] sm:$0xff]  ;;  %vm950_vm15 = vcmask 982912  }
  0x13   :  { %201 = vadd.xlane.f32.xlu1 %v200_v18  ;;  %v479_v18 = vsel %vm142_vm0, %v126_v16, 0.0  ;;  %v84_v44 = vld [vmem:[%s2935_s0 + $0x230] sm:$0xff]  ;;  %v69_v45 = vld [vmem:[%s2935_s0 + $0x1b8] sm:$0xff]  ;;  %v114_v48 = vld [vmem:[%s2935_s0 + $0x320] sm:$0xff] }
  0x14   :  { %153 = vadd.xlane.f32.xlu0 %v152_v19  ;;  %v437_v19 = vsel %vm142_vm0, %v112_v17, 0.0  ;;  %v99_v49 = vld [vmem:[%s2935_s0 + $0x2a8] sm:$0xff]  ;;  %v24_v52 = vld [vmem:[%s2935_s0 + $0x50] sm:$0xff]  ;;  %v129_v53 = vld [vmem:[%s2935_s0 + $0x398] sm:$0xff] }
  0x15   :  { %v55_v56 = vld [vmem:[%s2935_s0 + $0x148] sm:$0xff]  ;;  %v40_v57 = vld [vmem:[%s2935_s0 + $0xd0] sm:$0xff]  ;;  %v85_v60 = vld [vmem:[%s2935_s0 + $0x238] sm:$0xff] }
  0x16   :  { %v70_v61 = vld [vmem:[%s2935_s0 + $0x1c0] sm:$0xff]  ;;  %v115_v0 = vld [vmem:[%s2935_s0 + $0x328] sm:$0xff]  ;;  %v100_v1 = vld [vmem:[%s2935_s0 + $0x2b0] sm:$0xff] }
  0x17   :  { %288 = vadd.xlane.f32.xlu1 %v287_v22  ;;  %v167_v22 = vsel %vm142_vm0, %v22_v20, 0.0  ;;  %v25_v4 = vld [vmem:[%s2935_s0 + $0x58] sm:$0xff]  ;;  %v130_v5 = vld [vmem:[%s2935_s0 + $0x3a0] sm:$0xff]  ;;  %v56_v8 = vld [vmem:[%s2935_s0 + $0x150] sm:$0xff] }
  0x18   :  { %246 = vadd.xlane.f32.xlu0 %v245_v23  ;;  %v482_v23 = vsel %vm142_vm0, %v127_v21, 0.0  ;;  %v41_v9 = vld [vmem:[%s2935_s0 + $0xd8] sm:$0xff]  ;;  %v86_v12 = vld [vmem:[%s2935_s0 + $0x240] sm:$0xff]  ;;  %v71_v13 = vld [vmem:[%s2935_s0 + $0x1c8] sm:$0xff] }
  0x19   :  { %v314_v16 = vsel %vm142_vm0, %v71_v13, 0.0 }
  0x1b   :  { %156 = vadd.xlane.f32.xlu1 %v155_v26  ;;  %v260_v26 = vsel %vm142_vm0, %v53_v24, 0.0 }
  0x1c   :  { %291 = vadd.xlane.f32.xlu0 %v290_v27  ;;  %v215_v27 = vsel %vm142_vm0, %v38_v25, 0.0 }
  0x1f   :  { %249 = vadd.xlane.f32.xlu1 %v248_v30  ;;  %v350_v30 = vsel %vm142_vm0, %v83_v28, 0.0 }
  0x20   :  { %204 = vadd.xlane.f32.xlu0 %v203_v31  ;;  %v305_v31 = vsel %vm142_vm0, %v68_v29, 0.0 }
  0x23   :  { %336 = vadd.xlane.f32.xlu1 %v335_v34  ;;  %v440_v34 = vsel %vm142_vm0, %v113_v32, 0.0 }
  0x24   :  { %294 = vadd.xlane.f32.xlu0 %v293_v35  ;;  %v395_v35 = vsel %vm142_vm0, %v98_v33, 0.0 }
  0x27   :  { %159 = vadd.xlane.f32.xlu1 %v158_v38  ;;  %v170_v38 = vsel %vm142_vm0, %v23_v36, 0.0 }
  0x28   :  { %339 = vadd.xlane.f32.xlu0 %v338_v39  ;;  %v485_v39 = vsel %vm142_vm0, %v128_v37, 0.0 }
  0x2b   :  { %252 = vadd.xlane.f32.xlu1 %v251_v42  ;;  %v263_v42 = vsel %vm142_vm0, %v54_v40, 0.0  ;;  %v42_v40 = vld [vmem:[%s2935_s0 + $0xe0] sm:$0xff] }
  0x2c   :  { %207 = vadd.xlane.f32.xlu0 %v206_v43  ;;  %v218_v43 = vsel %vm142_vm0, %v39_v41, 0.0 }
  0x2f   :  { %342 = vadd.xlane.f32.xlu1 %v341_v46  ;;  %v353_v46 = vsel %vm142_vm0, %v84_v44, 0.0 }
  0x30   :  { %297 = vadd.xlane.f32.xlu0 %v296_v47  ;;  %v308_v47 = vsel %vm142_vm0, %v69_v45, 0.0 }
  0x33   :  { %387 = vadd.xlane.f32.xlu1 %v386_v50  ;;  %v443_v50 = vsel %vm142_vm0, %v114_v48, 0.0 }
  0x34   :  { %384 = vadd.xlane.f32.xlu0 %v383_v51  ;;  %v398_v51 = vsel %vm142_vm0, %v99_v49, 0.0  ;;  %v227_v49 = vsel %vm142_vm0, %v42_v40, 0.0 }
  0x37   :  { %210 = vadd.xlane.f32.xlu1 %v209_v54  ;;  %v173_v54 = vsel %vm142_vm0, %v24_v52, 0.0 }
  0x38   :  { %162 = vadd.xlane.f32.xlu0 %v161_v55  ;;  %v488_v55 = vsel %vm142_vm0, %v129_v53, 0.0 }
  0x3b   :  { %300 = vadd.xlane.f32.xlu1 %v299_v58  ;;  %v266_v58 = vsel %vm142_vm0, %v55_v56, 0.0 }
  0x3c   :  { %255 = vadd.xlane.f32.xlu0 %v254_v59  ;;  %v221_v59 = vsel %vm142_vm0, %v40_v57, 0.0 }
  0x3f   :  { %390 = vadd.xlane.f32.xlu1 %v389_v62  ;;  %v356_v62 = vsel %vm142_vm0, %v85_v60, 0.0 }
  0x40   :  { %345 = vadd.xlane.f32.xlu0 %v344_v63  ;;  %v311_v63 = vsel %vm142_vm0, %v70_v61, 0.0 }
  0x43   :  { %435 = vadd.xlane.f32.xlu1 %v434_v2  ;;  %v446_v2 = vsel %vm142_vm0, %v115_v0, 0.0 }
  0x44   :  { %432 = vadd.xlane.f32.xlu0 %v431_v3  ;;  %v401_v3 = vsel %vm142_vm0, %v100_v1, 0.0 }
  0x47   :  { %213 = vadd.xlane.f32.xlu1 %v212_v6  ;;  %v176_v6 = vsel %vm142_vm0, %v25_v4, 0.0  ;;  %v102_v4 = vld [vmem:[%s2935_s0 + $0x2c0] sm:$0xff] }
  0x48   :  { %165 = vadd.xlane.f32.xlu0 %v164_v7  ;;  %v491_v7 = vsel %vm142_vm0, %v130_v5, 0.0 }
  0x4b   :  { %303 = vadd.xlane.f32.xlu1 %v302_v10  ;;  %v269_v10 = vsel %vm142_vm0, %v56_v8, 0.0 }
  0x4c   :  { %258 = vadd.xlane.f32.xlu0 %v257_v11  ;;  %v224_v11 = vsel %vm142_vm0, %v41_v9, 0.0 }
  0x4f   :  { %393 = vadd.xlane.f32.xlu1 %v392_v14  ;;  %v705_v14 = vlaneseq }
  0x50   :  { %348 = vadd.xlane.f32.xlu0 %v347_v15  ;;  %v359_v15 = vsel %vm142_vm0, %v86_v12, 0.0 }
  0x51   :  { %v2130_v17 = vand.u32 127, %v705_v14  ;;  %v2138_v20 = vshrl.u32 %v705_v14, 7 }
  0x53   :  { %480 = vadd.xlane.f32.xlu1 %v479_v18  ;;  %v116_v18 = vld [vmem:[%s2935_s0 + $0x330] sm:$0xff]  ;;  %v854_v21 = vadd.s32 4294967288, %v2130_v17  ;;  %v2151_v28 = vsub.s32 %v2130_v17, %v2138_v20 }
  0x54   :  { %438 = vadd.xlane.f32.xlu0 %v437_v19  ;;  %v101_v19 = vld [vmem:[%s2935_s0 + $0x2b8] sm:$0xff]  ;;  %v449_v24 = vsel %vm142_vm0, %v116_v18, 0.0 }
  0x55   :  { %v404_v25 = vsel %vm142_vm0, %v101_v19, 0.0  ;;  %v2155_v32 = vsub.s32 %v854_v21, %v2138_v20  ;;  %v875_v21 = vadd.s32 4294967264, %v2130_v17 }
  0x57   :  { %168 = vadd.xlane.f32.xlu1 %v167_v22 }
  0x58   :  { %483 = vadd.xlane.f32.xlu0 %v482_v23 }
  0x5b   :  { %261 = vadd.xlane.f32.xlu1 %v260_v26  ;;  %v26_v26 = vld [vmem:[%s2935_s0 + $0x60] sm:$0xff] }
  0x5c   :  { %216 = vadd.xlane.f32.xlu0 %v215_v27  ;;  %v131_v27 = vld [vmem:[%s2935_s0 + $0x3a8] sm:$0xff] }
  0x5d   :  { %v494_v36 = vsel %vm142_vm0, %v131_v27, 0.0 }
  0x5f   :  { %351 = vadd.xlane.f32.xlu1 %v350_v30  ;;  %v861_v30 = vadd.s32 4294967280, %v2130_v17 }
  0x60   :  { %306 = vadd.xlane.f32.xlu0 %v305_v31 }
  0x63   :  { %441 = vadd.xlane.f32.xlu1 %v440_v34 }
  0x64   :  { %396 = vadd.xlane.f32.xlu0 %v395_v35  ;;  %v179_v35 = vsel %vm142_vm0, %v26_v26, 0.0 }
  0x67   :  { %171 = vadd.xlane.f32.xlu1 %v170_v38 }
  0x68   :  { %486 = vadd.xlane.f32.xlu0 %v485_v39  ;;  %v57_v39 = vld [vmem:[%s2935_s0 + $0x158] sm:$0xff] }
  0x69   :  { %v272_v48 = vsel %vm142_vm0, %v57_v39, 0.0 }
  0x6b   :  { %264 = vadd.xlane.f32.xlu1 %v263_v42  ;;  %v2167_v42 = vsub.s32 %v861_v30, %v2138_v20  ;;  %v58_v30 = vld [vmem:[%s2935_s0 + $0x160] sm:$0xff] }
  0x6c   :  { %219 = vadd.xlane.f32.xlu0 %v218_v43 }
  0x6f   :  { %354 = vadd.xlane.f32.xlu1 %v353_v46 }
  0x70   :  { %309 = vadd.xlane.f32.xlu0 %v308_v47 }
  0x73   :  { %444 = vadd.xlane.f32.xlu1 %v443_v50 }
  0x74   :  { %399 = vadd.xlane.f32.xlu0 %v398_v51 }
  0x77   :  { %174 = vadd.xlane.f32.xlu1 %v173_v54  ;;  %v87_v54 = vld [vmem:[%s2935_s0 + $0x248] sm:$0xff] }
  0x78   :  { %489 = vadd.xlane.f32.xlu0 %v488_v55  ;;  %v72_v55 = vld [vmem:[%s2935_s0 + $0x1d0] sm:$0xff]  ;;  %v362_v61 = vsel %vm142_vm0, %v87_v54, 0.0 }
  0x7b   :  { %267 = vadd.xlane.f32.xlu1 %v266_v58  ;;  %v868_v58 = vadd.s32 4294967272, %v2130_v17 }
  0x7c   :  { %222 = vadd.xlane.f32.xlu0 %v221_v59 }
  0x7f   :  { %357 = vadd.xlane.f32.xlu1 %v356_v62  ;;  %v317_v62 = vsel %vm142_vm0, %v72_v55, 0.0 }
  0x80   :  { %312 = vadd.xlane.f32.xlu0 %v311_v63 }
  0x83   :  { %447 = vadd.xlane.f32.xlu1 %v446_v2 }
  0x84   :  { %402 = vadd.xlane.f32.xlu0 %v401_v3  ;;  %v117_v3 = vld [vmem:[%s2935_s0 + $0x338] sm:$0xff] }
  0x87   :  { %177 = vadd.xlane.f32.xlu1 %v176_v6 }
  0x88   :  { %492 = vadd.xlane.f32.xlu0 %v491_v7  ;;  %v2198_v7 = vsub.s32 %v868_v58, %v2138_v20  ;;  %v103_v58 = vld [vmem:[%s2935_s0 + $0x2c8] sm:$0xff] }
  0x8b   :  { %270 = vadd.xlane.f32.xlu1 %v269_v10  ;;  %v452_v10 = vsel %vm142_vm0, %v117_v3, 0.0 }
  0x8c   :  { %225 = vadd.xlane.f32.xlu0 %v224_v11  ;;  %v407_v11 = vsel %vm142_vm0, %v102_v4, 0.0 }
  0x8f   :  { %360 = vadd.xlane.f32.xlu1 %v359_v15  ;;  %v27_v15 = vld [vmem:[%s2935_s0 + $0x68] sm:$0xff] }
  0x90   :  { %315 = vadd.xlane.f32.xlu0 %v314_v16  ;;  %v193_v22 = vpop.xlane.xlu1 %192  ;;  %v132_v16 = vld [vmem:[%s2935_s0 + $0x3b0] sm:$0xff] }
  0x91   :  { %v145_v23 = vpop.xlane.xlu0 %144  ;;  %v543_v29 = vmul.f32 0.020408163, %v193_v22 }
  0x92   :  { %v527_v31 = vmul.f32 0.020408163, %v145_v23 }
  0x93   :  { %450 = vadd.xlane.f32.xlu1 %v449_v24  ;;  %v962_v41 = vrot.slane %v543_v29, %v2151_v28  ;;  %v182_v24 = vsel %vm142_vm0, %v27_v15, 0.0 }
  0x94   :  { %405 = vadd.xlane.f32.xlu0 %v404_v25  ;;  %v196_v33 = vpop.xlane.xlu1 %195  ;;  %v853_v43 = vrot.slane %v527_v31, %v2151_v28  ;;  %v497_v25 = vsel %vm142_vm0, %v132_v16, 0.0  ;;  %v43_v31 = vld [vmem:[%s2935_s0 + $0xe8] sm:$0xff] }
  0x95   :  { %v148_v34 = vpop.xlane.xlu0 %147  ;;  %v544_v37 = vmul.f32 0.020408163, %v196_v33  ;;  %v230_v39 = vsel %vm142_vm0, %v43_v31, 0.0 }
  0x96   :  { %v528_v38 = vmul.f32 0.020408163, %v148_v34 }
  0x97   :  { %v966_v44 = vrot.slane %v544_v37, %v2155_v32  ;;  %180 = vadd.xlane.f32.xlu1 %v179_v35  ;;  %v2224_v35 = vsub.s32 %v875_v21, %v2138_v20  ;;  %v44_v21 = vld [vmem:[%s2935_s0 + $0xf0] sm:$0xff] }
  0x98   :  { %v858_v45 = vrot.slane %v528_v38, %v2155_v32  ;;  %495 = vadd.xlane.f32.xlu0 %v494_v36  ;;  %v199_v46 = vpop.xlane.xlu1 %198  ;;  %v275_v38 = vsel %vm142_vm0, %v58_v30, 0.0 }
  0x99   :  { %v151_v47 = vpop.xlane.xlu0 %150  ;;  %v967_v50 = vsel %vm859_vm1, %v966_v44, %v962_v41  ;;  %v545_v52 = vmul.f32 0.020408163, %v199_v46  ;;  %v88_v44 = vld [vmem:[%s2935_s0 + $0x250] sm:$0xff] }
  0x9a   :  { %v860_v51 = vsel %vm859_vm1, %v858_v45, %v853_v43  ;;  %v529_v53 = vmul.f32 0.020408163, %v151_v47  ;;  %v73_v45 = vld [vmem:[%s2935_s0 + $0x1d8] sm:$0xff] }
  0x9b   :  { %v971_v56 = vrot.slane %v545_v52, %v2167_v42  ;;  %273 = vadd.xlane.f32.xlu1 %v272_v48  ;;  %v320_v52 = vsel %vm142_vm0, %v73_v45, 0.0 }
  0x9c   :  { %v865_v57 = vrot.slane %v529_v53, %v2167_v42  ;;  %228 = vadd.xlane.f32.xlu0 %v227_v49  ;;  %v244_v59 = vpop.xlane.xlu1 %243 }
  0x9d   :  { %v241_v60 = vpop.xlane.xlu0 %240  ;;  %v972_v63 = vsel %vm866_vm2, %v971_v56, %v967_v50  ;;  %v560_v1 = vmul.f32 0.020408163, %v244_v59 }
  0x9e   :  { %v867_v0 = vsel %vm866_vm2, %v865_v57, %v860_v51  ;;  %v559_v2 = vmul.f32 0.020408163, %v241_v60  ;;  %v365_v51 = vsel %vm142_vm0, %v88_v44, 0.0  ;;  %v118_v57 = vld [vmem:[%s2935_s0 + $0x340] sm:$0xff] }
  0x9f   :  { %v1045_v5 = vrot.slane %v560_v1, %v2155_v32  ;;  %363 = vadd.xlane.f32.xlu1 %v362_v61  ;;  %v882_v61 = vadd.s32 4294967256, %v2130_v17  ;;  %v410_v1 = vsel %vm142_vm0, %v103_v58, 0.0 }
  0xa0   :  { %v1041_v6 = vrot.slane %v559_v2, %v2151_v28  ;;  %318 = vadd.xlane.f32.xlu0 %v317_v62  ;;  %v202_v8 = vpop.xlane.xlu1 %201 }
  0xa1   :  { %v154_v9 = vpop.xlane.xlu0 %153  ;;  %v546_v13 = vmul.f32 0.020408163, %v202_v8 }
  0xa2   :  { %v1046_v12 = vsel %vm859_vm1, %v1045_v5, %v1041_v6  ;;  %v530_v14 = vmul.f32 0.020408163, %v154_v9  ;;  %v28_v5 = vld [vmem:[%s2935_s0 + $0x70] sm:$0xff]  ;;  %v133_v6 = vld [vmem:[%s2935_s0 + $0x3b8] sm:$0xff] }
  0xa3   :  { %v976_v18 = vrot.slane %v546_v13, %v2198_v7  ;;  %453 = vadd.xlane.f32.xlu1 %v452_v10  ;;  %v2263_v10 = vsub.s32 %v882_v61, %v2138_v20  ;;  %v185_v13 = vsel %vm142_vm0, %v28_v5, 0.0 }
  0xa4   :  { %v872_v19 = vrot.slane %v530_v14, %v2198_v7  ;;  %408 = vadd.xlane.f32.xlu0 %v407_v11  ;;  %v289_v22 = vpop.xlane.xlu1 %288  ;;  %v500_v14 = vsel %vm142_vm0, %v133_v6, 0.0 }
  0xa5   :  { %v247_v23 = vpop.xlane.xlu0 %246  ;;  %v977_v26 = vsel %vm873_vm3, %v976_v18, %v972_v63  ;;  %v575_v33 = vmul.f32 0.020408163, %v289_v22 }
  0xa6   :  { %v874_v27 = vsel %vm873_vm3, %v872_v19, %v867_v0  ;;  %v561_v29 = vmul.f32 0.020408163, %v247_v23  ;;  %v455_v0 = vsel %vm142_vm0, %v118_v57, 0.0  ;;  %v59_v19 = vld [vmem:[%s2935_s0 + $0x168] sm:$0xff] }
  0xa7   :  { %183 = vadd.xlane.f32.xlu1 %v182_v24  ;;  %v1120_v46 = vrot.slane %v575_v33, %v2151_v28 }
  0xa8   :  { %v1050_v34 = vrot.slane %v561_v29, %v2167_v42  ;;  %498 = vadd.xlane.f32.xlu0 %v497_v25  ;;  %v157_v36 = vpop.xlane.xlu1 %156  ;;  %v233_v29 = vsel %vm142_vm0, %v44_v21, 0.0 }
  0xa9   :  { %v292_v37 = vpop.xlane.xlu0 %291  ;;  %v531_v41 = vmul.f32 0.020408163, %v157_v36  ;;  %v89_v36 = vld [vmem:[%s2935_s0 + $0x258] sm:$0xff] }
  0xaa   :  { %v1051_v40 = vsel %vm866_vm2, %v1050_v34, %v1046_v12  ;;  %v576_v43 = vmul.f32 0.020408163, %v292_v37  ;;  %v74_v37 = vld [vmem:[%s2935_s0 + $0x1e0] sm:$0xff] }
  0xab   :  { %v879_v47 = vrot.slane %v531_v41, %v2224_v35  ;;  %276 = vadd.xlane.f32.xlu1 %v275_v38  ;;  %v323_v44 = vsel %vm142_vm0, %v74_v37, 0.0 }
  0xac   :  { %v1124_v48 = vrot.slane %v576_v43, %v2155_v32  ;;  %231 = vadd.xlane.f32.xlu0 %v230_v39  ;;  %v250_v49 = vpop.xlane.xlu1 %249  ;;  %v368_v43 = vsel %vm142_vm0, %v89_v36, 0.0 }
  0xad   :  { %v205_v50 = vpop.xlane.xlu0 %204  ;;  %v881_v53 = vsel %vm880_vm4, %v879_v47, %v874_v27  ;;  %v562_v55 = vmul.f32 0.020408163, %v250_v49  ;;  %v278_v27 = vsel %vm142_vm0, %v59_v19, 0.0  ;;  %v119_v49 = vld [vmem:[%s2935_s0 + $0x348] sm:$0xff] }
  0xae   :  { %v1125_v54 = vsel %vm859_vm1, %v1124_v48, %v1120_v46  ;;  %v547_v56 = vmul.f32 0.020408163, %v205_v50  ;;  %v104_v50 = vld [vmem:[%s2935_s0 + $0x2d0] sm:$0xff] }
  0xaf   :  { %v1055_v59 = vrot.slane %v562_v55, %v2198_v7  ;;  %366 = vadd.xlane.f32.xlu1 %v365_v51  ;;  %v413_v57 = vsel %vm142_vm0, %v104_v50, 0.0 }
  0xb0   :  { %v981_v60 = vrot.slane %v547_v56, %v2224_v35  ;;  %321 = vadd.xlane.f32.xlu0 %v320_v52  ;;  %v337_v62 = vpop.xlane.xlu1 %336  ;;  %v458_v56 = vsel %vm142_vm0, %v119_v49, 0.0 }
  0xb1   :  { %v295_v63 = vpop.xlane.xlu0 %294  ;;  %v1056_v2 = vsel %vm873_vm3, %v1055_v59, %v1051_v40  ;;  %v591_v8 = vmul.f32 0.020408163, %v337_v62  ;;  %v29_v62 = vld [vmem:[%s2935_s0 + $0x78] sm:$0xff] }
  0xb2   :  { %v982_v3 = vsel %vm880_vm4, %v981_v60, %v977_v26  ;;  %v577_v4 = vmul.f32 0.020408163, %v295_v63  ;;  %v134_v63 = vld [vmem:[%s2935_s0 + $0x3c0] sm:$0xff]  ;;  %v188_v5 = vsel %vm142_vm0, %v29_v62, 0.0 }
  0xb3   :  { %456 = vadd.xlane.f32.xlu1 %v455_v0  ;;  %v1199_v22 = vrot.slane %v591_v8, %v2151_v28  ;;  %v503_v6 = vsel %vm142_vm0, %v134_v63, 0.0 }
  0xb4   :  { %v1129_v9 = vrot.slane %v577_v4, %v2167_v42  ;;  %411 = vadd.xlane.f32.xlu0 %v410_v1  ;;  %v160_v11 = vpop.xlane.xlu1 %159 }
  0xb5   :  { %v340_v12 = vpop.xlane.xlu0 %339  ;;  %v532_v16 = vmul.f32 0.020408163, %v160_v11 }
  0xb6   :  { %v1130_v15 = vsel %vm866_vm2, %v1129_v9, %v1125_v54  ;;  %v592_v18 = vmul.f32 0.020408163, %v340_v12  ;;  %v60_v12 = vld [vmem:[%s2935_s0 + $0x170] sm:$0xff] }
  0xb7   :  { %v886_v23 = vrot.slane %v532_v16, %v2263_v10  ;;  %186 = vadd.xlane.f32.xlu1 %v185_v13  ;;  %v45_v13 = vld [vmem:[%s2935_s0 + $0xf8] sm:$0xff]  ;;  %v281_v19 = vsel %vm142_vm0, %v60_v12, 0.0 }
  0xb8   :  { %v1203_v24 = vrot.slane %v592_v18, %v2155_v32  ;;  %501 = vadd.xlane.f32.xlu0 %v500_v14  ;;  %v253_v25 = vpop.xlane.xlu1 %252  ;;  %v236_v21 = vsel %vm142_vm0, %v45_v13, 0.0 }
  0xb9   :  { %v208_v26 = vpop.xlane.xlu0 %207  ;;  %v888_v30 = vsel %vm887_vm5, %v886_v23, %v881_v53  ;;  %v563_v33 = vmul.f32 0.020408163, %v253_v25  ;;  %v889_v53 = vadd.s32 4294967248, %v2130_v17 }
  0xba   :  { %v1204_v31 = vsel %vm859_vm1, %v1203_v24, %v1199_v22  ;;  %v548_v34 = vmul.f32 0.020408163, %v208_v26  ;;  %v90_v26 = vld [vmem:[%s2935_s0 + $0x260] sm:$0xff] }
  0xbb   :  { %v1060_v38 = vrot.slane %v563_v33, %v2224_v35  ;;  %279 = vadd.xlane.f32.xlu1 %v278_v27  ;;  %v75_v27 = vld [vmem:[%s2935_s0 + $0x1e8] sm:$0xff] }
  0xbc   :  { %v986_v39 = vrot.slane %v548_v34, %v2263_v10  ;;  %234 = vadd.xlane.f32.xlu0 %v233_v29  ;;  %v343_v40 = vpop.xlane.xlu1 %342  ;;  %v326_v36 = vsel %vm142_vm0, %v75_v27, 0.0 }
  0xbd   :  { %v298_v41 = vpop.xlane.xlu0 %297  ;;  %v1061_v45 = vsel %vm880_vm4, %v1060_v38, %v1056_v2  ;;  %v593_v47 = vmul.f32 0.020408163, %v343_v40  ;;  %v2315_v2 = vsub.s32 %v889_v53, %v2138_v20 }
  0xbe   :  { %v987_v46 = vsel %vm887_vm5, %v986_v39, %v982_v3  ;;  %v578_v48 = vmul.f32 0.020408163, %v298_v41  ;;  %v120_v41 = vld [vmem:[%s2935_s0 + $0x350] sm:$0xff] }
  0xbf   :  { %v1208_v51 = vrot.slane %v593_v47, %v2167_v42  ;;  %369 = vadd.xlane.f32.xlu1 %v368_v43  ;;  %v105_v43 = vld [vmem:[%s2935_s0 + $0x2d8] sm:$0xff]  ;;  %v896_v47 = vadd.s32 4294967240, %v2130_v17  ;;  %v461_v49 = vsel %vm142_vm0, %v120_v41, 0.0 }
  0xc0   :  { %v1134_v52 = vrot.slane %v578_v48, %v2198_v7  ;;  %324 = vadd.xlane.f32.xlu0 %v323_v44  ;;  %v388_v54 = vpop.xlane.xlu1 %387  ;;  %v416_v50 = vsel %vm142_vm0, %v105_v43, 0.0 }
  0xc1   :  { %v385_v55 = vpop.xlane.xlu0 %384  ;;  %v1209_v58 = vsel %vm866_vm2, %v1208_v51, %v1204_v31  ;;  %v608_v60 = vmul.f32 0.020408163, %v388_v54 }
  0xc2   :  { %v1135_v59 = vsel %vm873_vm3, %v1134_v52, %v1130_v15  ;;  %v607_v61 = vmul.f32 0.020408163, %v385_v55  ;;  %v61_v55 = vld [vmem:[%s2935_s0 + $0x178] sm:$0xff] }
  0xc3   :  { %v1282_v0 = vrot.slane %v608_v60, %v2155_v32  ;;  %459 = vadd.xlane.f32.xlu1 %v458_v56  ;;  %v135_v56 = vld [vmem:[%s2935_s0 + $0x3c8] sm:$0xff]  ;;  %v2366_v60 = vsub.s32 %v896_v47, %v2138_v20  ;;  %v284_v62 = vsel %vm142_vm0, %v61_v55, 0.0 }
  0xc4   :  { %v1278_v1 = vrot.slane %v607_v61, %v2151_v28  ;;  %414 = vadd.xlane.f32.xlu0 %v413_v57  ;;  %v211_v3 = vpop.xlane.xlu1 %210  ;;  %v506_v63 = vsel %vm142_vm0, %v135_v56, 0.0 }
  0xc5   :  { %v163_v4 = vpop.xlane.xlu0 %162  ;;  %v549_v9 = vmul.f32 0.020408163, %v211_v3 }
  0xc6   :  { %v1283_v8 = vsel %vm859_vm1, %v1282_v0, %v1278_v1  ;;  %v533_v11 = vmul.f32 0.020408163, %v163_v4  ;;  %v91_v4 = vld [vmem:[%s2935_s0 + $0x268] sm:$0xff] }
  0xc7   :  { %v991_v14 = vrot.slane %v549_v9, %v2315_v2  ;;  %189 = vadd.xlane.f32.xlu1 %v188_v5  ;;  %v76_v5 = vld [vmem:[%s2935_s0 + $0x1f0] sm:$0xff]  ;;  %v374_v12 = vsel %vm142_vm0, %v91_v4, 0.0 }
  0xc8   :  { %v893_v15 = vrot.slane %v533_v11, %v2315_v2  ;;  %504 = vadd.xlane.f32.xlu0 %v503_v6  ;;  %v301_v16 = vpop.xlane.xlu1 %300  ;;  %v329_v13 = vsel %vm142_vm0, %v76_v5, 0.0 }
  0xc9   :  { %v256_v18 = vpop.xlane.xlu0 %255  ;;  %v992_v22 = vsel %vm894_vm6, %v991_v14, %v987_v46  ;;  %v579_v24 = vmul.f32 0.020408163, %v301_v16 }
  0xca   :  { %v895_v23 = vsel %vm894_vm6, %v893_v15, %v888_v30  ;;  %v564_v25 = vmul.f32 0.020408163, %v256_v18  ;;  %v371_v30 = vsel %vm142_vm0, %v90_v26, 0.0 }
  0xcb   :  { %v1139_v29 = vrot.slane %v579_v24, %v2224_v35  ;;  %282 = vadd.xlane.f32.xlu1 %v281_v19  ;;  %v121_v19 = vld [vmem:[%s2935_s0 + $0x358] sm:$0xff] }
  0xcc   :  { %v1065_v31 = vrot.slane %v564_v25, %v2263_v10  ;;  %237 = vadd.xlane.f32.xlu0 %v236_v21  ;;  %v391_v33 = vpop.xlane.xlu1 %390  ;;  %v106_v21 = vld [vmem:[%s2935_s0 + $0x2e0] sm:$0xff] }
  0xcd   :  { %v346_v34 = vpop.xlane.xlu0 %345  ;;  %v1140_v37 = vsel %vm880_vm4, %v1139_v29, %v1135_v59  ;;  %v609_v39 = vmul.f32 0.020408163, %v391_v33  ;;  %v419_v27 = vsel %vm142_vm0, %v106_v21, 0.0 }
  0xce   :  { %v1066_v38 = vsel %vm887_vm5, %v1065_v31, %v1061_v45  ;;  %v594_v40 = vmul.f32 0.020408163, %v346_v34 }
  0xcf   :  { %v1287_v44 = vrot.slane %v609_v39, %v2167_v42  ;;  %372 = vadd.xlane.f32.xlu1 %v371_v30  ;;  %v77_v30 = vld [vmem:[%s2935_s0 + $0x1f8] sm:$0xff] }
  0xd0   :  { %v1213_v46 = vrot.slane %v594_v40, %v2198_v7  ;;  %327 = vadd.xlane.f32.xlu0 %v326_v36  ;;  %v436_v48 = vpop.xlane.xlu1 %435  ;;  %v136_v36 = vld [vmem:[%s2935_s0 + $0x3d0] sm:$0xff]  ;;  %v332_v43 = vsel %vm142_vm0, %v77_v30, 0.0 }
  0xd1   :  { %v433_v45 = vpop.xlane.xlu0 %432  ;;  %v1288_v51 = vsel %vm866_vm2, %v1287_v44, %v1283_v8  ;;  %v624_v53 = vmul.f32 0.020408163, %v436_v48  ;;  %v509_v44 = vsel %vm142_vm0, %v136_v36, 0.0 }
  0xd2   :  { %v1214_v52 = vsel %vm873_vm3, %v1213_v46, %v1209_v58  ;;  %v623_v54 = vmul.f32 0.020408163, %v433_v45  ;;  %v107_v45 = vld [vmem:[%s2935_s0 + $0x2e8] sm:$0xff] }
  0xd3   :  { %v1361_v57 = vrot.slane %v624_v53, %v2155_v32  ;;  %462 = vadd.xlane.f32.xlu1 %v461_v49  ;;  %v92_v49 = vld [vmem:[%s2935_s0 + $0x270] sm:$0xff] }
  0xd4   :  { %v1357_v59 = vrot.slane %v623_v54, %v2151_v28  ;;  %417 = vadd.xlane.f32.xlu0 %v416_v50  ;;  %v214_v58 = vpop.xlane.xlu1 %213  ;;  %v377_v56 = vsel %vm142_vm0, %v92_v49, 0.0 }
  0xd5   :  { %v166_v61 = vpop.xlane.xlu0 %165  ;;  %v550_v1 = vmul.f32 0.020408163, %v214_v58 }
  0xd6   :  { %v1362_v0 = vsel %vm859_vm1, %v1361_v57, %v1357_v59  ;;  %v534_v3 = vmul.f32 0.020408163, %v166_v61  ;;  %v137_v61 = vld [vmem:[%s2935_s0 + $0x3d8] sm:$0xff] }
  0xd7   :  { %v996_v6 = vrot.slane %v550_v1, %v2366_v60  ;;  %285 = vadd.xlane.f32.xlu1 %v284_v62  ;;  %v122_v62 = vld [vmem:[%s2935_s0 + $0x360] sm:$0xff]  ;;  %v512_v5 = vsel %vm142_vm0, %v137_v61, 0.0 }
  0xd8   :  { %v900_v8 = vrot.slane %v534_v3, %v2366_v60  ;;  %507 = vadd.xlane.f32.xlu0 %v506_v63  ;;  %v304_v9 = vpop.xlane.xlu1 %303 }
  0xd9   :  { %v259_v11 = vpop.xlane.xlu0 %258  ;;  %v2382_v14 = vsel %vm901_vm7, %v996_v6, %v992_v22  ;;  %v580_v16 = vmul.f32 0.020408163, %v304_v9  ;;  %v467_v6 = vsel %vm142_vm0, %v122_v62, 0.0 }
  0xda   :  { %v902_v15 = vsel %vm901_vm7, %v900_v8, %v895_v23  ;;  %v565_v18 = vmul.f32 0.020408163, %v259_v11  ;;  %v464_v23 = vsel %vm142_vm0, %v121_v19, 0.0 }
  0xdb   :  { %v1144_v24 = vrot.slane %v580_v16, %v2263_v10  ;;  %375 = vadd.xlane.f32.xlu1 %v374_v12  ;;  %v93_v12 = vld [vmem:[%s2935_s0 + $0x278] sm:$0xff] }
  0xdc   :  { %v1070_v25 = vrot.slane %v565_v18, %v2315_v2  ;;  %330 = vadd.xlane.f32.xlu0 %v329_v13  ;;  %v394_v22 = vpop.xlane.xlu1 %393  ;;  %v380_v21 = vsel %vm142_vm0, %v93_v12, 0.0 }
  0xdd   :  { %v349_v26 = vpop.xlane.xlu0 %348  ;;  %v2396_v29 = vsel %vm887_vm5, %v1144_v24, %v1140_v37  ;;  %v610_v33 = vmul.f32 0.020408163, %v394_v22  ;;  %v903_v37 = vadd.s32 4294967232, %v2130_v17 }
  0xde   :  { %v1071_v31 = vsel %vm894_vm6, %v1070_v25, %v1066_v38  ;;  %v595_v34 = vmul.f32 0.020408163, %v349_v26 }
  0xdf   :  { %v1292_v39 = vrot.slane %v610_v33, %v2198_v7  ;;  %465 = vadd.xlane.f32.xlu1 %v464_v23  ;;  %v2422_v54 = vsub.s32 %v903_v37, %v2138_v20  ;;  %v138_v23 = vld [vmem:[%s2935_s0 + $0x3e0] sm:$0xff]  ;;  %v910_v33 = vadd.s32 4294967224, %v2130_v17  ;;  %v109_v37 = vld [vmem:[%s2935_s0 + $0x2f8] sm:$0xff] }
  0xe0   :  { %v1218_v40 = vrot.slane %v595_v34, %v2224_v35  ;;  %420 = vadd.xlane.f32.xlu0 %v419_v27  ;;  %v481_v41 = vpop.xlane.xlu1 %480  ;;  %v123_v27 = vld [vmem:[%s2935_s0 + $0x368] sm:$0xff]  ;;  %v515_v36 = vsel %vm142_vm0, %v138_v23, 0.0  ;;  %v428_v62 = vsel %vm142_vm0, %v109_v37, 0.0  ;;  %v669_v37 = vld [vmem:[%s2936_s1 + $0x70] sm:$0xff] }
  0xe1   :  { %v439_v38 = vpop.xlane.xlu0 %438  ;;  %v2411_v46 = vsel %vm873_vm3, %v1292_v39, %v1288_v51  ;;  %v639_v50 = vmul.f32 0.020408163, %v481_v41  ;;  %v470_v39 = vsel %vm142_vm0, %v123_v27, 0.0  ;;  %v2494_v49 = vsub.s32 %v910_v33, %v2138_v20  ;;  %v140_v27 = vld [vmem:[%s2935_s0 + $0x3f0] sm:$0xff] }
  0xe2   :  { %v1219_v47 = vsel %vm880_vm4, %v1218_v40, %v1214_v52  ;;  %v625_v48 = vmul.f32 0.020408163, %v439_v38  ;;  %v422_v52 = vsel %vm142_vm0, %v107_v45, 0.0  ;;  %v124_v40 = vld [vmem:[%s2935_s0 + $0x370] sm:$0xff]  ;;  %v659_v45 = vld [vmem:[%s2936_s1 + $0x20] sm:$0xff] }
  0xe3   :  { %333 = vadd.xlane.f32.xlu1 %v332_v43  ;;  %v1436_v63 = vrot.slane %v639_v50, %v2151_v28  ;;  %v473_v61 = vsel %vm142_vm0, %v124_v40, 0.0 }
  0xe4   :  { %v1366_v53 = vrot.slane %v625_v48, %v2167_v42  ;;  %510 = vadd.xlane.f32.xlu0 %v509_v44  ;;  %v169_v51 = vpop.xlane.xlu1 %168  ;;  %v656_v48 = vld [vmem:[%s2936_s1 + $0x8] sm:$0xff] }
  0xe5   :  { %v484_v55 = vpop.xlane.xlu0 %483  ;;  %v535_v59 = vmul.f32 0.020408163, %v169_v51  ;;  %v1748_v50 = vpack.c.bf16 %v659_v45, %v656_v48  ;;  %v672_v45 = vld [vmem:[%s2936_s1 + $0x88] sm:$0xff] }
  0xe6   :  { %v2427_v57 = vsel %vm866_vm2, %v1366_v53, %v1362_v0  ;;  %v640_v58 = vmul.f32 0.020408163, %v484_v55  ;;  %v657_v53 = vld [vmem:[%s2936_s1 + $0x10] sm:$0xff] }
  0xe7   :  { %v907_v1 = vrot.slane %v535_v59, %v2422_v54  ;;  %423 = vadd.xlane.f32.xlu1 %v422_v52  ;;  %1749 = vmatprep.subr.bf16.mxu0 %v1748_v50 }
  0xe8   :  { %v1440_v3 = vrot.slane %v640_v58, %v2155_v32  ;;  %378 = vadd.xlane.f32.xlu0 %v377_v56  ;;  %v262_v0 = vpop.xlane.xlu1 %261  ;;  %v108_v32 = vld [vmem:[%s2935_s0 + $0x2f0] sm:$0xff]  ;;  %v660_v56 = vld [vmem:[%s2936_s1 + $0x28] sm:$0xff] }
  0xe9   :  { %v217_v4 = vpop.xlane.xlu0 %216  ;;  %v2441_v8 = vsel %vm908_vm8, %v907_v1, %v902_v15  ;;  %v566_v11 = vmul.f32 0.020408163, %v262_v0  ;;  %v425_v19 = vsel %vm142_vm0, %v108_v32, 0.0  ;;  %v139_v1 = vld [vmem:[%s2935_s0 + $0x3e8] sm:$0xff]  ;;  %v1781_v0 = vpack.c.bf16 %v660_v56, %v657_v53  ;;  %v665_v32 = vld [vmem:[%s2936_s1 + $0x50] sm:$0xff] }
  0xea   :  { %v2444_v9 = vsel %vm859_vm1, %v1440_v3, %v1436_v63  ;;  %v551_v28 = vmul.f32 0.020408163, %v217_v4  ;;  %v125_v63 = vld [vmem:[%s2935_s0 + $0x378] sm:$0xff]  ;;  %v1819_v3 = vmov 0.0|0.0   ;;  %v518_v23 = vsel %vm142_vm0, %v139_v1, 0.0 }
  0xeb   :  { %v1075_v13 = vrot.slane %v566_v11, %v2366_v60  ;;  %513 = vadd.xlane.f32.xlu1 %v512_v5  ;;  %1780 = vmatprep.subr.bf16.mxu1 %v1819_v3  ;;  %vm1512_vm1 = vcmask 1041409  }
  0xec   :  { %v1001_v16 = vrot.slane %v551_v28, %v2422_v54  ;;  %468 = vadd.xlane.f32.xlu0 %v467_v6  ;;  %v352_v15 = vpop.xlane.xlu1 %351  ;;  %v662_v28 = vld [vmem:[%s2936_s1 + $0x38] sm:$0xff]  ;;  %1782 = vmatpush3.bf16.msra.mxu1 %v1781_v0 }
  0xed   :  { %v307_v18 = vpop.xlane.xlu0 %306  ;;  %v2457_v24 = vsel %vm901_vm7, %v1075_v13, %v1071_v31  ;;  %v596_v22 = vmul.f32 0.020408163, %v352_v15  ;;  %v1752_v12 = vpack.c.bf16 %v665_v32, %v662_v28  ;;  %v663_v13 = vld [vmem:[%s2936_s1 + $0x40] sm:$0xff]  ;;  %1783 = vmatprep.subr.bf16.mxu1 %v1819_v3  ;;  %v678_v28 = vld [vmem:[%s2936_s1 + $0xb8] sm:$0xff] }
  0xee   :  { %v2461_v25 = vsel %vm908_vm8, %v1001_v16, %v2382_v14  ;;  %v581_v26 = vmul.f32 0.020408163, %v307_v18 }
  0xef   :  { %v1223_v34 = vrot.slane %v596_v22, %v2263_v10  ;;  %426 = vadd.xlane.f32.xlu1 %v425_v19  ;;  %v666_v19 = vld [vmem:[%s2936_s1 + $0x58] sm:$0xff] }
  0xf0   :  { %v1149_v31 = vrot.slane %v581_v26, %v2315_v2  ;;  %381 = vadd.xlane.f32.xlu0 %v380_v21  ;;  %v442_v14 = vpop.xlane.xlu1 %441  ;;  %v476_v26 = vsel %vm142_vm0, %v125_v63, 0.0  ;;  %v1784_v33 = vpack.c.bf16 %v666_v19, %v663_v13  ;;  %v675_v63 = vld [vmem:[%s2936_s1 + $0xa0] sm:$0xff] }
  0xf1   :  { %v397_v30 = vpop.xlane.xlu0 %396  ;;  %v2481_v41 = vsel %vm887_vm5, %v1223_v34, %v1219_v47  ;;  %v626_v43 = vmul.f32 0.020408163, %v442_v14  ;;  %v655_v47 = vld [vmem:[%s2936_s1] sm:$0xff] }
  0xf2   :  { %v2485_v38 = vsel %vm894_vm6, %v1149_v31, %v2396_v29  ;;  %v611_v44 = vmul.f32 0.020408163, %v397_v30  ;;  %v658_v29 = vld [vmem:[%s2936_s1 + $0x18] sm:$0xff]  ;;  %1785 = vmatpush3.bf16.msra.mxu1 %v1784_v33  ;;  %v683_v19 = vld [vmem:[%s2936_s1 + $0xe0] sm:$0xff]  ;;  %v684_v33 = vld [vmem:[%s2936_s1 + $0xe8] sm:$0xff] }
  0xf3   :  { %v1371_v51 = vrot.slane %v626_v43, %v2198_v7  ;;  %516 = vadd.xlane.f32.xlu1 %v515_v36  ;;  %v1750_v52 = vpack.c.bf16 %v658_v29, %v655_v47  ;;  %v668_v36 = vld [vmem:[%s2936_s1 + $0x68] sm:$0xff]  ;;  %v521_v29 = vsel %vm142_vm0, %v140_v27, 0.0  ;;  %1786 = vmatprep.subr.bf16.mxu1 %v1819_v3 }
  0xf4   :  { %v1297_v55 = vrot.slane %v611_v44, %v2224_v35  ;;  %471 = vadd.xlane.f32.xlu0 %v470_v39  ;;  %v172_v59 = vpop.xlane.xlu1 %171  ;;  %v671_v39 = vld [vmem:[%s2936_s1 + $0x80] sm:$0xff] }
  0xf5   :  { %v487_v58 = vpop.xlane.xlu0 %486  ;;  %v2521_v4 = vsel %vm873_vm3, %v1371_v51, %v2427_v57  ;;  %v536_v6 = vmul.f32 0.020408163, %v172_v59  ;;  %1751 = vmatpush1.bf16.msra.mxu0 %v1750_v52  ;;  %v661_v57 = vld [vmem:[%s2936_s1 + $0x30] sm:$0xff]  ;;  %v1756_v40 = vpack.c.bf16 %v671_v39, %v668_v36  ;;  %v1787_v51 = vpack.c.bf16 %v672_v45, %v669_v37  ;;  %v686_v37 = vld [vmem:[%s2936_s1 + $0xf8] sm:$0xff] }
  0xf6   :  { %v2525_v5 = vsel %vm880_vm4, %v1297_v55, %v2411_v46  ;;  %v641_v11 = vmul.f32 0.020408163, %v487_v58  ;;  %v664_v46 = vld [vmem:[%s2936_s1 + $0x48] sm:$0xff]  ;;  %1753 = vmatprep.subr.bf16.mxu0 %v1752_v12  ;;  %v674_v58 = vld [vmem:[%s2936_s1 + $0x98] sm:$0xff] }
  0xf7   :  { %v914_v16 = vrot.slane %v536_v6, %v2494_v49  ;;  %474 = vadd.xlane.f32.xlu1 %v473_v61  ;;  %v1754_v18 = vpack.c.bf16 %v664_v46, %v661_v57  ;;  %v677_v61 = vld [vmem:[%s2936_s1 + $0xb0] sm:$0xff]  ;;  %1788 = vmatpush3.bf16.msra.mxu1 %v1787_v51  ;;  %v917_v6 = vadd.s32 4294967216, %v2130_v17  ;;  %v1790_v57 = vpack.c.bf16 %v678_v28, %v675_v63 }
  0xf8   :  { %v1445_v15 = vrot.slane %v641_v11, %v2167_v42  ;;  %429 = vadd.xlane.f32.xlu0 %v428_v62  ;;  %v265_v21 = vpop.xlane.xlu1 %264  ;;  %v141_v42 = vld [vmem:[%s2935_s0 + $0x3f8] sm:$0xff]  ;;  %v1760_v62 = vpack.c.bf16 %v677_v61, %v674_v58  ;;  %1789 = vmatprep.subr.bf16.mxu1 %v1819_v3  ;;  %v693_v63 = vld [vmem:[%s2936_s1 + $0x130] sm:$0xff] }
  0xf9   :  { %v220_v22 = vpop.xlane.xlu0 %219  ;;  %v2558_v34 = vsel %vm915_vm9, %v914_v16, %v2441_v8  ;;  %v567_v14 = vmul.f32 0.020408163, %v265_v21  ;;  %1755 = vmatpush1.bf16.msra.mxu0 %v1754_v18  ;;  %v667_v8 = vld [vmem:[%s2936_s1 + $0x60] sm:$0xff]  ;;  %v524_v53 = vsel %vm142_vm0, %v141_v42, 0.0  ;;  %v680_v18 = vld [vmem:[%s2936_s1 + $0xc8] sm:$0xff]  ;;  %v2643_v27 = vsub.s32 %v917_v6, %v2138_v20 }
  0xfa   :  { %v2562_v31 = vsel %vm866_vm2, %v1445_v15, %v2444_v9  ;;  %v552_v30 = vmul.f32 0.020408163, %v220_v22  ;;  %v670_v9 = vld [vmem:[%s2936_s1 + $0x78] sm:$0xff]  ;;  %1757 = vmatprep.subr.bf16.mxu0 %v1756_v40  ;;  %v1764_v21 = vpack.c.bf16 %v683_v19, %v680_v18  ;;  %v681_v22 = vld [vmem:[%s2936_s1 + $0xd0] sm:$0xff]  ;;  %vm957_vm0 = vcmask 1048512  }
  0xfb   :  { %v1080_v43 = vrot.slane %v567_v14, %v2422_v54  ;;  %477 = vadd.xlane.f32.xlu1 %v476_v26  ;;  %v1758_v48 = vpack.c.bf16 %v670_v9, %v667_v8  ;;  %1791 = vmatpush3.bf16.msra.mxu1 %v1790_v57  ;;  %v1793_v36 = vpack.c.bf16 %v684_v33, %v681_v22  ;;  %v698_v19 = vld [vmem:[%s2936_s1 + $0x158] sm:$0xff]  ;;  %v699_v22 = vld [vmem:[%s2936_s1 + $0x160] sm:$0xff]  ;;  %vm1514_vm2 = vcmask 1042434  }
  0xfc   :  { %v1006_v44 = vrot.slane %v552_v30, %v2494_v49  ;;  %519 = vadd.xlane.f32.xlu0 %v518_v23  ;;  %v355_v50 = vpop.xlane.xlu1 %354  ;;  %1792 = vmatprep.subr.bf16.mxu1 %v1819_v3  ;;  %v702_v33 = vld [vmem:[%s2936_s1 + $0x178] sm:$0xff] }
  0xfd   :  { %v310_v47 = vpop.xlane.xlu0 %309  ;;  %v2589_v55 = vsel %vm908_vm8, %v1080_v43, %v2457_v24  ;;  %v597_v56 = vmul.f32 0.020408163, %v355_v50  ;;  %1759 = vmatpush1.bf16.msra.mxu0 %v1758_v48  ;;  %v673_v24 = vld [vmem:[%s2936_s1 + $0x90] sm:$0xff]  ;;  %v687_v48 = vld [vmem:[%s2936_s1 + $0x100] sm:$0xff] }
  0xfe   :  { %v2593_v52 = vsel %vm915_vm9, %v1006_v44, %v2461_v25  ;;  %v582_v59 = vmul.f32 0.020408163, %v310_v47  ;;  %v676_v25 = vld [vmem:[%s2936_s1 + $0xa8] sm:$0xff]  ;;  %1761 = vmatprep.subr.bf16.mxu0 %v1760_v62  ;;  %v689_v43 = vld [vmem:[%s2936_s1 + $0x110] sm:$0xff] }
  0xff   :  { %v1228_v1 = vrot.slane %v597_v56, %v2315_v2  ;;  %525 = vadd.xlane.f32.xlu1 %v524_v53  ;;  %v1762_v11 = vpack.c.bf16 %v676_v25, %v673_v24  ;;  %1794 = vmatpush3.bf16.msra.mxu1 %v1793_v36  ;;  %v1768_v44 = vpack.c.bf16 %v689_v43, %v686_v37  ;;  %v692_v62 = vld [vmem:[%s2936_s1 + $0x128] sm:$0xff]  ;;  %v695_v24 = vld [vmem:[%s2936_s1 + $0x140] sm:$0xff] }
 0x100   :  { %v1154_v0 = vrot.slane %v582_v59, %v2366_v60  ;;  %522 = vadd.xlane.f32.xlu0 %v521_v29  ;;  %v445_v32 = vpop.xlane.xlu1 %444  ;;  %1795 = vmatprep.subr.bf16.mxu1 %v1819_v3  ;;  %v690_v29 = vld [vmem:[%s2936_s1 + $0x118] sm:$0xff]  ;;  %v1772_v25 = vpack.c.bf16 %v695_v24, %v692_v62  ;;  %v1802_v36 = vpack.c.bf16 %v702_v33, %v699_v22 }
 0x101   :  { %v400_v12 = vpop.xlane.xlu0 %399  ;;  %v2619_v46 = vsel %vm894_vm6, %v1228_v1, %v2481_v41  ;;  %v627_v16 = vmul.f32 0.020408163, %v445_v32  ;;  %1763 = vmatpush1.bf16.msra.mxu0 %v1762_v11  ;;  %v679_v41 = vld [vmem:[%s2936_s1 + $0xc0] sm:$0xff]  ;;  %v1796_v56 = vpack.c.bf16 %v690_v29, %v687_v48  ;;  %v696_v11 = vld [vmem:[%s2936_s1 + $0x148] sm:$0xff] }
 0x102   :  { %v2623_v13 = vsel %vm901_vm7, %v1154_v0, %v2485_v38  ;;  %v612_v15 = vmul.f32 0.020408163, %v400_v12  ;;  %v682_v38 = vld [vmem:[%s2936_s1 + $0xd8] sm:$0xff]  ;;  %1765 = vmatprep.subr.bf16.mxu0 %v1764_v21  ;;  %v1799_v12 = vpack.c.bf16 %v696_v11, %v693_v63  ;;  %v701_v21 = vld [vmem:[%s2936_s1 + $0x170] sm:$0xff] }
 0x103   :  { %v1376_v26 = vrot.slane %v627_v16, %v2224_v35  ;;  %v1766_v42 = vpack.c.bf16 %v682_v38, %v679_v41  ;;  %1797 = vmatpush3.bf16.msra.mxu1 %v1796_v56  ;;  %v924_v41 = vadd.s32 4294967208, %v2130_v17  ;;  %v1776_v38 = vpack.c.bf16 %v701_v21, %v698_v19 }
 0x104   :  { %v1302_v23 = vrot.slane %v612_v15, %v2263_v10  ;;  %v175_v14 = vpop.xlane.xlu1 %174  ;;  %1798 = vmatprep.subr.bf16.mxu1 %v1819_v3 }
 0x105   :  { %v490_v30 = vpop.xlane.xlu0 %489  ;;  %v2651_v39 = vsel %vm880_vm4, %v1376_v26, %v2521_v4  ;;  %v537_v8 = vmul.f32 0.020408163, %v175_v14  ;;  %1767 = vmatpush1.bf16.msra.mxu0 %v1766_v42  ;;  %v685_v4 = vld [vmem:[%s2936_s1 + $0xf0] sm:$0xff] }
 0x106   :  { %v2655_v40 = vsel %vm887_vm5, %v1302_v23, %v2525_v5  ;;  %v642_v9 = vmul.f32 0.020408163, %v490_v30  ;;  %v688_v5 = vld [vmem:[%s2936_s1 + $0x108] sm:$0xff]  ;;  %1769 = vmatprep.subr.bf16.mxu0 %v1768_v44 }
 0x107   :  { %v921_v45 = vrot.slane %v537_v8, %v2643_v27  ;;  %v1770_v47 = vpack.c.bf16 %v688_v5, %v685_v4  ;;  %1800 = vmatpush3.bf16.msra.mxu1 %v1799_v12  ;;  %v1820_v8 = vmov 0.0   ;;  %v2740_v5 = vsub.s32 %v924_v41, %v2138_v20 }
 0x108   :  { %v1450_v50 = vrot.slane %v642_v9, %v2198_v7  ;;  %v268_v53 = vpop.xlane.xlu1 %267  ;;  %1801 = vmatprep.subr.bf16.mxu1 %v1819_v3  ;;  %1591 = vmatprep.mubr.f32.mxu0 %v1820_v8 }
 0x109   :  { %v223_v51 = vpop.xlane.xlu0 %222  ;;  %v2680_v59 = vsel %vm922_vm10, %v921_v45, %v2558_v34  ;;  %v568_v7 = vmul.f32 0.020408163, %v268_v53  ;;  %1771 = vmatpush1.bf16.msra.mxu0 %v1770_v47  ;;  %v691_v34 = vld [vmem:[%s2936_s1 + $0x120] sm:$0xff]  ;;  %1745 = vmatprep.mubr.msk.f32.mxu1 %vm1821_vm11, %v1820_v8 }
 0x10a   :  { %v2684_v58 = vsel %vm873_vm3, %v1450_v50, %v2562_v31  ;;  %v553_v61 = vmul.f32 0.020408163, %v223_v51  ;;  %v694_v31 = vld [vmem:[%s2936_s1 + $0x138] sm:$0xff]  ;;  %1773 = vmatprep.subr.bf16.mxu0 %v1772_v25  ;;  %vm1516_vm3 = vcmask 1043459  }
 0x10b   :  { %v1085_v1 = vrot.slane %v568_v7, %v2494_v49  ;;  %v1774_v6 = vpack.c.bf16 %v694_v31, %v691_v34  ;;  %1803 = vmatpush3.bf16.msra.mxu1 %v1802_v36 }
 0x10c   :  { %v1011_v0 = vrot.slane %v553_v61, %v2643_v27  ;;  %v358_v28 = vpop.xlane.xlu1 %357 }
 0x10d   :  { %v313_v32 = vpop.xlane.xlu0 %312  ;;  %v1086_v57 = vsel %vm915_vm9, %v1085_v1, %v2589_v55  ;;  %v598_v15 = vmul.f32 0.020408163, %v358_v28  ;;  %1775 = vmatpush1.bf16.msra.mxu0 %v1774_v6  ;;  %v697_v55 = vld [vmem:[%s2936_s1 + $0x150] sm:$0xff] }
 0x10e   :  { %v1012_v16 = vsel %vm922_vm10, %v1011_v0, %v2593_v52  ;;  %v583_v18 = vmul.f32 0.020408163, %v313_v32  ;;  %v700_v52 = vld [vmem:[%s2936_s1 + $0x168] sm:$0xff]  ;;  %1777 = vmatprep.subr.bf16.mxu0 %v1776_v38 }
 0x10f   :  { %v1233_v26 = vrot.slane %v598_v15, %v2366_v60  ;;  %v1778_v42 = vpack.c.bf16 %v700_v52, %v697_v55 }
 0x110   :  { %v1159_v23 = vrot.slane %v583_v18, %v2422_v54  ;;  %v448_v14 = vpop.xlane.xlu1 %447 }
 0x111   :  { %v403_v30 = vpop.xlane.xlu0 %402  ;;  %v1234_v9 = vsel %vm901_vm7, %v1233_v26, %v2619_v46  ;;  %v628_v43 = vmul.f32 0.020408163, %v448_v14  ;;  %1779 = vmatpush1.bf16.msra.mxu0 %v1778_v42 }
 0x112   :  { %v1160_v37 = vsel %vm908_vm8, %v1159_v23, %v2623_v13  ;;  %v613_v44 = vmul.f32 0.020408163, %v403_v30 }
 0x113   :  { %v1381_v3 = vrot.slane %v628_v43, %v2263_v10 }
 0x114   :  { %v1307_v4 = vrot.slane %v613_v44, %v2315_v2  ;;  %v178_v48 = vpop.xlane.xlu1 %177 }
 0x115   :  { %v493_v45 = vpop.xlane.xlu0 %492  ;;  %v1382_v46 = vsel %vm887_vm5, %v1381_v3, %v2651_v39  ;;  %v538_v50 = vmul.f32 0.020408163, %v178_v48 }
 0x116   :  { %v1308_v13 = vsel %vm894_vm6, %v1307_v4, %v2655_v40  ;;  %v643_v47 = vmul.f32 0.020408163, %v493_v45 }
 0x117   :  { %v928_v29 = vrot.slane %v538_v50, %v2740_v5 }
 0x118   :  { %v1455_v53 = vrot.slane %v643_v47, %v2224_v35  ;;  %v271_v51 = vpop.xlane.xlu1 %270 }
 0x119   :  { %v226_v56 = vpop.xlane.xlu0 %225  ;;  %v930_v7 = vsel %vm929_vm12, %v928_v29, %v2680_v59  ;;  %v569_v62 = vmul.f32 0.020408163, %v271_v51 }
 0x11a   :  { %v1456_v61 = vsel %vm880_vm4, %v1455_v53, %v2684_v58  ;;  %v554_v39 = vmul.f32 0.020408163, %v226_v56  ;;  %v931_v58 = vadd.s32 4294967200, %v2130_v17  ;;  %vm1518_vm4 = vcmask 1044484  }
 0x11b   :  { %v1090_v24 = vrot.slane %v569_v62, %v2643_v27 }
 0x11c   :  { %v1016_v40 = vrot.slane %v554_v39, %v2740_v5  ;;  %v361_v25 = vpop.xlane.xlu1 %360  ;;  %v2764_v18 = vsub.s32 %v931_v58, %v2138_v20 }
 0x11d   :  { %v316_v34 = vpop.xlane.xlu0 %315  ;;  %v1091_v31 = vsel %vm922_vm10, %v1090_v24, %v1086_v57  ;;  %v599_v63 = vmul.f32 0.020408163, %v361_v25 }
 0x11e   :  { %v1017_v35 = vsel %vm929_vm12, %v1016_v40, %v1012_v16  ;;  %v584_v1 = vmul.f32 0.020408163, %v316_v34 }
 0x11f   :  { %v1238_v0 = vrot.slane %v599_v63, %v2422_v54 }
 0x120   :  { %v1164_v59 = vrot.slane %v584_v1, %v2494_v49  ;;  %v451_v6 = vpop.xlane.xlu1 %450 }
 0x121   :  { %v406_v11 = vpop.xlane.xlu0 %405  ;;  %v1239_v28 = vsel %vm908_vm8, %v1238_v0, %v1234_v9  ;;  %v629_v12 = vmul.f32 0.020408163, %v451_v6 }
 0x122   :  { %v1165_v32 = vsel %vm915_vm9, %v1164_v59, %v1160_v37  ;;  %v614_v15 = vmul.f32 0.020408163, %v406_v11 }
 0x123   :  { %v1386_v57 = vrot.slane %v629_v12, %v2315_v2 }
 0x124   :  { %v1312_v16 = vrot.slane %v614_v15, %v2366_v60  ;;  %v181_v19 = vpop.xlane.xlu1 %180 }
 0x125   :  { %v496_v21 = vpop.xlane.xlu0 %495  ;;  %v1387_v41 = vsel %vm894_vm6, %v1386_v57, %v1382_v46  ;;  %v539_v55 = vmul.f32 0.020408163, %v181_v19  ;;  %v938_v46 = vadd.s32 4294967192, %v2130_v17 }
 0x126   :  { %v1313_v38 = vsel %vm901_vm7, %v1312_v16, %v1308_v13  ;;  %v644_v52 = vmul.f32 0.020408163, %v496_v21 }
 0x127   :  { %v935_v22 = vrot.slane %v539_v55, %v2764_v18 }
 0x128   :  { %v1460_v26 = vrot.slane %v644_v52, %v2263_v10  ;;  %v274_v23 = vpop.xlane.xlu1 %273 }
 0x129   :  { %v229_v42 = vpop.xlane.xlu0 %228  ;;  %v937_v33 = vsel %vm936_vm13, %v935_v22, %v930_v7  ;;  %v570_v30 = vmul.f32 0.020408163, %v274_v23 }
 0x12a   :  { %v1461_v14 = vsel %vm887_vm5, %v1460_v26, %v1456_v61  ;;  %v555_v36 = vmul.f32 0.020408163, %v229_v42  ;;  %v2784_v61 = vsub.s32 %v938_v46, %v2138_v20  ;;  %vm1520_vm5 = vcmask 1045509  }
 0x12b   :  { %v1095_v8 = vrot.slane %v570_v30, %v2740_v5 }
 0x12c   :  { %v1021_v9 = vrot.slane %v555_v36, %v2764_v18  ;;  %v364_v37 = vpop.xlane.xlu1 %363 }
 0x12d   :  { %v319_v43 = vpop.xlane.xlu0 %318  ;;  %v1096_v44 = vsel %vm929_vm12, %v1095_v8, %v1091_v31  ;;  %v600_v4 = vmul.f32 0.020408163, %v364_v37 }
 0x12e   :  { %v1022_v3 = vsel %vm936_vm13, %v1021_v9, %v1017_v35  ;;  %v585_v10 = vmul.f32 0.020408163, %v319_v43 }
 0x12f   :  { %v1243_v48 = vrot.slane %v600_v4, %v2494_v49 }
 0x130   :  { %v1169_v45 = vrot.slane %v585_v10, %v2643_v27  ;;  %v454_v13 = vpop.xlane.xlu1 %453 }
 0x131   :  { %v409_v50 = vpop.xlane.xlu0 %408  ;;  %v1244_v47 = vsel %vm915_vm9, %v1243_v48, %v1239_v28  ;;  %v630_v53 = vmul.f32 0.020408163, %v454_v13 }
 0x132   :  { %v1170_v29 = vsel %vm922_vm10, %v1169_v45, %v1165_v32  ;;  %v615_v51 = vmul.f32 0.020408163, %v409_v50 }
 0x133   :  { %v1391_v56 = vrot.slane %v630_v53, %v2366_v60 }
 0x134   :  { %v1317_v7 = vrot.slane %v615_v51, %v2422_v54  ;;  %v184_v62 = vpop.xlane.xlu1 %183 }
 0x135   :  { %v499_v39 = vpop.xlane.xlu0 %498  ;;  %v1392_v24 = vsel %vm901_vm7, %v1391_v56, %v1387_v41  ;;  %v540_v25 = vmul.f32 0.020408163, %v184_v62  ;;  %v945_v41 = vadd.s32 4294967184, %v2130_v17 }
 0x136   :  { %v1318_v40 = vsel %vm908_vm8, %v1317_v7, %v1313_v38  ;;  %v645_v34 = vmul.f32 0.020408163, %v499_v39 }
 0x137   :  { %v942_v31 = vrot.slane %v540_v25, %v2784_v61 }
 0x138   :  { %v1465_v35 = vrot.slane %v645_v34, %v2315_v2  ;;  %v277_v63 = vpop.xlane.xlu1 %276 }
 0x139   :  { %v232_v1 = vpop.xlane.xlu0 %231  ;;  %v944_v0 = vsel %vm943_vm14, %v942_v31, %v937_v33  ;;  %v571_v58 = vmul.f32 0.020408163, %v277_v63 }
 0x13a   :  { %v1466_v59 = vsel %vm894_vm6, %v1465_v35, %v1461_v14  ;;  %v556_v6 = vmul.f32 0.020408163, %v232_v1  ;;  %v2810_v14 = vsub.s32 %v945_v41, %v2138_v20  ;;  %vm1522_vm6 = vcmask 1046534  }
 0x13b   :  { %v1100_v11 = vrot.slane %v571_v58, %v2764_v18 }
 0x13c   :  { %v1026_v28 = vrot.slane %v556_v6, %v2784_v61  ;;  %v367_v32 = vpop.xlane.xlu1 %366 }
 0x13d   :  { %v322_v12 = vpop.xlane.xlu0 %321  ;;  %v2795_v15 = vsel %vm936_vm13, %v1100_v11, %v1096_v44  ;;  %v601_v2 = vmul.f32 0.020408163, %v367_v32 }
 0x13e   :  { %v1027_v57 = vsel %vm943_vm14, %v1026_v28, %v1022_v3  ;;  %v586_v16 = vmul.f32 0.020408163, %v322_v12 }
 0x13f   :  { %v1248_v19 = vrot.slane %v601_v2, %v2643_v27 }
 0x140   :  { %v1174_v21 = vrot.slane %v586_v16, %v2740_v5  ;;  %v457_v38 = vpop.xlane.xlu1 %456 }
 0x141   :  { %v412_v55 = vpop.xlane.xlu0 %411  ;;  %v2802_v52 = vsel %vm922_vm10, %v1248_v19, %v1244_v47  ;;  %v631_v26 = vmul.f32 0.020408163, %v457_v38 }
 0x142   :  { %v2805_v22 = vsel %vm929_vm12, %v1174_v21, %v1170_v29  ;;  %v616_v23 = vmul.f32 0.020408163, %v412_v55  ;;  %v952_v29 = vadd.s32 4294967176, %v2130_v17 }
 0x143   :  { %v1396_v42 = vrot.slane %v631_v26, %v2422_v54 }
 0x144   :  { %v1322_v33 = vrot.slane %v616_v23, %v2494_v49  ;;  %v187_v30 = vpop.xlane.xlu1 %186 }
 0x145   :  { %v502_v36 = vpop.xlane.xlu0 %501  ;;  %v2813_v8 = vsel %vm908_vm8, %v1396_v42, %v1392_v24  ;;  %v541_v37 = vmul.f32 0.020408163, %v187_v30 }
 0x146   :  { %v2816_v9 = vsel %vm915_vm9, %v1322_v33, %v1318_v40  ;;  %v646_v43 = vmul.f32 0.020408163, %v502_v36 }
 0x147   :  { %v949_v44 = vrot.slane %v541_v37, %v2810_v14 }
 0x148   :  { %v1470_v3 = vrot.slane %v646_v43, %v2366_v60  ;;  %v280_v4 = vpop.xlane.xlu1 %279  ;;  %v2832_v60 = vsub.s32 %v952_v29, %v2138_v20 }
 0x149   :  { %v235_v10 = vpop.xlane.xlu0 %234  ;;  %v951_v48 = vsel %vm950_vm15, %v949_v44, %v944_v0 }
 0x14a   :  { %v2822_v45 = vsel %vm901_vm7, %v1470_v3, %v1466_v59  ;;  %v557_v53 = vmul.f32 0.020408163, %v235_v10  ;;  %v572_v59 = vmul.f32 0.020408163, %v280_v4  ;;  %vm1524_vm7 = vcmask 1047559  }
 0x14c   :  { %v370_v46 = vpop.xlane.xlu1 %369  ;;  %v1031_v62 = vrot.slane %v557_v53, %v2810_v14  ;;  %v1105_v28 = vrot.slane %v572_v59, %v2784_v61 }
 0x14d   :  { %v325_v13 = vpop.xlane.xlu0 %324 }
 0x14e   :  { %v1032_v17 = vsel %vm950_vm15, %v1031_v62, %v1027_v57  ;;  %v1106_v57 = vsel %vm943_vm14, %v1105_v28, %v2795_v15  ;;  %v587_v26 = vmul.f32 0.020408163, %v325_v13 }
 0x150   :  { %v2824_v50 = vpop.xlane.xlu1 %459  ;;  %v1179_v37 = vrot.slane %v587_v26, %v2764_v18 }
 0x151   :  { %v2826_v47 = vpop.xlane.xlu0 %414 }
 0x152   :  { %v1180_v10 = vsel %vm936_vm13, %v1179_v37, %v2805_v22 }
 0x154   :  { %v190_v51 = vpop.xlane.xlu1 %189 }
 0x155   :  { %v2829_v56 = vpop.xlane.xlu0 %504  ;;  %v542_v7 = vmul.f32 0.020408163, %v190_v51 }
 0x157   :  { %v956_v40 = vrot.slane %v542_v7, %v2832_v60  ;;  %v602_v7 = vmul.f32 0.020408163, %v370_v46 }
 0x158   :  { %v283_v39 = vpop.xlane.xlu1 %282 }
 0x159   :  { %v238_v24 = vpop.xlane.xlu0 %237  ;;  %v958_v63 = vsel %vm957_vm0, %v956_v40, %v951_v48  ;;  %v573_v58 = vmul.f32 0.020408163, %v283_v39  ;;  %v1253_v22 = vrot.slane %v602_v7, %v2740_v5 }
 0x15a   :  { %v558_v25 = vmul.f32 0.020408163, %v238_v24 }
 0x15b   :  { %v1110_v32 = vrot.slane %v573_v58, %v2810_v14 }
 0x15c   :  { %v1036_v34 = vrot.slane %v558_v25, %v2832_v60  ;;  %v373_v31 = vpop.xlane.xlu1 %372 }
 0x15d   :  { %v328_v35 = vpop.xlane.xlu0 %327  ;;  %v1111_v21 = vsel %vm950_vm15, %v1110_v32, %v1106_v57  ;;  %v603_v39 = vmul.f32 0.020408163, %v373_v31  ;;  %v1254_v31 = vsel %vm929_vm12, %v1253_v22, %v2802_v52 }
 0x15e   :  { %v1037_v1 = vsel %vm957_vm0, %v1036_v34, %v1032_v17  ;;  %v588_v42 = vmul.f32 0.020408163, %v328_v35  ;;  %v632_v35 = vmul.f32 0.020408163, %v2824_v50 }
 0x15f   :  { %v1513_v0 = vsel %vm1512_vm1, %v1037_v1, %v958_v63  ;;  %v1258_v63 = vrot.slane %v603_v39, %v2764_v18  ;;  %v617_v1 = vmul.f32 0.020408163, %v2826_v47 }
 0x160   :  { %v463_v6 = vpop.xlane.xlu1 %462  ;;  %v1184_v43 = vrot.slane %v588_v42, %v2784_v61 }
 0x161   :  { %v418_v11 = vpop.xlane.xlu0 %417  ;;  %v1259_v50 = vsel %vm936_vm13, %v1258_v63, %v1254_v31  ;;  %v1327_v47 = vrot.slane %v617_v1, %v2643_v27 }
 0x162   :  { %v1185_v48 = vsel %vm943_vm14, %v1184_v43, %v1180_v10  ;;  %v618_v28 = vmul.f32 0.020408163, %v418_v11 }
 0x164   :  { %v286_v12 = vpop.xlane.xlu1 %285  ;;  %v1332_v42 = vrot.slane %v618_v28, %v2740_v5 }
 0x165   :  { %v2842_v2 = vpop.xlane.xlu0 %507  ;;  %v574_v16 = vmul.f32 0.020408163, %v286_v12  ;;  %v1401_v12 = vrot.slane %v632_v35, %v2494_v49 }
 0x166   :  { %v648_v10 = vmul.f32 0.020408163, %v2842_v2 }
 0x167   :  { %v1115_v19 = vrot.slane %v574_v16, %v2832_v60  ;;  %v633_v16 = vmul.f32 0.020408163, %v463_v6 }
 0x168   :  { %v376_v41 = vpop.xlane.xlu1 %375  ;;  %v1480_v22 = vrot.slane %v648_v10, %v2494_v49 }
 0x169   :  { %v331_v38 = vpop.xlane.xlu0 %330  ;;  %v1116_v55 = vsel %vm957_vm0, %v1115_v19, %v1111_v21  ;;  %v604_v40 = vmul.f32 0.020408163, %v376_v41 }
 0x16a   :  { %v1515_v23 = vsel %vm1514_vm2, %v1116_v55, %v1513_v0  ;;  %v589_v33 = vmul.f32 0.020408163, %v331_v38  ;;  %v647_v38 = vmul.f32 0.020408163, %v2829_v56  ;;  %v1402_v56 = vsel %vm915_vm9, %v1401_v12, %v2813_v8 }
 0x16b   :  { %v1263_v0 = vrot.slane %v604_v40, %v2784_v61 }
 0x16c   :  { %v466_v30 = vpop.xlane.xlu1 %465  ;;  %v1189_v15 = vrot.slane %v589_v33, %v2810_v14  ;;  %v1406_v33 = vrot.slane %v633_v16, %v2643_v27 }
 0x16d   :  { %v421_v36 = vpop.xlane.xlu0 %420  ;;  %v1264_v19 = vsel %vm943_vm14, %v1263_v0, %v1259_v50  ;;  %v634_v55 = vmul.f32 0.020408163, %v466_v30  ;;  %v1328_v30 = vsel %vm922_vm10, %v1327_v47, %v2816_v9 }
 0x16e   :  { %v1190_v29 = vsel %vm950_vm15, %v1189_v15, %v1185_v48  ;;  %v619_v57 = vmul.f32 0.020408163, %v421_v36  ;;  %v1407_v9 = vsel %vm922_vm10, %v1406_v33, %v1402_v56  ;;  %v707_v33 = vsub.s32 0, %v2138_v20 }
 0x16f   :  { %v1411_v48 = vrot.slane %v634_v55, %v2740_v5 }
 0x170   :  { %v334_v44 = vpop.xlane.xlu1 %333  ;;  %v1337_v36 = vrot.slane %v619_v57, %v2764_v18 }
 0x171   :  { %v511_v3 = vpop.xlane.xlu0 %510  ;;  %v590_v4 = vmul.f32 0.020408163, %v334_v44 }
 0x172   :  { %v649_v7 = vmul.f32 0.020408163, %v511_v3  ;;  %v1412_v3 = vsel %vm929_vm12, %v1411_v48, %v1407_v9 }
 0x173   :  { %v1194_v13 = vrot.slane %v590_v4, %v2832_v60  ;;  %v1475_v4 = vrot.slane %v647_v38, %v2422_v54 }
 0x174   :  { %v424_v53 = vpop.xlane.xlu1 %423 }
 0x175   :  { %v379_v51 = vpop.xlane.xlu0 %378  ;;  %v1195_v62 = vsel %vm957_vm0, %v1194_v13, %v1190_v29  ;;  %v620_v21 = vmul.f32 0.020408163, %v424_v53 }
 0x176   :  { %v1517_v24 = vsel %vm1516_vm3, %v1195_v62, %v1515_v23  ;;  %v605_v25 = vmul.f32 0.020408163, %v379_v51  ;;  %v1333_v51 = vsel %vm929_vm12, %v1332_v42, %v1328_v30 }
 0x177   :  { %v1342_v15 = vrot.slane %v620_v21, %v2784_v61  ;;  %v1338_v39 = vsel %vm936_vm13, %v1337_v36, %v1333_v51  ;;  %v715_v36 = vsub.s32 2, %v2138_v20 }
 0x178   :  { %v514_v34 = vpop.xlane.xlu1 %513  ;;  %v1268_v46 = vrot.slane %v605_v25, %v2810_v14 }
 0x179   :  { %v469_v17 = vpop.xlane.xlu0 %468  ;;  %v1343_v2 = vsel %vm943_vm14, %v1342_v15, %v1338_v39 }
 0x17a   :  { %v1269_v52 = vsel %vm950_vm15, %v1268_v46, %v1264_v19  ;;  %v635_v37 = vmul.f32 0.020408163, %v469_v17 }
 0x17c   :  { %v427_v59 = vpop.xlane.xlu1 %426  ;;  %v1416_v54 = vrot.slane %v635_v37, %v2764_v18 }
 0x17d   :  { %v382_v58 = vpop.xlane.xlu0 %381  ;;  %v621_v11 = vmul.f32 0.020408163, %v427_v59 }
 0x17e   :  { %v606_v32 = vmul.f32 0.020408163, %v382_v58  ;;  %v1417_v28 = vsel %vm936_vm13, %v1416_v54, %v1412_v3 }
 0x17f   :  { %v1347_v13 = vrot.slane %v621_v11, %v2810_v14 }
 0x180   :  { %v1273_v41 = vrot.slane %v606_v32, %v2832_v60  ;;  %v517_v26 = vpop.xlane.xlu1 %516  ;;  %v1476_v32 = vsel %vm908_vm8, %v1475_v4, %v2822_v45 }
 0x181   :  { %v472_v23 = vpop.xlane.xlu0 %471  ;;  %v651_v40 = vmul.f32 0.020408163, %v517_v26  ;;  %v1348_v35 = vsel %vm950_vm15, %v1347_v13, %v1343_v2  ;;  %v1481_v16 = vsel %vm915_vm9, %v1480_v22, %v1476_v32 }
 0x182   :  { %v1274_v6 = vsel %vm957_vm0, %v1273_v41, %v1269_v52  ;;  %v636_v44 = vmul.f32 0.020408163, %v472_v23 }
 0x183   :  { %v1519_v43 = vsel %vm1518_vm4, %v1274_v6, %v1517_v24  ;;  %v650_v24 = vmul.f32 0.020408163, %v514_v34  ;;  %v1485_v34 = vrot.slane %v649_v7, %v2643_v27  ;;  %v1495_v12 = vrot.slane %v651_v40, %v2764_v18 }
 0x184   :  { %v475_v29 = vpop.xlane.xlu1 %474  ;;  %v1421_v25 = vrot.slane %v636_v44, %v2784_v61 }
 0x185   :  { %v430_v53 = vpop.xlane.xlu0 %429  ;;  %v637_v8 = vmul.f32 0.020408163, %v475_v29  ;;  %v1490_v31 = vrot.slane %v650_v24, %v2740_v5  ;;  %v1486_v21 = vsel %vm922_vm10, %v1485_v34, %v1481_v16 }
 0x186   :  { %v622_v62 = vmul.f32 0.020408163, %v430_v53  ;;  %v1422_v50 = vsel %vm943_vm14, %v1421_v25, %v1417_v28 }
 0x187   :  { %v1426_v63 = vrot.slane %v637_v8, %v2810_v14  ;;  %v1491_v18 = vsel %vm929_vm12, %v1490_v31, %v1486_v21 }
 0x188   :  { %v1352_v17 = vrot.slane %v622_v62, %v2832_v60  ;;  %v478_v1 = vpop.xlane.xlu1 %477  ;;  %v1496_v52 = vsel %vm936_vm13, %v1495_v12, %v1491_v18 }
 0x189   :  { %v520_v0 = vpop.xlane.xlu0 %519  ;;  %v638_v59 = vmul.f32 0.020408163, %v478_v1  ;;  %v1427_v57 = vsel %vm950_vm15, %v1426_v63, %v1422_v50 }
 0x18a   :  { %v1353_v46 = vsel %vm957_vm0, %v1352_v17, %v1348_v35  ;;  %v652_v58 = vmul.f32 0.020408163, %v520_v0 }
 0x18b   :  { %v1521_v49 = vsel %vm1520_vm5, %v1353_v46, %v1519_v43  ;;  %v1431_v27 = vrot.slane %v638_v59, %v2832_v60 }
 0x18c   :  { %v1500_v5 = vrot.slane %v652_v58, %v2784_v61  ;;  %v526_v19 = vpop.xlane.xlu1 %525 }
 0x18d   :  { %v523_v47 = vpop.xlane.xlu0 %522  ;;  %v654_v38 = vmul.f32 0.020408163, %v526_v19  ;;  %v1432_v45 = vsel %vm957_vm0, %v1431_v27, %v1427_v57 }
 0x18e   :  { %v653_v41 = vmul.f32 0.020408163, %v523_v47  ;;  %v1523_v55 = vsel %vm1522_vm6, %v1432_v45, %v1521_v49  ;;  %v1501_v23 = vsel %vm943_vm14, %v1500_v5, %v1496_v52 }
 0x18f   :  { %v1510_v26 = vrot.slane %v654_v38, %v2832_v60  ;;  %v711_v60 = vsub.s32 1, %v2138_v20 }
 0x190   :  { %v1505_v11 = vrot.slane %v653_v41, %v2810_v14  ;;  %v703_v14 = vld [vmem:[%s2937_s2] sm:$0x7] }
 0x191   :  { %v708_v37 = vrot.slane %v703_v14, %v707_v33  ;;  %v716_v43 = vrot.slane %v703_v14, %v715_v36  ;;  %v712_v56 = vrot.slane %v703_v14, %v711_v60 }
 0x192   :  { %v1506_v61 = vsel %vm950_vm15, %v1505_v11, %v1501_v23 }
 0x193   :  { %v1511_v42 = vsel %vm957_vm0, %v1510_v26, %v1506_v61 }
 0x194   :  { %v1525_v6 = vsel %vm1524_vm7, %v1511_v42, %v1523_v55 }
 0x195   :  { %1592 = vmatmul.mubr.f32.vlgmr.msra.gmra.mrb[0].mxu0 %v1525_v6  ;;  %1746 = vmatmul.mubr.f32.vlgmr.msra.gmra.mrb[0].mxu1 %v1525_v6 }
 0x268   :  { %v1593_v30 = vpop.f32.mrb[0].mxu0  ;;  %v1664_v15 = vpop.f32.mrb[0].mxu1 }
 0x269   :  { %v1594_v44 = vadd.f32 %v1593_v30, %v708_v37  ;;  %v1665_v4 = vadd.f32 %v1664_v15, %v716_v43  ;;  %v1595_v10 = vpop.f32.mrb[1].mxu0  ;;  %v1747_v48 = vpop.f32.mrb[1].mxu1 }
 0x26a   :  { %v1596_v13 = vadd.f32 %v1595_v10, %v712_v56 }
 0x26b   :  { %v1693_v29 = vmul.f32 -1.442695, %v1594_v44  ;;  %v1695_v53 = vmul.f32 -1.442695, %v1665_v4 }
 0x26c   :  { %v1694_v51 = vmul.f32 -1.442695, %v1596_v13 }
 0x26d   :  { %1807 = vpow2.f32 %v1693_v29 }
 0x26e   :  { %1809 = vpow2.f32 %v1695_v53 }
 0x26f   :  { %1811 = vpow2.f32 %v1694_v51 }
 0x277   :  { %v1808_v7 = vpop.eup %1807 }
 0x278   :  { %v1810_v8 = vpop.eup %1809  ;;  %v1677_v62 = vadd.f32 1.0, %v1808_v7 }
 0x279   :  { %v1812_v20 = vpop.eup %1811  ;;  %v1679_v9 = vadd.f32 1.0, %v1810_v8 }
 0x27a   :  { %1813 = vrcp.f32 %v1677_v62  ;;  %v1678_v39 = vadd.f32 1.0, %v1812_v20 }
 0x27b   :  { %1815 = vrcp.f32 %v1679_v9 }
 0x27c   :  { %1817 = vrcp.f32 %v1678_v39 }
 0x284   :  { %v1814_v24 = vpop.eup %1813 }
 0x285   :  { %v1816_v54 = vpop.eup %1815  ;;  %1686 = vst [vmem:[%s2938_s3] sm:$0xff] %v1814_v24 }
 0x286   :  { %v1818_v2 = vpop.eup %1817  ;;  %1688 = vst [vmem:[%s2938_s3 + $0x10] sm:$0xff] %v1816_v54 }
 0x287   :  { %1687 = vst [vmem:[%s2938_s3 + $0x8] sm:$0xff] %v1818_v2 }

</bundles_post_ra>
